<compile_context>
chip_gen: v7x
topology: tpu7x:2x2x1
jax: 0.10.0
libtpu: 0.0.40
codegen_flags: <defaults>
</compile_context>

<pallas_src>
import jax
import jax.numpy as jnp
from jax.experimental import pallas as pl
from jax.experimental.pallas import tpu as pltpu

HIDDEN = 512
LANE = 128
_SUBLANE_BF16 = 16                     # bf16 vreg tile is [16, 128]
_VMEM_LIMIT_BYTES = 32 * 1024 * 1024   # fits v5e (128 MiB phys) and v7x (64 MiB)

# Flipped off at runtime if this jax build rejects pipeline_mode=pl.Buffered(1).
_SINGLE_BUFFER_WEIGHTS = True


def _round_up(n, m):
    return ((n + m - 1) // m) * m


# ---------------------------------------------------------------------------
# Kernel
# ---------------------------------------------------------------------------
def dqn_kernel(x_ref,
               w1_ref, b1_ref, w2_ref, b2_ref, w3_ref, b3_ref,
               w4_ref, b4_ref, w5_ref, b5_ref, w6_ref, b6_ref,
               out_ref):
    """Full 6-layer MLP forward for one batch tile; weights VMEM-resident.

    x_ref:   [TB, F]       input dtype (cast to bf16 in-kernel)
    wN_ref:  [in_N, out_N] bf16 (pre-transposed from PyTorch's [out, in])
    bN_ref:  [1, out_N]    f32
    out_ref: [TB, N_pad]   f32 (lane-dense, N padded to 128)
    """
    w_refs = (w1_ref, w2_ref, w3_ref, w4_ref, w5_ref, w6_ref)
    b_refs = (b1_ref, b2_ref, b3_ref, b4_ref, b5_ref, b6_ref)

    tb = x_ref.shape[0]
    # Cast to bf16 on the VPU (MXU operand dtype); avoids a separate XLA cast
    # op re-writing x in HBM before the kernel.
    x = x_ref[...].astype(jnp.bfloat16)

    def layer(h, i):
        # MXU matmul, f32 accumulation; bias + ReLU stay f32 on the VPU
        # (v5e has no bf16 VALU); re-cast to bf16 only as next MXU operand.
        y = jnp.dot(h, w_refs[i][...], preferred_element_type=jnp.float32)
        y = y + b_refs[i][...]
        if i < 5:
            y = jnp.maximum(y, 0.0).astype(jnp.bfloat16)
        return y

    if tb >= 256 and tb % (2 * _SUBLANE_BF16) == 0:
        # Two interleaved batch sub-tiles: the MXU push of sub-tile B is
        # independent of sub-tile A's epilogue, so the scheduler can hide the
        # MRF drain + 128-vreg VPU epilogue at every layer boundary.
        half = tb // 2
        hA, hB = x[:half], x[half:]
        for i in range(6):
            yA = layer(hA, i)
            yB = layer(hB, i)
            hA, hB = yA, yB
        out_ref[:half, :] = hA.astype(out_ref.dtype)
        out_ref[half:, :] = hB.astype(out_ref.dtype)
    else:
        h = x
        for i in range(6):
            h = layer(h, i)
        out_ref[...] = h.astype(out_ref.dtype)


# ---------------------------------------------------------------------------
# Parameter preparation (one-time, outside the per-call path)
# ---------------------------------------------------------------------------
def prepare_params(params):
    """One-time transform of PyTorch-convention params.

    params: list of 6 (W, b) pairs, W: [out, in] f32, b: [out] f32.
    Returns (flat_args, n_actions, n_pad) with:
      W -> [in, out] bf16 (final layer zero-padded to out=128 lanes)
      b -> [1, out]  f32  (final layer zero-padded to 128 lanes)

    Note: if F were large and not a multiple of 128, padding F (W1 rows and x
    columns) to a 128 multiple would improve MXU K-occupancy of layer 1; at
    F=32 it is not worth an extra HBM pass over x.
    """
    n_actions = params[-1][0].shape[0]
    n_pad = _round_up(n_actions, LANE)
    flat = []
    last = len(params) - 1
    for i, (w, b) in enumerate(params):
        w_t = jnp.asarray(w, jnp.float32).T          # [in, out]
        b_r = jnp.asarray(b, jnp.float32)[None, :]   # [1, out]
        if i == last and n_pad != n_actions:
            w_t = jnp.pad(w_t, ((0, 0), (0, n_pad - n_actions)))
            b_r = jnp.pad(b_r, ((0, 0), (0, n_pad - n_actions)))
        flat.append(w_t.astype(jnp.bfloat16))
        flat.append(b_r)                             # keep bias f32
    return tuple(flat), n_actions, n_pad


# ---------------------------------------------------------------------------
# Forward wrapper
# ---------------------------------------------------------------------------
def _choose_tb(B, block_b):
    """Batch-tile choice.

    B <= 256:        one tile rounded to 16 rows (weight-DMA-bound regime;
                     splitting would only duplicate the weight DMA per core).
    256 < B <= TB:   two tiles so v7x's second TensorCore gets work.
    B > TB:          block_b (amortizes the ~0.35 us/step overhead; grid >= 2
                     steps automatically).
    """
    if B <= 256:
        return _round_up(max(B, 1), _SUBLANE_BF16)
    if B <= block_b:
        return _round_up((B + 1) // 2, _SUBLANE_BF16)
    return block_b


def dqn_forward(x, prepared, *, block_b=512):
    """x: [B, F] (any float dtype). prepared: output of prepare_params."""
    global _SINGLE_BUFFER_WEIGHTS
    flat, n_actions, n_pad = prepared
    x = jnp.asarray(x)
    B, F = x.shape

    tb = _choose_tb(B, block_b)
    b_pad = _round_up(B, tb)
    assert b_pad % tb == 0 and tb % _SUBLANE_BF16 == 0
    grid = (b_pad // tb,)

    if b_pad != B:
        x = jnp.pad(x, ((0, b_pad - B), (0, 0)))

    def run(single_buffer):
        # x/out tiled along batch (double-buffered by Pallas); weights/biases
        # use a constant index_map -> DMA'd once, VMEM-resident across steps.
        in_specs = [pl.BlockSpec((tb, F), lambda i: (i, 0))]
        for arr in flat:
            if single_buffer:
                spec = pl.BlockSpec(arr.shape, lambda i: (0, 0),
                                    pipeline_mode=pl.Buffered(1))
            else:
                spec = pl.BlockSpec(arr.shape, lambda i: (0, 0))
            in_specs.append(spec)
        out_spec = pl.BlockSpec((tb, n_pad), lambda i: (i, 0))
        return pl.pallas_call(
            dqn_kernel,
            out_shape=jax.ShapeDtypeStruct((b_pad, n_pad), jnp.float32),
            grid=grid,
            in_specs=in_specs,
            out_specs=out_spec,
            compiler_params=pltpu.CompilerParams(
                dimension_semantics=("parallel",),
                vmem_limit_bytes=_VMEM_LIMIT_BYTES),
        )(x, *flat)

    out = None
    if _SINGLE_BUFFER_WEIGHTS:
        try:
            out = run(single_buffer=True)
        except Exception:
            # pipeline_mode=pl.Buffered(1) unsupported on this jax build;
            # fall back to default double-buffering (correct, ~2.8 MB more VMEM).
            _SINGLE_BUFFER_WEIGHTS = False
    if out is None:
        out = run(single_buffer=False)

    return out[:B, :n_actions]


# ---------------------------------------------------------------------------
# Init + pure-JAX reference (PyTorch semantics, f32)
# ---------------------------------------------------------------------------
def init_params(key, in_features, n_actions):
    """Deterministic init in PyTorch Linear convention: W [out, in], b [out]."""
    dims = [in_features, HIDDEN, HIDDEN, HIDDEN, HIDDEN, HIDDEN, n_actions]
    params = []
    for i in range(6):
        fan_in, fan_out = dims[i], dims[i + 1]
        key, kw, kb = jax.random.split(key, 3)
        bound = 1.0 / jnp.sqrt(fan_in)  # PyTorch default Linear init range
        w = jax.random.uniform(kw, (fan_out, fan_in), jnp.float32,
                               minval=-bound, maxval=bound)
        b = jax.random.uniform(kb, (fan_out,), jnp.float32,
                               minval=-bound, maxval=bound)
        params.append((w, b))
    return params


def reference_forward(x, params):
    """Pure-JAX f32 reference mirroring the PyTorch nn.Sequential semantics."""
    h = jnp.asarray(x, jnp.float32)
    for i, (w, b) in enumerate(params):
        h = h @ w.T + b
        if i < len(params) - 1:
            h = jnp.maximum(h, 0.0)
    return h


if __name__ == "__main__":
    key = jax.random.PRNGKey(0)
    key, kx, kx2 = jax.random.split(key, 3)

    in_features = 32      # input_shape[1]
    n_actions = 8

    params = init_params(key, in_features, n_actions)
    prepared = prepare_params(params)   # one-time: transpose / pad / bf16

    # Small batch (per-step action selection): single 16-row tile.
    x_small = jax.random.normal(kx, (2, in_features), jnp.float32)
    out_small = jax.block_until_ready(dqn_forward(x_small, prepared))
    ref_small = reference_forward(x_small, params)
    assert out_small.shape == (2, n_actions), out_small.shape
    err_small = float(jnp.max(jnp.abs(out_small - ref_small)))
    # bf16 matmul operands + f32 accumulation -> relaxed tolerance vs f32 ref.
    assert err_small < 2e-2, err_small

    # Larger batch: exercises the 2-step grid (v7x megacore) and the
    # interleaved two-sub-tile path inside the kernel.
    x_big = jax.random.normal(kx2, (512, in_features), jnp.float32)
    out_big = jax.block_until_ready(dqn_forward(x_big, prepared))
    ref_big = reference_forward(x_big, params)
    assert out_big.shape == (512, n_actions), out_big.shape
    err_big = float(jnp.max(jnp.abs(out_big - ref_big)))
    assert err_big < 5e-2, err_big

    print("KERNEL_OK")
</pallas_src>

<mosaic_0001>
module attributes {stable_mosaic.version = 11 : i64} {
  func.func @dqn_kernel(%arg0: i32, %arg1: memref<16x32xf32, #tpu.memory_space<vmem>>, %arg2: memref<32x512xbf16, #tpu.memory_space<vmem>>, %arg3: memref<1x512xf32, #tpu.memory_space<vmem>>, %arg4: memref<512x512xbf16, #tpu.memory_space<vmem>>, %arg5: memref<1x512xf32, #tpu.memory_space<vmem>>, %arg6: memref<512x512xbf16, #tpu.memory_space<vmem>>, %arg7: memref<1x512xf32, #tpu.memory_space<vmem>>, %arg8: memref<512x512xbf16, #tpu.memory_space<vmem>>, %arg9: memref<1x512xf32, #tpu.memory_space<vmem>>, %arg10: memref<512x512xbf16, #tpu.memory_space<vmem>>, %arg11: memref<1x512xf32, #tpu.memory_space<vmem>>, %arg12: memref<512x128xbf16, #tpu.memory_space<vmem>>, %arg13: memref<1x128xf32, #tpu.memory_space<vmem>>, %arg14: memref<16x128xf32, #tpu.memory_space<vmem>>) attributes {dimension_semantics = [#tpu.dimension_semantics<parallel>], iteration_bounds = array<i64: 1>, scalar_prefetch = 0 : i64, scratch_operands = 0 : i64, tpu.core_type = #tpu.core_type<tc>, window_params = [{transform_indices = @transform_0, window_bounds = array<i64: 16, 32>}, {pipeline_mode = #tpu.pipeline_mode<synchronous>, transform_indices = @transform_1, window_bounds = array<i64: 32, 512>}, {pipeline_mode = #tpu.pipeline_mode<synchronous>, transform_indices = @transform_2, window_bounds = array<i64: 1, 512>}, {pipeline_mode = #tpu.pipeline_mode<synchronous>, transform_indices = @transform_3, window_bounds = array<i64: 512, 512>}, {pipeline_mode = #tpu.pipeline_mode<synchronous>, transform_indices = @transform_4, window_bounds = array<i64: 1, 512>}, {pipeline_mode = #tpu.pipeline_mode<synchronous>, transform_indices = @transform_5, window_bounds = array<i64: 512, 512>}, {pipeline_mode = #tpu.pipeline_mode<synchronous>, transform_indices = @transform_6, window_bounds = array<i64: 1, 512>}, {pipeline_mode = #tpu.pipeline_mode<synchronous>, transform_indices = @transform_7, window_bounds = array<i64: 512, 512>}, {pipeline_mode = #tpu.pipeline_mode<synchronous>, transform_indices = @transform_8, window_bounds = array<i64: 1, 512>}, {pipeline_mode = #tpu.pipeline_mode<synchronous>, transform_indices = @transform_9, window_bounds = array<i64: 512, 512>}, {pipeline_mode = #tpu.pipeline_mode<synchronous>, transform_indices = @transform_10, window_bounds = array<i64: 1, 512>}, {pipeline_mode = #tpu.pipeline_mode<synchronous>, transform_indices = @transform_11, window_bounds = array<i64: 512, 128>}, {pipeline_mode = #tpu.pipeline_mode<synchronous>, transform_indices = @transform_12, window_bounds = array<i64: 1, 128>}, {transform_indices = @transform_13, window_bounds = array<i64: 16, 128>}]} {
    %c0 = arith.constant 0 : index
    %c0_0 = arith.constant 0 : index
    %0 = vector.load %arg1[%c0, %c0_0] : memref<16x32xf32, #tpu.memory_space<vmem>>, vector<16x32xf32>
    %1 = arith.truncf %0 : vector<16x32xf32> to vector<16x32xbf16>
    %c0_1 = arith.constant 0 : index
    %c0_2 = arith.constant 0 : index
    %2 = vector.load %arg2[%c0_1, %c0_2] : memref<32x512xbf16, #tpu.memory_space<vmem>>, vector<32x512xbf16>
    %cst = arith.constant dense<0.000000e+00> : vector<16x512xf32>
    %3 = tpu.matmul %1, %2, %cst {dimension_numbers = #tpu.dot_dimension_numbers<[1], [0], [0], [1], [0, 0, 1, 1], [], []>} : vector<16x32xbf16>, vector<32x512xbf16>, vector<16x512xf32> -> vector<16x512xf32>
    %c0_3 = arith.constant 0 : index
    %c0_4 = arith.constant 0 : index
    %4 = vector.load %arg3[%c0_3, %c0_4] : memref<1x512xf32, #tpu.memory_space<vmem>>, vector<1x512xf32>
    %5 = vector.broadcast %4 : vector<1x512xf32> to vector<16x512xf32>
    %6 = arith.addf %3, %5 : vector<16x512xf32>
    %cst_5 = arith.constant 0.000000e+00 : f32
    %7 = vector.broadcast %cst_5 : f32 to vector<16x512xf32>
    %8 = arith.maximumf %6, %7 : vector<16x512xf32>
    %9 = arith.truncf %8 : vector<16x512xf32> to vector<16x512xbf16>
    %c0_6 = arith.constant 0 : index
    %c0_7 = arith.constant 0 : index
    %10 = vector.load %arg4[%c0_6, %c0_7] : memref<512x512xbf16, #tpu.memory_space<vmem>>, vector<512x512xbf16>
    %cst_8 = arith.constant dense<0.000000e+00> : vector<16x512xf32>
    %11 = tpu.matmul %9, %10, %cst_8 {dimension_numbers = #tpu.dot_dimension_numbers<[1], [0], [0], [1], [0, 0, 1, 1], [], []>} : vector<16x512xbf16>, vector<512x512xbf16>, vector<16x512xf32> -> vector<16x512xf32>
    %c0_9 = arith.constant 0 : index
    %c0_10 = arith.constant 0 : index
    %12 = vector.load %arg5[%c0_9, %c0_10] : memref<1x512xf32, #tpu.memory_space<vmem>>, vector<1x512xf32>
    %13 = vector.broadcast %12 : vector<1x512xf32> to vector<16x512xf32>
    %14 = arith.addf %11, %13 : vector<16x512xf32>
    %cst_11 = arith.constant 0.000000e+00 : f32
    %15 = vector.broadcast %cst_11 : f32 to vector<16x512xf32>
    %16 = arith.maximumf %14, %15 : vector<16x512xf32>
    %17 = arith.truncf %16 : vector<16x512xf32> to vector<16x512xbf16>
    %c0_12 = arith.constant 0 : index
    %c0_13 = arith.constant 0 : index
    %18 = vector.load %arg6[%c0_12, %c0_13] : memref<512x512xbf16, #tpu.memory_space<vmem>>, vector<512x512xbf16>
    %cst_14 = arith.constant dense<0.000000e+00> : vector<16x512xf32>
    %19 = tpu.matmul %17, %18, %cst_14 {dimension_numbers = #tpu.dot_dimension_numbers<[1], [0], [0], [1], [0, 0, 1, 1], [], []>} : vector<16x512xbf16>, vector<512x512xbf16>, vector<16x512xf32> -> vector<16x512xf32>
    %c0_15 = arith.constant 0 : index
    %c0_16 = arith.constant 0 : index
    %20 = vector.load %arg7[%c0_15, %c0_16] : memref<1x512xf32, #tpu.memory_space<vmem>>, vector<1x512xf32>
    %21 = vector.broadcast %20 : vector<1x512xf32> to vector<16x512xf32>
    %22 = arith.addf %19, %21 : vector<16x512xf32>
    %cst_17 = arith.constant 0.000000e+00 : f32
    %23 = vector.broadcast %cst_17 : f32 to vector<16x512xf32>
    %24 = arith.maximumf %22, %23 : vector<16x512xf32>
    %25 = arith.truncf %24 : vector<16x512xf32> to vector<16x512xbf16>
    %c0_18 = arith.constant 0 : index
    %c0_19 = arith.constant 0 : index
    %26 = vector.load %arg8[%c0_18, %c0_19] : memref<512x512xbf16, #tpu.memory_space<vmem>>, vector<512x512xbf16>
    %cst_20 = arith.constant dense<0.000000e+00> : vector<16x512xf32>
    %27 = tpu.matmul %25, %26, %cst_20 {dimension_numbers = #tpu.dot_dimension_numbers<[1], [0], [0], [1], [0, 0, 1, 1], [], []>} : vector<16x512xbf16>, vector<512x512xbf16>, vector<16x512xf32> -> vector<16x512xf32>
    %c0_21 = arith.constant 0 : index
    %c0_22 = arith.constant 0 : index
    %28 = vector.load %arg9[%c0_21, %c0_22] : memref<1x512xf32, #tpu.memory_space<vmem>>, vector<1x512xf32>
    %29 = vector.broadcast %28 : vector<1x512xf32> to vector<16x512xf32>
    %30 = arith.addf %27, %29 : vector<16x512xf32>
    %cst_23 = arith.constant 0.000000e+00 : f32
    %31 = vector.broadcast %cst_23 : f32 to vector<16x512xf32>
    %32 = arith.maximumf %30, %31 : vector<16x512xf32>
    %33 = arith.truncf %32 : vector<16x512xf32> to vector<16x512xbf16>
    %c0_24 = arith.constant 0 : index
    %c0_25 = arith.constant 0 : index
    %34 = vector.load %arg10[%c0_24, %c0_25] : memref<512x512xbf16, #tpu.memory_space<vmem>>, vector<512x512xbf16>
    %cst_26 = arith.constant dense<0.000000e+00> : vector<16x512xf32>
    %35 = tpu.matmul %33, %34, %cst_26 {dimension_numbers = #tpu.dot_dimension_numbers<[1], [0], [0], [1], [0, 0, 1, 1], [], []>} : vector<16x512xbf16>, vector<512x512xbf16>, vector<16x512xf32> -> vector<16x512xf32>
    %c0_27 = arith.constant 0 : index
    %c0_28 = arith.constant 0 : index
    %36 = vector.load %arg11[%c0_27, %c0_28] : memref<1x512xf32, #tpu.memory_space<vmem>>, vector<1x512xf32>
    %37 = vector.broadcast %36 : vector<1x512xf32> to vector<16x512xf32>
    %38 = arith.addf %35, %37 : vector<16x512xf32>
    %cst_29 = arith.constant 0.000000e+00 : f32
    %39 = vector.broadcast %cst_29 : f32 to vector<16x512xf32>
    %40 = arith.maximumf %38, %39 : vector<16x512xf32>
    %41 = arith.truncf %40 : vector<16x512xf32> to vector<16x512xbf16>
    %c0_30 = arith.constant 0 : index
    %c0_31 = arith.constant 0 : index
    %42 = vector.load %arg12[%c0_30, %c0_31] : memref<512x128xbf16, #tpu.memory_space<vmem>>, vector<512x128xbf16>
    %cst_32 = arith.constant dense<0.000000e+00> : vector<16x128xf32>
    %43 = tpu.matmul %41, %42, %cst_32 {dimension_numbers = #tpu.dot_dimension_numbers<[1], [0], [0], [1], [0, 0, 1, 1], [], []>} : vector<16x512xbf16>, vector<512x128xbf16>, vector<16x128xf32> -> vector<16x128xf32>
    %c0_33 = arith.constant 0 : index
    %c0_34 = arith.constant 0 : index
    %44 = vector.load %arg13[%c0_33, %c0_34] : memref<1x128xf32, #tpu.memory_space<vmem>>, vector<1x128xf32>
    %45 = vector.broadcast %44 : vector<1x128xf32> to vector<16x128xf32>
    %46 = arith.addf %43, %45 : vector<16x128xf32>
    %c0_35 = arith.constant 0 : index
    %c0_36 = arith.constant 0 : index
    %47 = vector.load %arg14[%c0_35, %c0_36] : memref<16x128xf32, #tpu.memory_space<vmem>>, vector<16x128xf32>
    tpu.vector_store %arg14[%c0_35, %c0_36], %46 {strides = array<i32>} : memref<16x128xf32, #tpu.memory_space<vmem>>, vector<16x128xf32>,
    return
  }
  func.func @transform_0(%arg0: i32) -> (i32, i32) {
    %c0_i32 = arith.constant 0 : i32
    %c0_i32_0 = arith.constant 0 : i32
    return %arg0, %c0_i32 : i32, i32
  }
  func.func @transform_1(%arg0: i32) -> (i32, i32) {
    %c0_i32 = arith.constant 0 : i32
    %c0_i32_0 = arith.constant 0 : i32
    %c0_i32_1 = arith.constant 0 : i32
    return %c0_i32, %c0_i32_0 : i32, i32
  }
  func.func @transform_2(%arg0: i32) -> (i32, i32) {
    %c0_i32 = arith.constant 0 : i32
    %c0_i32_0 = arith.constant 0 : i32
    %c0_i32_1 = arith.constant 0 : i32
    return %c0_i32, %c0_i32_0 : i32, i32
  }
  func.func @transform_3(%arg0: i32) -> (i32, i32) {
    %c0_i32 = arith.constant 0 : i32
    %c0_i32_0 = arith.constant 0 : i32
    %c0_i32_1 = arith.constant 0 : i32
    return %c0_i32, %c0_i32_0 : i32, i32
  }
  func.func @transform_4(%arg0: i32) -> (i32, i32) {
    %c0_i32 = arith.constant 0 : i32
    %c0_i32_0 = arith.constant 0 : i32
    %c0_i32_1 = arith.constant 0 : i32
    return %c0_i32, %c0_i32_0 : i32, i32
  }
  func.func @transform_5(%arg0: i32) -> (i32, i32) {
    %c0_i32 = arith.constant 0 : i32
    %c0_i32_0 = arith.constant 0 : i32
    %c0_i32_1 = arith.constant 0 : i32
    return %c0_i32, %c0_i32_0 : i32, i32
  }
  func.func @transform_6(%arg0: i32) -> (i32, i32) {
    %c0_i32 = arith.constant 0 : i32
    %c0_i32_0 = arith.constant 0 : i32
    %c0_i32_1 = arith.constant 0 : i32
    return %c0_i32, %c0_i32_0 : i32, i32
  }
  func.func @transform_7(%arg0: i32) -> (i32, i32) {
    %c0_i32 = arith.constant 0 : i32
    %c0_i32_0 = arith.constant 0 : i32
    %c0_i32_1 = arith.constant 0 : i32
    return %c0_i32, %c0_i32_0 : i32, i32
  }
  func.func @transform_8(%arg0: i32) -> (i32, i32) {
    %c0_i32 = arith.constant 0 : i32
    %c0_i32_0 = arith.constant 0 : i32
    %c0_i32_1 = arith.constant 0 : i32
    return %c0_i32, %c0_i32_0 : i32, i32
  }
  func.func @transform_9(%arg0: i32) -> (i32, i32) {
    %c0_i32 = arith.constant 0 : i32
    %c0_i32_0 = arith.constant 0 : i32
    %c0_i32_1 = arith.constant 0 : i32
    return %c0_i32, %c0_i32_0 : i32, i32
  }
  func.func @transform_10(%arg0: i32) -> (i32, i32) {
    %c0_i32 = arith.constant 0 : i32
    %c0_i32_0 = arith.constant 0 : i32
    %c0_i32_1 = arith.constant 0 : i32
    return %c0_i32, %c0_i32_0 : i32, i32
  }
  func.func @transform_11(%arg0: i32) -> (i32, i32) {
    %c0_i32 = arith.constant 0 : i32
    %c0_i32_0 = arith.constant 0 : i32
    %c0_i32_1 = arith.constant 0 : i32
    return %c0_i32, %c0_i32_0 : i32, i32
  }
  func.func @transform_12(%arg0: i32) -> (i32, i32) {
    %c0_i32 = arith.constant 0 : i32
    %c0_i32_0 = arith.constant 0 : i32
    %c0_i32_1 = arith.constant 0 : i32
    return %c0_i32, %c0_i32_0 : i32, i32
  }
  func.func @transform_13(%arg0: i32) -> (i32, i32) {
    %c0_i32 = arith.constant 0 : i32
    %c0_i32_0 = arith.constant 0 : i32
    return %arg0, %c0_i32 : i32, i32
  }
}

module attributes {stable_mosaic.version = 11 : i64} {
  func.func @dqn_kernel(%arg0: i32, %arg1: memref<16x32xf32, #tpu.memory_space<vmem>>, %arg2: memref<32x512xbf16, #tpu.memory_space<vmem>>, %arg3: memref<1x512xf32, #tpu.memory_space<vmem>>, %arg4: memref<512x512xbf16, #tpu.memory_space<vmem>>, %arg5: memref<1x512xf32, #tpu.memory_space<vmem>>, %arg6: memref<512x512xbf16, #tpu.memory_space<vmem>>, %arg7: memref<1x512xf32, #tpu.memory_space<vmem>>, %arg8: memref<512x512xbf16, #tpu.memory_space<vmem>>, %arg9: memref<1x512xf32, #tpu.memory_space<vmem>>, %arg10: memref<512x512xbf16, #tpu.memory_space<vmem>>, %arg11: memref<1x512xf32, #tpu.memory_space<vmem>>, %arg12: memref<512x128xbf16, #tpu.memory_space<vmem>>, %arg13: memref<1x128xf32, #tpu.memory_space<vmem>>, %arg14: memref<16x128xf32, #tpu.memory_space<vmem>>) attributes {dimension_semantics = [#tpu.dimension_semantics<parallel>], iteration_bounds = array<i64: 1>, scalar_prefetch = 0 : i64, scratch_operands = 0 : i64, tpu.core_type = #tpu.core_type<tc>, window_params = [{transform_indices = @transform_0, window_bounds = array<i64: 16, 32>}, {pipeline_mode = #tpu.pipeline_mode<synchronous>, transform_indices = @transform_1, window_bounds = array<i64: 32, 512>}, {pipeline_mode = #tpu.pipeline_mode<synchronous>, transform_indices = @transform_2, window_bounds = array<i64: 1, 512>}, {pipeline_mode = #tpu.pipeline_mode<synchronous>, transform_indices = @transform_3, window_bounds = array<i64: 512, 512>}, {pipeline_mode = #tpu.pipeline_mode<synchronous>, transform_indices = @transform_4, window_bounds = array<i64: 1, 512>}, {pipeline_mode = #tpu.pipeline_mode<synchronous>, transform_indices = @transform_5, window_bounds = array<i64: 512, 512>}, {pipeline_mode = #tpu.pipeline_mode<synchronous>, transform_indices = @transform_6, window_bounds = array<i64: 1, 512>}, {pipeline_mode = #tpu.pipeline_mode<synchronous>, transform_indices = @transform_7, window_bounds = array<i64: 512, 512>}, {pipeline_mode = #tpu.pipeline_mode<synchronous>, transform_indices = @transform_8, window_bounds = array<i64: 1, 512>}, {pipeline_mode = #tpu.pipeline_mode<synchronous>, transform_indices = @transform_9, window_bounds = array<i64: 512, 512>}, {pipeline_mode = #tpu.pipeline_mode<synchronous>, transform_indices = @transform_10, window_bounds = array<i64: 1, 512>}, {pipeline_mode = #tpu.pipeline_mode<synchronous>, transform_indices = @transform_11, window_bounds = array<i64: 512, 128>}, {pipeline_mode = #tpu.pipeline_mode<synchronous>, transform_indices = @transform_12, window_bounds = array<i64: 1, 128>}, {transform_indices = @transform_13, window_bounds = array<i64: 16, 128>}]} {
    %c0 = arith.constant 0 : index
    %c0_0 = arith.constant 0 : index
    %0 = vector.load %arg1[%c0, %c0_0] : memref<16x32xf32, #tpu.memory_space<vmem>>, vector<16x32xf32>
    %1 = arith.truncf %0 : vector<16x32xf32> to vector<16x32xbf16>
    %c0_1 = arith.constant 0 : index
    %c0_2 = arith.constant 0 : index
    %2 = vector.load %arg2[%c0_1, %c0_2] : memref<32x512xbf16, #tpu.memory_space<vmem>>, vector<32x512xbf16>
    %cst = arith.constant dense<0.000000e+00> : vector<16x512xf32>
    %3 = tpu.matmul %1, %2, %cst {dimension_numbers = #tpu.dot_dimension_numbers<[1], [0], [0], [1], [0, 0, 1, 1], [], []>} : vector<16x32xbf16>, vector<32x512xbf16>, vector<16x512xf32> -> vector<16x512xf32>
    %c0_3 = arith.constant 0 : index
    %c0_4 = arith.constant 0 : index
    %4 = vector.load %arg3[%c0_3, %c0_4] : memref<1x512xf32, #tpu.memory_space<vmem>>, vector<1x512xf32>
    %5 = vector.broadcast %4 : vector<1x512xf32> to vector<16x512xf32>
    %6 = arith.addf %3, %5 : vector<16x512xf32>
    %cst_5 = arith.constant 0.000000e+00 : f32
    %7 = vector.broadcast %cst_5 : f32 to vector<16x512xf32>
    %8 = arith.maximumf %6, %7 : vector<16x512xf32>
    %9 = arith.truncf %8 : vector<16x512xf32> to vector<16x512xbf16>
    %c0_6 = arith.constant 0 : index
    %c0_7 = arith.constant 0 : index
    %10 = vector.load %arg4[%c0_6, %c0_7] : memref<512x512xbf16, #tpu.memory_space<vmem>>, vector<512x512xbf16>
    %cst_8 = arith.constant dense<0.000000e+00> : vector<16x512xf32>
    %11 = tpu.matmul %9, %10, %cst_8 {dimension_numbers = #tpu.dot_dimension_numbers<[1], [0], [0], [1], [0, 0, 1, 1], [], []>} : vector<16x512xbf16>, vector<512x512xbf16>, vector<16x512xf32> -> vector<16x512xf32>
    %c0_9 = arith.constant 0 : index
    %c0_10 = arith.constant 0 : index
    %12 = vector.load %arg5[%c0_9, %c0_10] : memref<1x512xf32, #tpu.memory_space<vmem>>, vector<1x512xf32>
    %13 = vector.broadcast %12 : vector<1x512xf32> to vector<16x512xf32>
    %14 = arith.addf %11, %13 : vector<16x512xf32>
    %cst_11 = arith.constant 0.000000e+00 : f32
    %15 = vector.broadcast %cst_11 : f32 to vector<16x512xf32>
    %16 = arith.maximumf %14, %15 : vector<16x512xf32>
    %17 = arith.truncf %16 : vector<16x512xf32> to vector<16x512xbf16>
    %c0_12 = arith.constant 0 : index
    %c0_13 = arith.constant 0 : index
    %18 = vector.load %arg6[%c0_12, %c0_13] : memref<512x512xbf16, #tpu.memory_space<vmem>>, vector<512x512xbf16>
    %cst_14 = arith.constant dense<0.000000e+00> : vector<16x512xf32>
    %19 = tpu.matmul %17, %18, %cst_14 {dimension_numbers = #tpu.dot_dimension_numbers<[1], [0], [0], [1], [0, 0, 1, 1], [], []>} : vector<16x512xbf16>, vector<512x512xbf16>, vector<16x512xf32> -> vector<16x512xf32>
    %c0_15 = arith.constant 0 : index
    %c0_16 = arith.constant 0 : index
    %20 = vector.load %arg7[%c0_15, %c0_16] : memref<1x512xf32, #tpu.memory_space<vmem>>, vector<1x512xf32>
    %21 = vector.broadcast %20 : vector<1x512xf32> to vector<16x512xf32>
    %22 = arith.addf %19, %21 : vector<16x512xf32>
    %cst_17 = arith.constant 0.000000e+00 : f32
    %23 = vector.broadcast %cst_17 : f32 to vector<16x512xf32>
    %24 = arith.maximumf %22, %23 : vector<16x512xf32>
    %25 = arith.truncf %24 : vector<16x512xf32> to vector<16x512xbf16>
    %c0_18 = arith.constant 0 : index
    %c0_19 = arith.constant 0 : index
    %26 = vector.load %arg8[%c0_18, %c0_19] : memref<512x512xbf16, #tpu.memory_space<vmem>>, vector<512x512xbf16>
    %cst_20 = arith.constant dense<0.000000e+00> : vector<16x512xf32>
    %27 = tpu.matmul %25, %26, %cst_20 {dimension_numbers = #tpu.dot_dimension_numbers<[1], [0], [0], [1], [0, 0, 1, 1], [], []>} : vector<16x512xbf16>, vector<512x512xbf16>, vector<16x512xf32> -> vector<16x512xf32>
    %c0_21 = arith.constant 0 : index
    %c0_22 = arith.constant 0 : index
    %28 = vector.load %arg9[%c0_21, %c0_22] : memref<1x512xf32, #tpu.memory_space<vmem>>, vector<1x512xf32>
    %29 = vector.broadcast %28 : vector<1x512xf32> to vector<16x512xf32>
    %30 = arith.addf %27, %29 : vector<16x512xf32>
    %cst_23 = arith.constant 0.000000e+00 : f32
    %31 = vector.broadcast %cst_23 : f32 to vector<16x512xf32>
    %32 = arith.maximumf %30, %31 : vector<16x512xf32>
    %33 = arith.truncf %32 : vector<16x512xf32> to vector<16x512xbf16>
    %c0_24 = arith.constant 0 : index
    %c0_25 = arith.constant 0 : index
    %34 = vector.load %arg10[%c0_24, %c0_25] : memref<512x512xbf16, #tpu.memory_space<vmem>>, vector<512x512xbf16>
    %cst_26 = arith.constant dense<0.000000e+00> : vector<16x512xf32>
    %35 = tpu.matmul %33, %34, %cst_26 {dimension_numbers = #tpu.dot_dimension_numbers<[1], [0], [0], [1], [0, 0, 1, 1], [], []>} : vector<16x512xbf16>, vector<512x512xbf16>, vector<16x512xf32> -> vector<16x512xf32>
    %c0_27 = arith.constant 0 : index
    %c0_28 = arith.constant 0 : index
    %36 = vector.load %arg11[%c0_27, %c0_28] : memref<1x512xf32, #tpu.memory_space<vmem>>, vector<1x512xf32>
    %37 = vector.broadcast %36 : vector<1x512xf32> to vector<16x512xf32>
    %38 = arith.addf %35, %37 : vector<16x512xf32>
    %cst_29 = arith.constant 0.000000e+00 : f32
    %39 = vector.broadcast %cst_29 : f32 to vector<16x512xf32>
    %40 = arith.maximumf %38, %39 : vector<16x512xf32>
    %41 = arith.truncf %40 : vector<16x512xf32> to vector<16x512xbf16>
    %c0_30 = arith.constant 0 : index
    %c0_31 = arith.constant 0 : index
    %42 = vector.load %arg12[%c0_30, %c0_31] : memref<512x128xbf16, #tpu.memory_space<vmem>>, vector<512x128xbf16>
    %cst_32 = arith.constant dense<0.000000e+00> : vector<16x128xf32>
    %43 = tpu.matmul %41, %42, %cst_32 {dimension_numbers = #tpu.dot_dimension_numbers<[1], [0], [0], [1], [0, 0, 1, 1], [], []>} : vector<16x512xbf16>, vector<512x128xbf16>, vector<16x128xf32> -> vector<16x128xf32>
    %c0_33 = arith.constant 0 : index
    %c0_34 = arith.constant 0 : index
    %44 = vector.load %arg13[%c0_33, %c0_34] : memref<1x128xf32, #tpu.memory_space<vmem>>, vector<1x128xf32>
    %45 = vector.broadcast %44 : vector<1x128xf32> to vector<16x128xf32>
    %46 = arith.addf %43, %45 : vector<16x128xf32>
    %c0_35 = arith.constant 0 : index
    %c0_36 = arith.constant 0 : index
    %47 = vector.load %arg14[%c0_35, %c0_36] : memref<16x128xf32, #tpu.memory_space<vmem>>, vector<16x128xf32>
    tpu.vector_store %arg14[%c0_35, %c0_36], %46 {strides = array<i32>} : memref<16x128xf32, #tpu.memory_space<vmem>>, vector<16x128xf32>,
    return
  }
  func.func @transform_0(%arg0: i32) -> (i32, i32) {
    %c0_i32 = arith.constant 0 : i32
    %c0_i32_0 = arith.constant 0 : i32
    return %arg0, %c0_i32 : i32, i32
  }
  func.func @transform_1(%arg0: i32) -> (i32, i32) {
    %c0_i32 = arith.constant 0 : i32
    %c0_i32_0 = arith.constant 0 : i32
    %c0_i32_1 = arith.constant 0 : i32
    return %c0_i32, %c0_i32_0 : i32, i32
  }
  func.func @transform_2(%arg0: i32) -> (i32, i32) {
    %c0_i32 = arith.constant 0 : i32
    %c0_i32_0 = arith.constant 0 : i32
    %c0_i32_1 = arith.constant 0 : i32
    return %c0_i32, %c0_i32_0 : i32, i32
  }
  func.func @transform_3(%arg0: i32) -> (i32, i32) {
    %c0_i32 = arith.constant 0 : i32
    %c0_i32_0 = arith.constant 0 : i32
    %c0_i32_1 = arith.constant 0 : i32
    return %c0_i32, %c0_i32_0 : i32, i32
  }
  func.func @transform_4(%arg0: i32) -> (i32, i32) {
    %c0_i32 = arith.constant 0 : i32
    %c0_i32_0 = arith.constant 0 : i32
    %c0_i32_1 = arith.constant 0 : i32
    return %c0_i32, %c0_i32_0 : i32, i32
  }
  func.func @transform_5(%arg0: i32) -> (i32, i32) {
    %c0_i32 = arith.constant 0 : i32
    %c0_i32_0 = arith.constant 0 : i32
    %c0_i32_1 = arith.constant 0 : i32
    return %c0_i32, %c0_i32_0 : i32, i32
  }
  func.func @transform_6(%arg0: i32) -> (i32, i32) {
    %c0_i32 = arith.constant 0 : i32
    %c0_i32_0 = arith.constant 0 : i32
    %c0_i32_1 = arith.constant 0 : i32
    return %c0_i32, %c0_i32_0 : i32, i32
  }
  func.func @transform_7(%arg0: i32) -> (i32, i32) {
    %c0_i32 = arith.constant 0 : i32
    %c0_i32_0 = arith.constant 0 : i32
    %c0_i32_1 = arith.constant 0 : i32
    return %c0_i32, %c0_i32_0 : i32, i32
  }
  func.func @transform_8(%arg0: i32) -> (i32, i32) {
    %c0_i32 = arith.constant 0 : i32
    %c0_i32_0 = arith.constant 0 : i32
    %c0_i32_1 = arith.constant 0 : i32
    return %c0_i32, %c0_i32_0 : i32, i32
  }
  func.func @transform_9(%arg0: i32) -> (i32, i32) {
    %c0_i32 = arith.constant 0 : i32
    %c0_i32_0 = arith.constant 0 : i32
    %c0_i32_1 = arith.constant 0 : i32
    return %c0_i32, %c0_i32_0 : i32, i32
  }
  func.func @transform_10(%arg0: i32) -> (i32, i32) {
    %c0_i32 = arith.constant 0 : i32
    %c0_i32_0 = arith.constant 0 : i32
    %c0_i32_1 = arith.constant 0 : i32
    return %c0_i32, %c0_i32_0 : i32, i32
  }
  func.func @transform_11(%arg0: i32) -> (i32, i32) {
    %c0_i32 = arith.constant 0 : i32
    %c0_i32_0 = arith.constant 0 : i32
    %c0_i32_1 = arith.constant 0 : i32
    return %c0_i32, %c0_i32_0 : i32, i32
  }
  func.func @transform_12(%arg0: i32) -> (i32, i32) {
    %c0_i32 = arith.constant 0 : i32
    %c0_i32_0 = arith.constant 0 : i32
    %c0_i32_1 = arith.constant 0 : i32
    return %c0_i32, %c0_i32_0 : i32, i32
  }
  func.func @transform_13(%arg0: i32) -> (i32, i32) {
    %c0_i32 = arith.constant 0 : i32
    %c0_i32_0 = arith.constant 0 : i32
    return %arg0, %c0_i32 : i32, i32
  }
}

</mosaic_0001>

<bundles_post_ra>
// kernel: tpu_custom_call.1
= control target key start
LH: loop header
LB: loop body
LE: loop exit
PB: predicated region body
PF: predicated region fallthrough
CT: control target
= control target key end

     0   :  { %18 = vsyncpa [#allocation3], 0  ;;  %s6528_s0 = inlined_call_operand.hbm [shape: f32[16,32], index: 0, kind: input, shape index: {}]   ;;  %s6529_s1 = inlined_call_operand.hbm [shape: bf16[32,512], index: 1, kind: input, shape index: {}]   ;;  %s6530_s2 = inlined_call_operand.vmem [shape: f32[1,512], index: 2, kind: input, shape index: {}]   ;;  %s6531_s3 = inlined_call_operand.hbm [shape: bf16[512,512], index: 3, kind: input, shape index: {}]   ;;  %s6532_s4 = inlined_call_operand.vmem [shape: f32[1,512], index: 4, kind: input, shape index: {}]   ;;  %s6533_s5 = inlined_call_operand.hbm [shape: bf16[512,512], index: 5, kind: input, shape index: {}]   ;;  %s6534_s6 = inlined_call_operand.vmem [shape: f32[1,512], index: 6, kind: input, shape index: {}]   ;;  %s6535_s7 = inlined_call_operand.hbm [shape: bf16[512,512], index: 7, kind: input, shape index: {}]   ;;  %s6536_s8 = inlined_call_operand.vmem [shape: f32[1,512], index: 8, kind: input, shape index: {}]   ;;  %s6537_s9 = inlined_call_operand.hbm [shape: bf16[512,512], index: 9, kind: input, shape index: {}]   ;;  %s6538_s10 = inlined_call_operand.vmem [shape: f32[1,512], index: 10, kind: input, shape index: {}]   ;;  %s6539_s11 = inlined_call_operand.hbm [shape: bf16[512,128], index: 11, kind: input, shape index: {}]   ;;  %s6540_s12 = inlined_call_operand.vmem [shape: f32[1,128], index: 12, kind: input, shape index: {}]   ;;  %s6541_s13 = inlined_call_operand.hbm [shape: f32[16,128], index: 13, kind: output, shape index: {}]  }
   0x1   :  { %19 = vsyncpa [#allocation6], 0 }
   0x2   :  { %20 = vsyncpa [#allocation9], 0 }
   0x3   :  { %21 = vsyncpa [#allocation12], 0 }
   0x4   :  { %22 = vsyncpa [#allocation4], 0  ;;  %s6255_s25 = smov [#allocation5]   ;;  %s6069_s29 = scalar_lea.hbm %s6529_s1, 1024 }
   0x5   :  { %s40_s26 = sshll.u32 %s6255_s25, 4  ;;  %p6070_p0 = scmp.ne.s32.totalorder %s6529_s1, %s6069_s29  ;;  %s41_s26 = int_to_ptr.vmem [resolvable:$true] %s40_s26 }
   0x6   :  { %p6073_p1 = scmp.lt.u32.totalorder %s6069_s29, %s6529_s1 }
   0x8   :  { %p6075_p2 = pnand %p6073_p1, %p6070_p0 }
   0xa   :  { %6078 = shalt.err (!%p6075_p2)
}
   0xb   :  { %s6079_s17 = scalar_lea.vmem %s41_s26, 1024  ;;  %p6084_p4 = scmp.lt.s32.totalorder %s41_s26, %s41_s26 }
   0xc   :  { %p6080_p3 = scmp.ne.s32.totalorder %s41_s26, %s6079_s17  ;;  %p6085_p5 = scmp.lt.s32.totalorder %s6079_s17, %s6079_s17 }
   0xe   :  { %p6086_p6 = por %p6085_p5, %p6084_p4 }
  0x10   :  { %p6087_p7 = pnand %p6086_p6, %p6080_p3 }
  0x12   :  { %6090 = shalt.err (!%p6087_p7)
}
  0x13   :  { %s6256_s18 = smov 256   ;;  %s6257_s19 = smov 16  }
  0x14   :  { %46 = dma.hbm_to_vmem [thread:$0]  %s6529_s1, 1024, %s41_s26, [#allocation6], %s6256_s18, %s6256_s18, %s6257_s19  }
  0x15   :  { %s6258_s22 = smov [#allocation8]   ;;  %s6259_s24 = smov [#allocation11]  }
  0x16   :  { %s68_s23 = sshll.u32 %s6258_s22, 4  ;;  %s96_s25 = sshll.u32 %s6259_s24, 4  ;;  %s69_s23 = int_to_ptr.vmem [resolvable:$true] %s68_s23  ;;  %s97_s25 = int_to_ptr.vmem [resolvable:$true] %s96_s25 }
  0x17   :  { %s6091_s29 = scalar_lea.hbm %s6533_s5, 16384 }
  0x18   :  { %p6092_p8 = scmp.ne.s32.totalorder %s6533_s5, %s6091_s29  ;;  %p6095_p9 = scmp.lt.u32.totalorder %s6091_s29, %s6533_s5 }
  0x1a   :  { %p6097_p10 = pnand %p6095_p9, %p6092_p8 }
  0x1c   :  { %6100 = shalt.err (!%p6097_p10)
}
  0x1d   :  { %s6101_s1 = scalar_lea.vmem %s69_s23, 16384  ;;  %p6106_p12 = scmp.lt.s32.totalorder %s69_s23, %s69_s23 }
  0x1e   :  { %p6102_p11 = scmp.ne.s32.totalorder %s69_s23, %s6101_s1  ;;  %p6107_p13 = scmp.lt.s32.totalorder %s6101_s1, %s6101_s1 }
  0x20   :  { %p6108_p0 = por %p6107_p13, %p6106_p12 }
  0x22   :  { %p6109_p1 = pnand %p6108_p0, %p6102_p11 }
  0x24   :  { %6112 = shalt.err (!%p6109_p1)
}
  0x25   :  { %74 = dma.hbm_to_vmem [thread:$0]  %s6533_s5, 16384, %s69_s23, [#allocation9], %s6256_s18, %s6256_s18, %s6257_s19  }
  0x26   :  { %s6113_s22 = scalar_lea.hbm %s6537_s9, 16384 }
  0x27   :  { %p6114_p2 = scmp.ne.s32.totalorder %s6537_s9, %s6113_s22  ;;  %p6117_p3 = scmp.lt.u32.totalorder %s6113_s22, %s6537_s9 }
  0x29   :  { %p6119_p4 = pnand %p6117_p3, %p6114_p2 }
  0x2b   :  { %6122 = shalt.err (!%p6119_p4)
}
  0x2c   :  { %s6123_s30 = scalar_lea.vmem %s97_s25, 16384  ;;  %p6128_p6 = scmp.lt.s32.totalorder %s97_s25, %s97_s25 }
  0x2d   :  { %p6124_p5 = scmp.ne.s32.totalorder %s97_s25, %s6123_s30  ;;  %p6129_p7 = scmp.lt.s32.totalorder %s6123_s30, %s6123_s30 }
  0x2f   :  { %p6130_p8 = por %p6129_p7, %p6128_p6 }
  0x31   :  { %p6131_p9 = pnand %p6130_p8, %p6124_p5 }
  0x33   :  { %6134 = shalt.err (!%p6131_p9)
}
  0x34   :  { %102 = dma.hbm_to_vmem [thread:$0]  %s6537_s9, 16384, %s97_s25, [#allocation12], %s6256_s18, %s6256_s18, %s6257_s19  }
  0x35   :  { %s6260_s14 = smov [#allocation2]   ;;  %s6135_s26 = scalar_lea.hbm %s6528_s0, 256 }
  0x36   :  { %s28_s15 = sshll.u32 %s6260_s14, 4  ;;  %p6136_p10 = scmp.ne.s32.totalorder %s6528_s0, %s6135_s26  ;;  %s29_s15 = int_to_ptr.vmem [resolvable:$true] %s28_s15 }
  0x37   :  { %p6139_p11 = scmp.lt.u32.totalorder %s6135_s26, %s6528_s0 }
  0x39   :  { %p6141_p12 = pnand %p6139_p11, %p6136_p10 }
  0x3b   :  { %6144 = shalt.err (!%p6141_p12)
}
  0x3c   :  { %s6145_s24 = scalar_lea.vmem %s29_s15, 256  ;;  %p6150_p0 = scmp.lt.s32.totalorder %s29_s15, %s29_s15 }
  0x3d   :  { %p6146_p13 = scmp.ne.s32.totalorder %s29_s15, %s6145_s24  ;;  %p6151_p1 = scmp.lt.s32.totalorder %s6145_s24, %s6145_s24 }
  0x3f   :  { %p6152_p2 = por %p6151_p1, %p6150_p0 }
  0x41   :  { %p6153_p3 = pnand %p6152_p2, %p6146_p13 }
  0x43   :  { %6156 = shalt.err (!%p6153_p3)
}
  0x44   :  { %s6261_s9 = smov 128   ;;  %s6262_s25 = smov 8  }
  0x45   :  { %34 = dma.hbm_to_vmem [thread:$0]  %s6528_s0, 256, %s29_s15, [#allocation3], %s6261_s9, %s6261_s9, %s6262_s25  }
  0x46   :  { %s6263_s29 = smov [#allocation7]   ;;  %s6264_s5 = smov [#allocation10]  }
  0x47   :  { %s54_s30 = sshll.u32 %s6263_s29, 4  ;;  %s82_s23 = sshll.u32 %s6264_s5, 4  ;;  %s55_s30 = int_to_ptr.vmem [resolvable:$true] %s54_s30  ;;  %s6400_s23 = int_to_ptr.vmem [resolvable:$true] %s82_s23 }
  0x48   :  { %s6157_s1 = scalar_lea.hbm %s6531_s3, 16384 }
  0x49   :  { %p6158_p4 = scmp.ne.s32.totalorder %s6531_s3, %s6157_s1  ;;  %p6161_p5 = scmp.lt.u32.totalorder %s6157_s1, %s6531_s3 }
  0x4b   :  { %p6163_p6 = pnand %p6161_p5, %p6158_p4 }
  0x4d   :  { %6166 = shalt.err (!%p6163_p6)
}
  0x4e   :  { %s6167_s0 = scalar_lea.vmem %s55_s30, 16384  ;;  %p6172_p8 = scmp.lt.s32.totalorder %s55_s30, %s55_s30 }
  0x4f   :  { %p6168_p7 = scmp.ne.s32.totalorder %s55_s30, %s6167_s0  ;;  %p6173_p9 = scmp.lt.s32.totalorder %s6167_s0, %s6167_s0 }
  0x51   :  { %p6174_p10 = por %p6173_p9, %p6172_p8 }
  0x53   :  { %p6175_p11 = pnand %p6174_p10, %p6168_p7 }
  0x55   :  { %6178 = shalt.err (!%p6175_p11)
}
  0x56   :  { %60 = dma.hbm_to_vmem [thread:$0]  %s6531_s3, 16384, %s55_s30, [#allocation6], %s6256_s18, %s6256_s18, %s6257_s19  }
  0x57   :  { %s6179_s28 = scalar_lea.hbm %s6535_s7, 16384 }
  0x58   :  { %p6180_p12 = scmp.ne.s32.totalorder %s6535_s7, %s6179_s28  ;;  %p6183_p13 = scmp.lt.u32.totalorder %s6179_s28, %s6535_s7 }
  0x5a   :  { %p6185_p0 = pnand %p6183_p13, %p6180_p12 }
  0x5c   :  { %6188 = shalt.err (!%p6185_p0)
}
  0x5d   :  { %s6189_s1 = scalar_lea.vmem %s6400_s23, 16384  ;;  %p6194_p2 = scmp.lt.s32.totalorder %s6400_s23, %s6400_s23 }
  0x5e   :  { %p6190_p1 = scmp.ne.s32.totalorder %s6400_s23, %s6189_s1  ;;  %p6195_p3 = scmp.lt.s32.totalorder %s6189_s1, %s6189_s1 }
  0x60   :  { %p6196_p4 = por %p6195_p3, %p6194_p2 }
  0x62   :  { %p6197_p5 = pnand %p6196_p4, %p6190_p1 }
  0x64   :  { %6200 = shalt.err (!%p6197_p5)
}
  0x65   :  { %88 = dma.hbm_to_vmem [thread:$0]  %s6535_s7, 16384, %s6400_s23, [#allocation9], %s6256_s18, %s6256_s18, %s6257_s19  }
  0x66   :  { %s6265_s26 = smov [#allocation13]   ;;  %s6201_s0 = scalar_lea.hbm %s6539_s11, 4096 }
  0x67   :  { %s110_s17 = sshll.u32 %s6265_s26, 4  ;;  %p6202_p6 = scmp.ne.s32.totalorder %s6539_s11, %s6201_s0  ;;  %s111_s17 = int_to_ptr.vmem [resolvable:$true] %s110_s17 }
  0x68   :  { %p6205_p7 = scmp.lt.u32.totalorder %s6201_s0, %s6539_s11 }
  0x6a   :  { %p6207_p8 = pnand %p6205_p7, %p6202_p6 }
  0x6c   :  { %6210 = shalt.err (!%p6207_p8)
}
  0x6d   :  { %s6211_s28 = scalar_lea.vmem %s111_s17, 4096  ;;  %p6216_p10 = scmp.lt.s32.totalorder %s111_s17, %s111_s17 }
  0x6e   :  { %p6212_p9 = scmp.ne.s32.totalorder %s111_s17, %s6211_s28  ;;  %p6217_p11 = scmp.lt.s32.totalorder %s6211_s28, %s6211_s28 }
  0x70   :  { %p6218_p12 = por %p6217_p11, %p6216_p10 }
  0x72   :  { %p6219_p13 = pnand %p6218_p12, %p6212_p9 }
  0x74   :  { %6222 = shalt.err (!%p6219_p13)
}
  0x75   :  { %s6266_s7 = smov 64   ;;  %s6267_s18 = smov 4  }
  0x76   :  { %116 = dma.hbm_to_vmem [thread:$0]  %s6539_s11, 4096, %s111_s17, [#allocation12], %s6266_s7, %s6266_s7, %s6267_s18  }
  0x77   :  { %6245 = dma.done.wait [#allocation3], 256  }
  0x78   :  { %6246 = vsyncadd [#allocation3], 4294967040 }
  0x79   :  { %6247 = dma.done.wait [#allocation6], 17408  }
  0x7a   :  { %6248 = vsyncadd [#allocation6], 4294949888 }
  0x7b   :  { %6249 = dma.done.wait [#allocation9], 32768  }
  0x7c   :  { %6250 = vsyncadd [#allocation9], 4294934528 }
  0x7d   :  { %6251 = dma.done.wait [#allocation12], 20480  }
  0x7e   :  { %6252 = vsyncadd [#allocation12], 4294946816  ;;  %v6268_v0 = vmov 0   ;;  %v5257_v1 = vld [vmem:[#allocation5 + $0x4] ss:$16 sps:$4 sm:$0xff]   ;;  %v142_v6 = vld [vmem:[#allocation2 + $0x8] sm:$0xff] }
  0x7f   :  { %250 = vmatprep.mubr.bf16.mxu0 %v6268_v0  ;;  %293 = vmatprep.mubr.bf16.mxu1 %v6268_v0  ;;  %v5259_v2 = vld [vmem:[#allocation5] ss:$16 sps:$4 sm:$0xff]   ;;  %v5260_v3 = vld [vmem:[#allocation5 + $0x24] ss:$16 sps:$4 sm:$0xff]   ;;  %v5263_v7 = vld [vmem:[#allocation5 + $0xc] ss:$16 sps:$4 sm:$0xff]  }
  0x80   :  { %218 = vmatprep.subr.bf16.mxu0 %v5257_v1  ;;  %v5262_v4 = vld [vmem:[#allocation5 + $0x20] ss:$16 sps:$4 sm:$0xff]   ;;  %v5265_v8 = vld [vmem:[#allocation5 + $0x8] ss:$16 sps:$4 sm:$0xff]   ;;  %v5266_v9 = vld [vmem:[#allocation5 + $0x2c] ss:$16 sps:$4 sm:$0xff]   ;;  %261 = vmatprep.subr.bf16.mxu1 %v5263_v7 }
  0x81   :  { %v141_v5 = vld [vmem:[#allocation2] sm:$0xff]  ;;  %219 = vmatpush1.bf16.msra.mxu0 %v5259_v2  ;;  %v5268_v10 = vld [vmem:[#allocation5 + $0x28] ss:$16 sps:$4 sm:$0xff]   ;;  %vm214_vm0 = vcmask 261120   ;;  %262 = vmatpush1.bf16.msra.mxu1 %v5265_v8  ;;  %v5274_v14 = vld [vmem:[#allocation7 + $0xc] ss:$16 sps:$4 sm:$0xff]  }
  0x82   :  { %220 = vmatprep.subr.bf16.mxu0 %v5260_v3  ;;  %v143_v11 = vpack.c.bf16 %v142_v6, %v141_v5  ;;  %v5269_v12 = vld [vmem:[#allocation7] ss:$16 sps:$4 sm:$0xff]   ;;  %v5271_v13 = vld [vmem:[#allocation7 + $0x4] ss:$16 sps:$4 sm:$0xff]   ;;  %263 = vmatprep.subr.bf16.mxu1 %v5266_v9  ;;  %v5272_v16 = vld [vmem:[#allocation7 + $0x8] ss:$16 sps:$4 sm:$0xff]  }
  0x83   :  { %v5277_v15 = vld [vmem:[#allocation7 + $0x24] ss:$16 sps:$4 sm:$0xff]   ;;  %v5275_v17 = vld [vmem:[#allocation7 + $0x20] ss:$16 sps:$4 sm:$0xff]   ;;  %v5280_v18 = vld [vmem:[#allocation7 + $0x2c] ss:$16 sps:$4 sm:$0xff]  }
  0x84   :  { %v5283_v19 = vld [vmem:[#allocation7 + $0x44] ss:$16 sps:$4 sm:$0xff]   ;;  %v5278_v20 = vld [vmem:[#allocation7 + $0x28] ss:$16 sps:$4 sm:$0xff]   ;;  %v5281_v21 = vld [vmem:[#allocation7 + $0x40] ss:$16 sps:$4 sm:$0xff]  }
  0x85   :  { %221 = vmatpush1.bf16.msra.mxu0 %v5262_v4  ;;  %264 = vmatpush1.bf16.msra.mxu1 %v5268_v10  ;;  %v5286_v22 = vld [vmem:[#allocation7 + $0x4c] ss:$16 sps:$4 sm:$0xff]   ;;  %v5289_v23 = vld [vmem:[#allocation7 + $0x64] ss:$16 sps:$4 sm:$0xff]   ;;  %v5284_v24 = vld [vmem:[#allocation7 + $0x48] ss:$16 sps:$4 sm:$0xff]  }
  0x86   :  { %1106 = vmatprep.subr.bf16.mxu0 %v5271_v13  ;;  %1192 = vmatprep.subr.bf16.mxu1 %v5274_v14  ;;  %v5287_v25 = vld [vmem:[#allocation7 + $0x60] ss:$16 sps:$4 sm:$0xff]   ;;  %v5292_v26 = vld [vmem:[#allocation7 + $0x6c] ss:$16 sps:$4 sm:$0xff]   ;;  %v5295_v27 = vld [vmem:[#allocation7 + $0x84] ss:$16 sps:$4 sm:$0xff]   ;;  %v154_v14 = vlaneseq }
  0x87   :  { %v5290_v28 = vld [vmem:[#allocation7 + $0x68] ss:$16 sps:$4 sm:$0xff]   ;;  %v5293_v29 = vld [vmem:[#allocation7 + $0x80] ss:$16 sps:$4 sm:$0xff]   ;;  %v5298_v30 = vld [vmem:[#allocation7 + $0x8c] ss:$16 sps:$4 sm:$0xff]  }
  0x88   :  { %4587 = vmatmul.mubr.msk.bf16.vlgmr.msra.gmra.mrb[0].mxu0 %vm214_vm0, %v143_v11  ;;  %4588 = vmatmul.mubr.msk.bf16.vlgmr.msra.gmra.mrb[0].mxu1 %vm214_vm0, %v143_v11  ;;  %v5301_v31 = vld [vmem:[#allocation7 + $0xa4] ss:$16 sps:$4 sm:$0xff]   ;;  %v5296_v32 = vld [vmem:[#allocation7 + $0x88] ss:$16 sps:$4 sm:$0xff]   ;;  %v5299_v33 = vld [vmem:[#allocation7 + $0xa0] ss:$16 sps:$4 sm:$0xff]  }
  0x89   :  { %1107 = vmatpush1.bf16.msra.mxu0 %v5269_v12  ;;  %1193 = vmatpush1.bf16.msra.mxu1 %v5272_v16  ;;  %v5304_v34 = vld [vmem:[#allocation7 + $0xac] ss:$16 sps:$4 sm:$0xff]   ;;  %v5307_v35 = vld [vmem:[#allocation7 + $0xc4] ss:$16 sps:$4 sm:$0xff]   ;;  %v5302_v36 = vld [vmem:[#allocation7 + $0xa8] ss:$16 sps:$4 sm:$0xff]  }
  0x8a   :  { %1108 = vmatprep.subr.bf16.mxu0 %v5277_v15  ;;  %1194 = vmatprep.subr.bf16.mxu1 %v5280_v18  ;;  %v5305_v37 = vld [vmem:[#allocation7 + $0xc0] ss:$16 sps:$4 sm:$0xff]   ;;  %v5310_v38 = vld [vmem:[#allocation7 + $0xcc] ss:$16 sps:$4 sm:$0xff]   ;;  %v5313_v39 = vld [vmem:[#allocation7 + $0xe4] ss:$16 sps:$4 sm:$0xff]  }
  0x8b   :  { %v5308_v40 = vld [vmem:[#allocation7 + $0xc8] ss:$16 sps:$4 sm:$0xff]   ;;  %v5311_v41 = vld [vmem:[#allocation7 + $0xe0] ss:$16 sps:$4 sm:$0xff]   ;;  %v5316_v42 = vld [vmem:[#allocation7 + $0xec] ss:$16 sps:$4 sm:$0xff]  }
  0x8c   :  { %v5319_v43 = vld [vmem:[#allocation7 + $0x104] ss:$16 sps:$4 sm:$0xff]   ;;  %v5314_v44 = vld [vmem:[#allocation7 + $0xe8] ss:$16 sps:$4 sm:$0xff]   ;;  %v5317_v45 = vld [vmem:[#allocation7 + $0x100] ss:$16 sps:$4 sm:$0xff]  }
  0x8d   :  { %1109 = vmatpush1.bf16.msra.mxu0 %v5275_v17  ;;  %1195 = vmatpush1.bf16.msra.mxu1 %v5278_v20  ;;  %v5322_v46 = vld [vmem:[#allocation7 + $0x10c] ss:$16 sps:$4 sm:$0xff]   ;;  %v5325_v47 = vld [vmem:[#allocation7 + $0x124] ss:$16 sps:$4 sm:$0xff]   ;;  %v5320_v48 = vld [vmem:[#allocation7 + $0x108] ss:$16 sps:$4 sm:$0xff]  }
  0x8e   :  { %1110 = vmatprep.subr.bf16.mxu0 %v5283_v19  ;;  %1196 = vmatprep.subr.bf16.mxu1 %v5286_v22  ;;  %v5323_v49 = vld [vmem:[#allocation7 + $0x120] ss:$16 sps:$4 sm:$0xff]   ;;  %v5328_v50 = vld [vmem:[#allocation7 + $0x12c] ss:$16 sps:$4 sm:$0xff]   ;;  %v5331_v51 = vld [vmem:[#allocation7 + $0x144] ss:$16 sps:$4 sm:$0xff]  }
  0x8f   :  { %v5326_v52 = vld [vmem:[#allocation7 + $0x128] ss:$16 sps:$4 sm:$0xff]   ;;  %v5329_v53 = vld [vmem:[#allocation7 + $0x140] ss:$16 sps:$4 sm:$0xff]   ;;  %v5334_v54 = vld [vmem:[#allocation7 + $0x14c] ss:$16 sps:$4 sm:$0xff]  }
  0x90   :  { %v5337_v55 = vld [vmem:[#allocation7 + $0x164] ss:$16 sps:$4 sm:$0xff]   ;;  %v5332_v56 = vld [vmem:[#allocation7 + $0x148] ss:$16 sps:$4 sm:$0xff]   ;;  %v5335_v57 = vld [vmem:[#allocation7 + $0x160] ss:$16 sps:$4 sm:$0xff]  }
  0x91   :  { %1111 = vmatpush1.bf16.msra.mxu0 %v5281_v21  ;;  %1197 = vmatpush1.bf16.msra.mxu1 %v5284_v24  ;;  %v5340_v58 = vld [vmem:[#allocation7 + $0x16c] ss:$16 sps:$4 sm:$0xff]   ;;  %v5343_v59 = vld [vmem:[#allocation7 + $0x184] ss:$16 sps:$4 sm:$0xff]   ;;  %v5338_v60 = vld [vmem:[#allocation7 + $0x168] ss:$16 sps:$4 sm:$0xff]  }
  0x92   :  { %1112 = vmatprep.subr.bf16.mxu0 %v5289_v23  ;;  %1198 = vmatprep.subr.bf16.mxu1 %v5292_v26  ;;  %v5341_v61 = vld [vmem:[#allocation7 + $0x180] ss:$16 sps:$4 sm:$0xff]   ;;  %v5346_v62 = vld [vmem:[#allocation7 + $0x18c] ss:$16 sps:$4 sm:$0xff]   ;;  %v5349_v63 = vld [vmem:[#allocation7 + $0x1a4] ss:$16 sps:$4 sm:$0xff]  }
  0x93   :  { %v5344_v0 = vld [vmem:[#allocation7 + $0x188] ss:$16 sps:$4 sm:$0xff]   ;;  %v5347_v1 = vld [vmem:[#allocation7 + $0x1a0] ss:$16 sps:$4 sm:$0xff]   ;;  %v5352_v2 = vld [vmem:[#allocation7 + $0x1ac] ss:$16 sps:$4 sm:$0xff]  }
  0x94   :  { %v5350_v3 = vld [vmem:[#allocation7 + $0x1a8] ss:$16 sps:$4 sm:$0xff]   ;;  %v5355_v4 = vld [vmem:[#allocation7 + $0x1c4] ss:$16 sps:$4 sm:$0xff]   ;;  %v5358_v5 = vld [vmem:[#allocation7 + $0x1cc] ss:$16 sps:$4 sm:$0xff]  }
  0x95   :  { %1113 = vmatpush1.bf16.msra.mxu0 %v5287_v25  ;;  %1199 = vmatpush1.bf16.msra.mxu1 %v5290_v28  ;;  %v5353_v6 = vld [vmem:[#allocation7 + $0x1c0] ss:$16 sps:$4 sm:$0xff]   ;;  %v5356_v7 = vld [vmem:[#allocation7 + $0x1c8] ss:$16 sps:$4 sm:$0xff]   ;;  %v5361_v8 = vld [vmem:[#allocation7 + $0x1e4] ss:$16 sps:$4 sm:$0xff]  }
  0x96   :  { %1114 = vmatprep.subr.bf16.mxu0 %v5295_v27  ;;  %1200 = vmatprep.subr.bf16.mxu1 %v5298_v30  ;;  %v5364_v9 = vld [vmem:[#allocation7 + $0x1ec] ss:$16 sps:$4 sm:$0xff]   ;;  %v5359_v10 = vld [vmem:[#allocation7 + $0x1e0] ss:$16 sps:$4 sm:$0xff]   ;;  %v5362_v11 = vld [vmem:[#allocation7 + $0x1e8] ss:$16 sps:$4 sm:$0xff]  }
  0x97   :  { %v5367_v12 = vld [vmem:[#allocation7 + $0x204] ss:$16 sps:$4 sm:$0xff]   ;;  %v5370_v13 = vld [vmem:[#allocation7 + $0x20c] ss:$16 sps:$4 sm:$0xff]   ;;  %v155_v15 = vshrl.u32 %v154_v14, 7  ;;  %s6269_s30 = smov [#allocation14]  }
  0x98   :  { %v152_v16 = vld [vmem:[%s6530_s2] sm:$0xf]  ;;  %v5404_v14 = vld [vmem:[#allocation7 + $0x2c8] ss:$16 sps:$4 sm:$0xff]   ;;  %s4564_s26 = sshll.u32 %s6269_s30, 4  ;;  %s4565_s26 = int_to_ptr.vmem [resolvable:$true] %s4564_s26 }
  0x99   :  { %1115 = vmatpush1.bf16.msra.mxu0 %v5293_v29  ;;  %1201 = vmatpush1.bf16.msra.mxu1 %v5296_v32  ;;  %v6454_v17 = vsub.s32 0, %v155_v15  ;;  %v6456_v18 = vsub.s32 1, %v155_v15  ;;  %v6459_v20 = vsub.s32 2, %v155_v15  ;;  %v6462_v22 = vsub.s32 3, %v155_v15  ;;  %v5409_v15 = vld [vmem:[#allocation7 + $0x2e4] ss:$16 sps:$4 sm:$0xff]   ;;  %p6228_p1 = scmp.lt.s32.totalorder %s4565_s26, %s4565_s26 }
  0x9a   :  { %1116 = vmatprep.subr.bf16.mxu0 %v5301_v31  ;;  %1202 = vmatprep.subr.bf16.mxu1 %v5304_v34 }
  0x9b   :  { %v157_v19 = vrot.slane %v152_v16, %v6454_v17  ;;  %v161_v21 = vrot.slane %v152_v16, %v6456_v18  ;;  %v165_v26 = vrot.slane %v152_v16, %v6459_v20  ;;  %v169_v29 = vrot.slane %v152_v16, %v6462_v22  ;;  %v5412_v16 = vld [vmem:[#allocation7 + $0x2ec] ss:$16 sps:$4 sm:$0xff]  }
  0x9d   :  { %1117 = vmatpush1.bf16.msra.mxu0 %v5299_v33  ;;  %1203 = vmatpush1.bf16.msra.mxu1 %v5302_v36 }
  0x9e   :  { %1118 = vmatprep.subr.bf16.mxu0 %v5307_v35  ;;  %1204 = vmatprep.subr.bf16.mxu1 %v5310_v38 }
  0xa1   :  { %1119 = vmatpush1.bf16.msra.mxu0 %v5305_v37  ;;  %1205 = vmatpush1.bf16.msra.mxu1 %v5308_v40  ;;  %v5365_v40 = vld [vmem:[#allocation7 + $0x200] ss:$16 sps:$4 sm:$0xff]  }
  0xa2   :  { %1120 = vmatprep.subr.bf16.mxu0 %v5313_v39  ;;  %1206 = vmatprep.subr.bf16.mxu1 %v5316_v42 }
  0xa5   :  { %1121 = vmatpush1.bf16.msra.mxu0 %v5311_v41  ;;  %1207 = vmatpush1.bf16.msra.mxu1 %v5314_v44  ;;  %v5368_v41 = vld [vmem:[#allocation7 + $0x208] ss:$16 sps:$4 sm:$0xff]  }
  0xa6   :  { %1122 = vmatprep.subr.bf16.mxu0 %v5319_v43  ;;  %1208 = vmatprep.subr.bf16.mxu1 %v5322_v46  ;;  %v5376_v46 = vld [vmem:[#allocation7 + $0x22c] ss:$16 sps:$4 sm:$0xff]  }
  0xa9   :  { %1123 = vmatpush1.bf16.msra.mxu0 %v5317_v45  ;;  %1209 = vmatpush1.bf16.msra.mxu1 %v5320_v48  ;;  %v5373_v45 = vld [vmem:[#allocation7 + $0x224] ss:$16 sps:$4 sm:$0xff]  }
  0xaa   :  { %1124 = vmatprep.subr.bf16.mxu0 %v5325_v47  ;;  %1210 = vmatprep.subr.bf16.mxu1 %v5328_v50 }
  0xad   :  { %1125 = vmatpush1.bf16.msra.mxu0 %v5323_v49  ;;  %1211 = vmatpush1.bf16.msra.mxu1 %v5326_v52 }
  0xae   :  { %1126 = vmatprep.subr.bf16.mxu0 %v5331_v51  ;;  %1212 = vmatprep.subr.bf16.mxu1 %v5334_v54  ;;  %v5371_v54 = vld [vmem:[#allocation7 + $0x220] ss:$16 sps:$4 sm:$0xff]  }
  0xb1   :  { %1127 = vmatpush1.bf16.msra.mxu0 %v5329_v53  ;;  %1213 = vmatpush1.bf16.msra.mxu1 %v5332_v56 }
  0xb2   :  { %1128 = vmatprep.subr.bf16.mxu0 %v5337_v55  ;;  %1214 = vmatprep.subr.bf16.mxu1 %v5340_v58  ;;  %v5374_v55 = vld [vmem:[#allocation7 + $0x228] ss:$16 sps:$4 sm:$0xff]   ;;  %v5382_v58 = vld [vmem:[#allocation7 + $0x24c] ss:$16 sps:$4 sm:$0xff]  }
  0xb5   :  { %1129 = vmatpush1.bf16.msra.mxu0 %v5335_v57  ;;  %1215 = vmatpush1.bf16.msra.mxu1 %v5338_v60  ;;  %v5379_v57 = vld [vmem:[#allocation7 + $0x244] ss:$16 sps:$4 sm:$0xff]  }
  0xb6   :  { %1130 = vmatprep.subr.bf16.mxu0 %v5343_v59  ;;  %1216 = vmatprep.subr.bf16.mxu1 %v5346_v62  ;;  %v5380_v62 = vld [vmem:[#allocation7 + $0x248] ss:$16 sps:$4 sm:$0xff]  }
  0xb9   :  { %1131 = vmatpush1.bf16.msra.mxu0 %v5341_v61  ;;  %1217 = vmatpush1.bf16.msra.mxu1 %v5344_v0  ;;  %v5377_v61 = vld [vmem:[#allocation7 + $0x240] ss:$16 sps:$4 sm:$0xff]   ;;  %v5388_v0 = vld [vmem:[#allocation7 + $0x26c] ss:$16 sps:$4 sm:$0xff]  }
  0xba   :  { %1132 = vmatprep.subr.bf16.mxu0 %v5349_v63  ;;  %1218 = vmatprep.subr.bf16.mxu1 %v5352_v2  ;;  %v5385_v63 = vld [vmem:[#allocation7 + $0x264] ss:$16 sps:$4 sm:$0xff]   ;;  %v5386_v2 = vld [vmem:[#allocation7 + $0x268] ss:$16 sps:$4 sm:$0xff]  }
  0xbd   :  { %1133 = vmatpush1.bf16.msra.mxu0 %v5347_v1  ;;  %1219 = vmatpush1.bf16.msra.mxu1 %v5350_v3  ;;  %v5383_v1 = vld [vmem:[#allocation7 + $0x260] ss:$16 sps:$4 sm:$0xff]   ;;  %v5391_v3 = vld [vmem:[#allocation7 + $0x284] ss:$16 sps:$4 sm:$0xff]  }
  0xbe   :  { %1134 = vmatprep.subr.bf16.mxu0 %v5355_v4  ;;  %1220 = vmatprep.subr.bf16.mxu1 %v5358_v5  ;;  %v5394_v4 = vld [vmem:[#allocation7 + $0x28c] ss:$16 sps:$4 sm:$0xff]   ;;  %v5389_v5 = vld [vmem:[#allocation7 + $0x280] ss:$16 sps:$4 sm:$0xff]  }
  0xc1   :  { %1135 = vmatpush1.bf16.msra.mxu0 %v5353_v6  ;;  %1221 = vmatpush1.bf16.msra.mxu1 %v5356_v7  ;;  %v5392_v6 = vld [vmem:[#allocation7 + $0x288] ss:$16 sps:$4 sm:$0xff]   ;;  %v5397_v7 = vld [vmem:[#allocation7 + $0x2a4] ss:$16 sps:$4 sm:$0xff]  }
  0xc2   :  { %1136 = vmatprep.subr.bf16.mxu0 %v5361_v8  ;;  %1222 = vmatprep.subr.bf16.mxu1 %v5364_v9  ;;  %v5400_v8 = vld [vmem:[#allocation7 + $0x2ac] ss:$16 sps:$4 sm:$0xff]   ;;  %v5395_v9 = vld [vmem:[#allocation7 + $0x2a0] ss:$16 sps:$4 sm:$0xff]  }
  0xc5   :  { %1137 = vmatpush1.bf16.msra.mxu0 %v5359_v10  ;;  %1223 = vmatpush1.bf16.msra.mxu1 %v5362_v11  ;;  %v5398_v10 = vld [vmem:[#allocation7 + $0x2a8] ss:$16 sps:$4 sm:$0xff]   ;;  %v5403_v11 = vld [vmem:[#allocation7 + $0x2c4] ss:$16 sps:$4 sm:$0xff]  }
  0xc6   :  { %1149 = vmatprep.subr.bf16.mxu0 %v5367_v12  ;;  %1235 = vmatprep.subr.bf16.mxu1 %v5370_v13  ;;  %v5406_v12 = vld [vmem:[#allocation7 + $0x2cc] ss:$16 sps:$4 sm:$0xff]   ;;  %v5401_v13 = vld [vmem:[#allocation7 + $0x2c0] ss:$16 sps:$4 sm:$0xff]  }
 0x15b   :  { %v252_v23 = vpop.f32.mrb[0].mxu0  ;;  %v295_v33 = vpop.f32.mrb[0].mxu1 }
 0x15c   :  { %v253_v24 = vadd.f32 %v252_v23, %v157_v19  ;;  %v254_v25 = vpop.f32.mrb[1].mxu0  ;;  %v296_v36 = vadd.f32 %v295_v33, %v165_v26  ;;  %v297_v37 = vpop.f32.mrb[1].mxu1  ;;  %v5415_v23 = vld [vmem:[#allocation7 + $0x304] ss:$16 sps:$4 sm:$0xff]   ;;  %v5425_v33 = vld [vmem:[#allocation7 + $0x340] ss:$16 sps:$4 sm:$0xff]  }
 0x15d   :  { %v255_v27 = vadd.f32 %v254_v25, %v161_v21  ;;  %v256_v28 = vpop.f32.mrb[2].mxu0  ;;  %v298_v42 = vadd.f32 %v297_v37, %v169_v29  ;;  %v299_v43 = vpop.f32.mrb[2].mxu1  ;;  %v5413_v25 = vld [vmem:[#allocation7 + $0x300] ss:$16 sps:$4 sm:$0xff]  }
 0x15e   :  { %v257_v30 = vadd.f32 %v256_v28, %v157_v19  ;;  %v258_v31 = vpop.f32.mrb[3].mxu0  ;;  %v304_v34 = vmax.f32 %v253_v24, 0.0  ;;  %v306_v47 = vmax.f32 %v296_v36, 0.0  ;;  %v300_v48 = vadd.f32 %v299_v43, %v165_v26  ;;  %v301_v49 = vpop.f32.mrb[3].mxu1  ;;  %v5407_v19 = vld [vmem:[#allocation7 + $0x2e0] ss:$16 sps:$4 sm:$0xff]  }
 0x15f   :  { %v259_v32 = vadd.f32 %v258_v31, %v161_v21  ;;  %v305_v38 = vmax.f32 %v255_v27, 0.0  ;;  %v307_v51 = vmax.f32 %v298_v42, 0.0  ;;  %v302_v52 = vadd.f32 %v301_v49, %v169_v29  ;;  %v5410_v21 = vld [vmem:[#allocation7 + $0x2e8] ss:$16 sps:$4 sm:$0xff]   ;;  %v5418_v24 = vld [vmem:[#allocation7 + $0x30c] ss:$16 sps:$4 sm:$0xff]  }
 0x160   :  { %v308_v35 = vmax.f32 %v257_v30, 0.0  ;;  %v310_v53 = vmax.f32 %v300_v48, 0.0  ;;  %v5416_v26 = vld [vmem:[#allocation7 + $0x308] ss:$16 sps:$4 sm:$0xff]   ;;  %v5421_v27 = vld [vmem:[#allocation7 + $0x324] ss:$16 sps:$4 sm:$0xff]  }
 0x161   :  { %v309_v39 = vmax.f32 %v259_v32, 0.0  ;;  %v311_v56 = vmax.f32 %v302_v52, 0.0  ;;  %v5424_v28 = vld [vmem:[#allocation7 + $0x32c] ss:$16 sps:$4 sm:$0xff]   ;;  %v5419_v29 = vld [vmem:[#allocation7 + $0x320] ss:$16 sps:$4 sm:$0xff]  }
 0x162   :  { %v312_v44 = vpack.c.bf16 %v308_v35, %v304_v34  ;;  %v6466_v59 = vpack.c.bf16 %v310_v53, %v306_v47  ;;  %v5422_v30 = vld [vmem:[#allocation7 + $0x328] ss:$16 sps:$4 sm:$0xff]   ;;  %v5427_v31 = vld [vmem:[#allocation7 + $0x344] ss:$16 sps:$4 sm:$0xff]   ;;  %v5430_v32 = vld [vmem:[#allocation7 + $0x34c] ss:$16 sps:$4 sm:$0xff]  }
 0x163   :  { %v313_v50 = vpack.c.bf16 %v309_v39, %v305_v38  ;;  %v315_v60 = vpack.c.bf16 %v311_v56, %v307_v51  ;;  %v5428_v34 = vld [vmem:[#allocation7 + $0x348] ss:$16 sps:$4 sm:$0xff]   ;;  %v5433_v35 = vld [vmem:[#allocation7 + $0x364] ss:$16 sps:$4 sm:$0xff]   ;;  %v5436_v36 = vld [vmem:[#allocation7 + $0x36c] ss:$16 sps:$4 sm:$0xff]  }
 0x164   :  { %v5431_v37 = vld [vmem:[#allocation7 + $0x360] ss:$16 sps:$4 sm:$0xff]   ;;  %v5434_v38 = vld [vmem:[#allocation7 + $0x368] ss:$16 sps:$4 sm:$0xff]   ;;  %v5439_v39 = vld [vmem:[#allocation7 + $0x384] ss:$16 sps:$4 sm:$0xff]  }
 0x165   :  { %1138 = vmatprep.mubr.bf16.mxu0 %v313_v50  ;;  %1224 = vmatprep.mubr.bf16.mxu1 %v313_v50  ;;  %v5440_v42 = vld [vmem:[#allocation7 + $0x388] ss:$16 sps:$4 sm:$0xff]   ;;  %v5445_v43 = vld [vmem:[#allocation7 + $0x3a4] ss:$16 sps:$4 sm:$0xff]   ;;  %v5454_v48 = vld [vmem:[#allocation7 + $0x3cc] ss:$16 sps:$4 sm:$0xff]  }
 0x166   :  { %1139 = vmatmul.mubr.bf16.vlgmr.msra.gmra.mrb[4].mxu0 %v312_v44  ;;  %1225 = vmatmul.mubr.bf16.vlgmr.msra.gmra.mrb[4].mxu1 %v312_v44  ;;  %v5448_v44 = vld [vmem:[#allocation7 + $0x3ac] ss:$16 sps:$4 sm:$0xff]   ;;  %v5451_v47 = vld [vmem:[#allocation7 + $0x3c4] ss:$16 sps:$4 sm:$0xff]   ;;  %v5449_v49 = vld [vmem:[#allocation7 + $0x3c0] ss:$16 sps:$4 sm:$0xff]  }
 0x167   :  { %1150 = vmatpush1.bf16.msra.mxu0 %v5365_v40  ;;  %1236 = vmatpush1.bf16.msra.mxu1 %v5368_v41  ;;  %v5442_v40 = vld [vmem:[#allocation7 + $0x38c] ss:$16 sps:$4 sm:$0xff]   ;;  %v5437_v41 = vld [vmem:[#allocation7 + $0x380] ss:$16 sps:$4 sm:$0xff]   ;;  %v5452_v50 = vld [vmem:[#allocation7 + $0x3c8] ss:$16 sps:$4 sm:$0xff]  }
 0x168   :  { %1151 = vmatprep.subr.bf16.mxu0 %v5373_v45  ;;  %1237 = vmatprep.subr.bf16.mxu1 %v5376_v46  ;;  %v5443_v45 = vld [vmem:[#allocation7 + $0x3a0] ss:$16 sps:$4 sm:$0xff]   ;;  %v5446_v46 = vld [vmem:[#allocation7 + $0x3a8] ss:$16 sps:$4 sm:$0xff]   ;;  %v5457_v51 = vld [vmem:[#allocation7 + $0x3e4] ss:$16 sps:$4 sm:$0xff]  }
 0x169   :  { %1181 = vmatprep.mubr.bf16.mxu0 %v315_v60  ;;  %1267 = vmatprep.mubr.bf16.mxu1 %v315_v60  ;;  %v5460_v52 = vld [vmem:[#allocation7 + $0x3ec] ss:$16 sps:$4 sm:$0xff]   ;;  %v5455_v53 = vld [vmem:[#allocation7 + $0x3e0] ss:$16 sps:$4 sm:$0xff]   ;;  %v5469_v60 = vld [vmem:[#allocation8 + $0x24] ss:$16 sps:$4 sm:$0xff]  }
 0x16a   :  { %v5466_v56 = vld [vmem:[#allocation8 + $0xc] ss:$16 sps:$4 sm:$0xff]  }
 0x16b   :  { %1152 = vmatpush1.bf16.msra.mxu0 %v5371_v54  ;;  %1238 = vmatpush1.bf16.msra.mxu1 %v5374_v55  ;;  %v5458_v54 = vld [vmem:[#allocation7 + $0x3e8] ss:$16 sps:$4 sm:$0xff]   ;;  %v5463_v55 = vld [vmem:[#allocation8 + $0x4] ss:$16 sps:$4 sm:$0xff]  }
 0x16c   :  { %1153 = vmatprep.subr.bf16.mxu0 %v5379_v57  ;;  %1239 = vmatprep.subr.bf16.mxu1 %v5382_v58  ;;  %v5461_v57 = vld [vmem:[#allocation8] ss:$16 sps:$4 sm:$0xff]   ;;  %v5464_v58 = vld [vmem:[#allocation8 + $0x8] ss:$16 sps:$4 sm:$0xff]  }
 0x16f   :  { %1154 = vmatpush1.bf16.msra.mxu0 %v5377_v61  ;;  %1240 = vmatpush1.bf16.msra.mxu1 %v5380_v62  ;;  %v5472_v61 = vld [vmem:[#allocation8 + $0x2c] ss:$16 sps:$4 sm:$0xff]   ;;  %v5467_v62 = vld [vmem:[#allocation8 + $0x20] ss:$16 sps:$4 sm:$0xff]  }
 0x170   :  { %1155 = vmatprep.subr.bf16.mxu0 %v5385_v63  ;;  %1241 = vmatprep.subr.bf16.mxu1 %v5388_v0  ;;  %v5470_v63 = vld [vmem:[#allocation8 + $0x28] ss:$16 sps:$4 sm:$0xff]   ;;  %v5475_v0 = vld [vmem:[#allocation8 + $0x44] ss:$16 sps:$4 sm:$0xff]  }
 0x173   :  { %1156 = vmatpush1.bf16.msra.mxu0 %v5383_v1  ;;  %1242 = vmatpush1.bf16.msra.mxu1 %v5386_v2  ;;  %v5478_v1 = vld [vmem:[#allocation8 + $0x4c] ss:$16 sps:$4 sm:$0xff]   ;;  %v5473_v2 = vld [vmem:[#allocation8 + $0x40] ss:$16 sps:$4 sm:$0xff]  }
 0x174   :  { %1157 = vmatprep.subr.bf16.mxu0 %v5391_v3  ;;  %1243 = vmatprep.subr.bf16.mxu1 %v5394_v4  ;;  %v5476_v3 = vld [vmem:[#allocation8 + $0x48] ss:$16 sps:$4 sm:$0xff]   ;;  %v5481_v4 = vld [vmem:[#allocation8 + $0x64] ss:$16 sps:$4 sm:$0xff]  }
 0x177   :  { %1158 = vmatpush1.bf16.msra.mxu0 %v5389_v5  ;;  %1244 = vmatpush1.bf16.msra.mxu1 %v5392_v6  ;;  %v5484_v5 = vld [vmem:[#allocation8 + $0x6c] ss:$16 sps:$4 sm:$0xff]   ;;  %v5479_v6 = vld [vmem:[#allocation8 + $0x60] ss:$16 sps:$4 sm:$0xff]  }
 0x178   :  { %1159 = vmatprep.subr.bf16.mxu0 %v5397_v7  ;;  %1245 = vmatprep.subr.bf16.mxu1 %v5400_v8  ;;  %v5487_v7 = vld [vmem:[#allocation8 + $0x84] ss:$16 sps:$4 sm:$0xff]   ;;  %v5490_v8 = vld [vmem:[#allocation8 + $0x8c] ss:$16 sps:$4 sm:$0xff]  }
 0x17b   :  { %1160 = vmatpush1.bf16.msra.mxu0 %v5395_v9  ;;  %1246 = vmatpush1.bf16.msra.mxu1 %v5398_v10  ;;  %v5485_v9 = vld [vmem:[#allocation8 + $0x80] ss:$16 sps:$4 sm:$0xff]   ;;  %v5488_v10 = vld [vmem:[#allocation8 + $0x88] ss:$16 sps:$4 sm:$0xff]  }
 0x17c   :  { %1161 = vmatprep.subr.bf16.mxu0 %v5403_v11  ;;  %1247 = vmatprep.subr.bf16.mxu1 %v5406_v12  ;;  %v5493_v11 = vld [vmem:[#allocation8 + $0xa4] ss:$16 sps:$4 sm:$0xff]   ;;  %v5496_v12 = vld [vmem:[#allocation8 + $0xac] ss:$16 sps:$4 sm:$0xff]  }
 0x17f   :  { %1162 = vmatpush1.bf16.msra.mxu0 %v5401_v13  ;;  %1248 = vmatpush1.bf16.msra.mxu1 %v5404_v14  ;;  %v5491_v13 = vld [vmem:[#allocation8 + $0xa0] ss:$16 sps:$4 sm:$0xff]   ;;  %v5494_v14 = vld [vmem:[#allocation8 + $0xa8] ss:$16 sps:$4 sm:$0xff]  }
 0x180   :  { %1163 = vmatprep.subr.bf16.mxu0 %v5409_v15  ;;  %1249 = vmatprep.subr.bf16.mxu1 %v5412_v16  ;;  %v5499_v15 = vld [vmem:[#allocation8 + $0xc4] ss:$16 sps:$4 sm:$0xff]   ;;  %v5502_v16 = vld [vmem:[#allocation8 + $0xcc] ss:$16 sps:$4 sm:$0xff]  }
 0x183   :  { %1164 = vmatpush1.bf16.msra.mxu0 %v5407_v19  ;;  %1250 = vmatpush1.bf16.msra.mxu1 %v5410_v21  ;;  %v5497_v19 = vld [vmem:[#allocation8 + $0xc0] ss:$16 sps:$4 sm:$0xff]   ;;  %v5500_v21 = vld [vmem:[#allocation8 + $0xc8] ss:$16 sps:$4 sm:$0xff]  }
 0x184   :  { %1165 = vmatprep.subr.bf16.mxu0 %v5415_v23  ;;  %1251 = vmatprep.subr.bf16.mxu1 %v5418_v24  ;;  %v5505_v23 = vld [vmem:[#allocation8 + $0xe4] ss:$16 sps:$4 sm:$0xff]   ;;  %v5508_v24 = vld [vmem:[#allocation8 + $0xec] ss:$16 sps:$4 sm:$0xff]  }
 0x187   :  { %1166 = vmatpush1.bf16.msra.mxu0 %v5413_v25  ;;  %1252 = vmatpush1.bf16.msra.mxu1 %v5416_v26  ;;  %v5503_v25 = vld [vmem:[#allocation8 + $0xe0] ss:$16 sps:$4 sm:$0xff]   ;;  %v5506_v26 = vld [vmem:[#allocation8 + $0xe8] ss:$16 sps:$4 sm:$0xff]  }
 0x188   :  { %1167 = vmatprep.subr.bf16.mxu0 %v5421_v27  ;;  %1253 = vmatprep.subr.bf16.mxu1 %v5424_v28  ;;  %v5511_v27 = vld [vmem:[#allocation8 + $0x104] ss:$16 sps:$4 sm:$0xff]   ;;  %v5514_v28 = vld [vmem:[#allocation8 + $0x10c] ss:$16 sps:$4 sm:$0xff]  }
 0x18b   :  { %1168 = vmatpush1.bf16.msra.mxu0 %v5419_v29  ;;  %1254 = vmatpush1.bf16.msra.mxu1 %v5422_v30  ;;  %v5509_v29 = vld [vmem:[#allocation8 + $0x100] ss:$16 sps:$4 sm:$0xff]   ;;  %v5512_v30 = vld [vmem:[#allocation8 + $0x108] ss:$16 sps:$4 sm:$0xff]  }
 0x18c   :  { %1169 = vmatprep.subr.bf16.mxu0 %v5427_v31  ;;  %1255 = vmatprep.subr.bf16.mxu1 %v5430_v32  ;;  %v5517_v31 = vld [vmem:[#allocation8 + $0x124] ss:$16 sps:$4 sm:$0xff]   ;;  %v5520_v32 = vld [vmem:[#allocation8 + $0x12c] ss:$16 sps:$4 sm:$0xff]  }
 0x18f   :  { %1170 = vmatpush1.bf16.msra.mxu0 %v5425_v33  ;;  %1256 = vmatpush1.bf16.msra.mxu1 %v5428_v34  ;;  %v5515_v33 = vld [vmem:[#allocation8 + $0x120] ss:$16 sps:$4 sm:$0xff]   ;;  %v5518_v34 = vld [vmem:[#allocation8 + $0x128] ss:$16 sps:$4 sm:$0xff]  }
 0x190   :  { %1171 = vmatprep.subr.bf16.mxu0 %v5433_v35  ;;  %1257 = vmatprep.subr.bf16.mxu1 %v5436_v36  ;;  %v5523_v35 = vld [vmem:[#allocation8 + $0x144] ss:$16 sps:$4 sm:$0xff]   ;;  %v5526_v36 = vld [vmem:[#allocation8 + $0x14c] ss:$16 sps:$4 sm:$0xff]  }
 0x193   :  { %1172 = vmatpush1.bf16.msra.mxu0 %v5431_v37  ;;  %1258 = vmatpush1.bf16.msra.mxu1 %v5434_v38  ;;  %v5521_v37 = vld [vmem:[#allocation8 + $0x140] ss:$16 sps:$4 sm:$0xff]   ;;  %v5524_v38 = vld [vmem:[#allocation8 + $0x148] ss:$16 sps:$4 sm:$0xff]  }
 0x194   :  { %1173 = vmatprep.subr.bf16.mxu0 %v5439_v39  ;;  %1259 = vmatprep.subr.bf16.mxu1 %v5442_v40  ;;  %v5529_v39 = vld [vmem:[#allocation8 + $0x164] ss:$16 sps:$4 sm:$0xff]   ;;  %v5532_v40 = vld [vmem:[#allocation8 + $0x16c] ss:$16 sps:$4 sm:$0xff]  }
 0x197   :  { %1174 = vmatpush1.bf16.msra.mxu0 %v5437_v41  ;;  %1260 = vmatpush1.bf16.msra.mxu1 %v5440_v42  ;;  %v5527_v41 = vld [vmem:[#allocation8 + $0x160] ss:$16 sps:$4 sm:$0xff]   ;;  %v5530_v42 = vld [vmem:[#allocation8 + $0x168] ss:$16 sps:$4 sm:$0xff]  }
 0x198   :  { %1175 = vmatprep.subr.bf16.mxu0 %v5445_v43  ;;  %1261 = vmatprep.subr.bf16.mxu1 %v5448_v44  ;;  %v5535_v43 = vld [vmem:[#allocation8 + $0x184] ss:$16 sps:$4 sm:$0xff]   ;;  %v5538_v44 = vld [vmem:[#allocation8 + $0x18c] ss:$16 sps:$4 sm:$0xff]  }
 0x19b   :  { %1176 = vmatpush1.bf16.msra.mxu0 %v5443_v45  ;;  %1262 = vmatpush1.bf16.msra.mxu1 %v5446_v46  ;;  %v5533_v45 = vld [vmem:[#allocation8 + $0x180] ss:$16 sps:$4 sm:$0xff]   ;;  %v5536_v46 = vld [vmem:[#allocation8 + $0x188] ss:$16 sps:$4 sm:$0xff]  }
 0x19c   :  { %1177 = vmatprep.subr.bf16.mxu0 %v5451_v47  ;;  %1263 = vmatprep.subr.bf16.mxu1 %v5454_v48  ;;  %v5541_v47 = vld [vmem:[#allocation8 + $0x1a4] ss:$16 sps:$4 sm:$0xff]   ;;  %v5544_v48 = vld [vmem:[#allocation8 + $0x1ac] ss:$16 sps:$4 sm:$0xff]  }
 0x19f   :  { %1178 = vmatpush1.bf16.msra.mxu0 %v5449_v49  ;;  %1264 = vmatpush1.bf16.msra.mxu1 %v5452_v50  ;;  %v5539_v49 = vld [vmem:[#allocation8 + $0x1a0] ss:$16 sps:$4 sm:$0xff]   ;;  %v5542_v50 = vld [vmem:[#allocation8 + $0x1a8] ss:$16 sps:$4 sm:$0xff]  }
 0x1a0   :  { %1179 = vmatprep.subr.bf16.mxu0 %v5457_v51  ;;  %1265 = vmatprep.subr.bf16.mxu1 %v5460_v52  ;;  %v5547_v51 = vld [vmem:[#allocation8 + $0x1c4] ss:$16 sps:$4 sm:$0xff]   ;;  %v5550_v52 = vld [vmem:[#allocation8 + $0x1cc] ss:$16 sps:$4 sm:$0xff]  }
 0x1a3   :  { %1180 = vmatpush1.bf16.msra.mxu0 %v5455_v53  ;;  %1266 = vmatpush1.bf16.msra.mxu1 %v5458_v54  ;;  %v5545_v53 = vld [vmem:[#allocation8 + $0x1c0] ss:$16 sps:$4 sm:$0xff]   ;;  %v5548_v54 = vld [vmem:[#allocation8 + $0x1c8] ss:$16 sps:$4 sm:$0xff]  }
 0x1a4   :  { %2080 = vmatprep.subr.bf16.mxu0 %v5463_v55  ;;  %2166 = vmatprep.subr.bf16.mxu1 %v5466_v56  ;;  %v5553_v55 = vld [vmem:[#allocation8 + $0x1e4] ss:$16 sps:$4 sm:$0xff]   ;;  %v5556_v56 = vld [vmem:[#allocation8 + $0x1ec] ss:$16 sps:$4 sm:$0xff]  }
 0x1a6   :  { %1182 = vmatmul.mubr.bf16.vlgmr.msra.gmra.mrb[4].mxu0 %v6466_v59  ;;  %1268 = vmatmul.mubr.bf16.vlgmr.msra.gmra.mrb[4].mxu1 %v6466_v59  ;;  %v5482_v59 = vld [vmem:[#allocation8 + $0x68] ss:$16 sps:$4 sm:$0xff]  }
 0x1a7   :  { %2081 = vmatpush1.bf16.msra.mxu0 %v5461_v57  ;;  %2167 = vmatpush1.bf16.msra.mxu1 %v5464_v58  ;;  %v5551_v57 = vld [vmem:[#allocation8 + $0x1e0] ss:$16 sps:$4 sm:$0xff]   ;;  %v5554_v58 = vld [vmem:[#allocation8 + $0x1e8] ss:$16 sps:$4 sm:$0xff]  }
 0x1a8   :  { %2082 = vmatprep.subr.bf16.mxu0 %v5469_v60  ;;  %2168 = vmatprep.subr.bf16.mxu1 %v5472_v61  ;;  %v5559_v60 = vld [vmem:[#allocation8 + $0x204] ss:$16 sps:$4 sm:$0xff]   ;;  %v5562_v61 = vld [vmem:[#allocation8 + $0x20c] ss:$16 sps:$4 sm:$0xff]  }
 0x1ab   :  { %2083 = vmatpush1.bf16.msra.mxu0 %v5467_v62  ;;  %2169 = vmatpush1.bf16.msra.mxu1 %v5470_v63  ;;  %v444_v62 = vld [vmem:[%s6532_s4] sm:$0xf] }
 0x1ac   :  { %2084 = vmatprep.subr.bf16.mxu0 %v5475_v0  ;;  %2170 = vmatprep.subr.bf16.mxu1 %v5478_v1  ;;  %v449_v63 = vrot.slane %v444_v62, %v6454_v17  ;;  %v457_v0 = vrot.slane %v444_v62, %v6459_v20  ;;  %v453_v1 = vrot.slane %v444_v62, %v6456_v18 }
 0x1af   :  { %2085 = vmatpush1.bf16.msra.mxu0 %v5473_v2  ;;  %2171 = vmatpush1.bf16.msra.mxu1 %v5476_v3  ;;  %v461_v2 = vrot.slane %v444_v62, %v6462_v22  ;;  %v5604_v62 = vld [vmem:[#allocation8 + $0x2ec] ss:$16 sps:$4 sm:$0xff]  }
 0x1b0   :  { %2086 = vmatprep.subr.bf16.mxu0 %v5481_v4  ;;  %2172 = vmatprep.subr.bf16.mxu1 %v5484_v5 }
 0x1b3   :  { %2087 = vmatpush1.bf16.msra.mxu0 %v5479_v6  ;;  %2173 = vmatpush1.bf16.msra.mxu1 %v5482_v59 }
 0x1b4   :  { %2088 = vmatprep.subr.bf16.mxu0 %v5487_v7  ;;  %2174 = vmatprep.subr.bf16.mxu1 %v5490_v8 }
 0x1b7   :  { %2089 = vmatpush1.bf16.msra.mxu0 %v5485_v9  ;;  %2175 = vmatpush1.bf16.msra.mxu1 %v5488_v10 }
 0x1b8   :  { %2090 = vmatprep.subr.bf16.mxu0 %v5493_v11  ;;  %2176 = vmatprep.subr.bf16.mxu1 %v5496_v12 }
 0x1bb   :  { %2091 = vmatpush1.bf16.msra.mxu0 %v5491_v13  ;;  %2177 = vmatpush1.bf16.msra.mxu1 %v5494_v14 }
 0x1bc   :  { %2092 = vmatprep.subr.bf16.mxu0 %v5499_v15  ;;  %2178 = vmatprep.subr.bf16.mxu1 %v5502_v16 }
 0x1bf   :  { %2093 = vmatpush1.bf16.msra.mxu0 %v5497_v19  ;;  %2179 = vmatpush1.bf16.msra.mxu1 %v5500_v21 }
 0x1c0   :  { %2094 = vmatprep.subr.bf16.mxu0 %v5505_v23  ;;  %2180 = vmatprep.subr.bf16.mxu1 %v5508_v24 }
 0x1c3   :  { %2095 = vmatpush1.bf16.msra.mxu0 %v5503_v25  ;;  %2181 = vmatpush1.bf16.msra.mxu1 %v5506_v26 }
 0x1c4   :  { %2096 = vmatprep.subr.bf16.mxu0 %v5511_v27  ;;  %2182 = vmatprep.subr.bf16.mxu1 %v5514_v28 }
 0x1c7   :  { %2097 = vmatpush1.bf16.msra.mxu0 %v5509_v29  ;;  %2183 = vmatpush1.bf16.msra.mxu1 %v5512_v30 }
 0x1c8   :  { %2098 = vmatprep.subr.bf16.mxu0 %v5517_v31  ;;  %2184 = vmatprep.subr.bf16.mxu1 %v5520_v32 }
 0x1cb   :  { %2099 = vmatpush1.bf16.msra.mxu0 %v5515_v33  ;;  %2185 = vmatpush1.bf16.msra.mxu1 %v5518_v34  ;;  %v5557_v34 = vld [vmem:[#allocation8 + $0x200] ss:$16 sps:$4 sm:$0xff]  }
 0x1cc   :  { %2100 = vmatprep.subr.bf16.mxu0 %v5523_v35  ;;  %2186 = vmatprep.subr.bf16.mxu1 %v5526_v36  ;;  %v5560_v35 = vld [vmem:[#allocation8 + $0x208] ss:$16 sps:$4 sm:$0xff]   ;;  %v5565_v36 = vld [vmem:[#allocation8 + $0x224] ss:$16 sps:$4 sm:$0xff]  }
 0x1cf   :  { %2101 = vmatpush1.bf16.msra.mxu0 %v5521_v37  ;;  %2187 = vmatpush1.bf16.msra.mxu1 %v5524_v38  ;;  %v5568_v37 = vld [vmem:[#allocation8 + $0x22c] ss:$16 sps:$4 sm:$0xff]   ;;  %v5563_v38 = vld [vmem:[#allocation8 + $0x220] ss:$16 sps:$4 sm:$0xff]  }
 0x1d0   :  { %2102 = vmatprep.subr.bf16.mxu0 %v5529_v39  ;;  %2188 = vmatprep.subr.bf16.mxu1 %v5532_v40  ;;  %v5566_v39 = vld [vmem:[#allocation8 + $0x228] ss:$16 sps:$4 sm:$0xff]   ;;  %v5571_v40 = vld [vmem:[#allocation8 + $0x244] ss:$16 sps:$4 sm:$0xff]  }
 0x1d3   :  { %2103 = vmatpush1.bf16.msra.mxu0 %v5527_v41  ;;  %2189 = vmatpush1.bf16.msra.mxu1 %v5530_v42  ;;  %v5574_v41 = vld [vmem:[#allocation8 + $0x24c] ss:$16 sps:$4 sm:$0xff]   ;;  %v5569_v42 = vld [vmem:[#allocation8 + $0x240] ss:$16 sps:$4 sm:$0xff]  }
 0x1d4   :  { %2104 = vmatprep.subr.bf16.mxu0 %v5535_v43  ;;  %2190 = vmatprep.subr.bf16.mxu1 %v5538_v44  ;;  %v5572_v43 = vld [vmem:[#allocation8 + $0x248] ss:$16 sps:$4 sm:$0xff]   ;;  %v5577_v44 = vld [vmem:[#allocation8 + $0x264] ss:$16 sps:$4 sm:$0xff]  }
 0x1d7   :  { %2105 = vmatpush1.bf16.msra.mxu0 %v5533_v45  ;;  %2191 = vmatpush1.bf16.msra.mxu1 %v5536_v46  ;;  %v5580_v45 = vld [vmem:[#allocation8 + $0x26c] ss:$16 sps:$4 sm:$0xff]   ;;  %v5575_v46 = vld [vmem:[#allocation8 + $0x260] ss:$16 sps:$4 sm:$0xff]  }
 0x1d8   :  { %2106 = vmatprep.subr.bf16.mxu0 %v5541_v47  ;;  %2192 = vmatprep.subr.bf16.mxu1 %v5544_v48  ;;  %v5578_v47 = vld [vmem:[#allocation8 + $0x268] ss:$16 sps:$4 sm:$0xff]   ;;  %v5583_v48 = vld [vmem:[#allocation8 + $0x284] ss:$16 sps:$4 sm:$0xff]  }
 0x1db   :  { %2107 = vmatpush1.bf16.msra.mxu0 %v5539_v49  ;;  %2193 = vmatpush1.bf16.msra.mxu1 %v5542_v50  ;;  %v5586_v49 = vld [vmem:[#allocation8 + $0x28c] ss:$16 sps:$4 sm:$0xff]   ;;  %v5581_v50 = vld [vmem:[#allocation8 + $0x280] ss:$16 sps:$4 sm:$0xff]  }
 0x1dc   :  { %2108 = vmatprep.subr.bf16.mxu0 %v5547_v51  ;;  %2194 = vmatprep.subr.bf16.mxu1 %v5550_v52  ;;  %v5584_v51 = vld [vmem:[#allocation8 + $0x288] ss:$16 sps:$4 sm:$0xff]   ;;  %v5589_v52 = vld [vmem:[#allocation8 + $0x2a4] ss:$16 sps:$4 sm:$0xff]  }
 0x1df   :  { %2109 = vmatpush1.bf16.msra.mxu0 %v5545_v53  ;;  %2195 = vmatpush1.bf16.msra.mxu1 %v5548_v54  ;;  %v5592_v53 = vld [vmem:[#allocation8 + $0x2ac] ss:$16 sps:$4 sm:$0xff]   ;;  %v5587_v54 = vld [vmem:[#allocation8 + $0x2a0] ss:$16 sps:$4 sm:$0xff]  }
 0x1e0   :  { %2110 = vmatprep.subr.bf16.mxu0 %v5553_v55  ;;  %2196 = vmatprep.subr.bf16.mxu1 %v5556_v56  ;;  %v5590_v55 = vld [vmem:[#allocation8 + $0x2a8] ss:$16 sps:$4 sm:$0xff]   ;;  %v5595_v56 = vld [vmem:[#allocation8 + $0x2c4] ss:$16 sps:$4 sm:$0xff]  }
 0x1e3   :  { %2111 = vmatpush1.bf16.msra.mxu0 %v5551_v57  ;;  %2197 = vmatpush1.bf16.msra.mxu1 %v5554_v58  ;;  %v5598_v57 = vld [vmem:[#allocation8 + $0x2cc] ss:$16 sps:$4 sm:$0xff]   ;;  %v5593_v58 = vld [vmem:[#allocation8 + $0x2c0] ss:$16 sps:$4 sm:$0xff]  }
 0x1e4   :  { %2123 = vmatprep.subr.bf16.mxu0 %v5559_v60  ;;  %2209 = vmatprep.subr.bf16.mxu1 %v5562_v61  ;;  %v5596_v60 = vld [vmem:[#allocation8 + $0x2c8] ss:$16 sps:$4 sm:$0xff]   ;;  %v5601_v61 = vld [vmem:[#allocation8 + $0x2e4] ss:$16 sps:$4 sm:$0xff]  }
 0x279   :  { %v1183_v3 = vpop.f32.mrb[4].mxu0  ;;  %v1269_v4 = vpop.f32.mrb[4].mxu1 }
 0x27a   :  { %v5178_v5 = vadd.f32 %v1183_v3, %v449_v63  ;;  %v5182_v6 = vadd.f32 %v1269_v4, %v457_v0  ;;  %v1185_v59 = vpop.f32.mrb[5].mxu0  ;;  %v1271_v7 = vpop.f32.mrb[5].mxu1  ;;  %v5605_v3 = vld [vmem:[#allocation8 + $0x300] ss:$16 sps:$4 sm:$0xff]   ;;  %v5608_v4 = vld [vmem:[#allocation8 + $0x308] ss:$16 sps:$4 sm:$0xff]  }
 0x27b   :  { %v5179_v8 = vadd.f32 %v1185_v59, %v453_v1  ;;  %v5183_v9 = vadd.f32 %v1271_v7, %v461_v2  ;;  %v1187_v10 = vpop.f32.mrb[6].mxu0  ;;  %v1273_v11 = vpop.f32.mrb[6].mxu1  ;;  %v5611_v59 = vld [vmem:[#allocation8 + $0x320] ss:$16 sps:$4 sm:$0xff]   ;;  %v5614_v7 = vld [vmem:[#allocation8 + $0x328] ss:$16 sps:$4 sm:$0xff]  }
 0x27c   :  { %v5180_v12 = vadd.f32 %v1187_v10, %v449_v63  ;;  %v5184_v13 = vadd.f32 %v1273_v11, %v457_v0  ;;  %v1189_v14 = vpop.f32.mrb[7].mxu0  ;;  %v1275_v15 = vpop.f32.mrb[7].mxu1  ;;  %v1278_v21 = vmax.f32 %v5178_v5, 0.0  ;;  %v1280_v23 = vmax.f32 %v5182_v6, 0.0  ;;  %v5599_v63 = vld [vmem:[#allocation8 + $0x2e0] ss:$16 sps:$4 sm:$0xff]  }
 0x27d   :  { %v5181_v16 = vadd.f32 %v1189_v14, %v453_v1  ;;  %v5185_v19 = vadd.f32 %v1275_v15, %v461_v2  ;;  %v1279_v26 = vmax.f32 %v5179_v8, 0.0  ;;  %v1281_v27 = vmax.f32 %v5183_v9, 0.0  ;;  %v5602_v0 = vld [vmem:[#allocation8 + $0x2e8] ss:$16 sps:$4 sm:$0xff]   ;;  %v5607_v1 = vld [vmem:[#allocation8 + $0x304] ss:$16 sps:$4 sm:$0xff]  }
 0x27e   :  { %v1282_v24 = vmax.f32 %v5180_v12, 0.0  ;;  %v1284_v25 = vmax.f32 %v5184_v13, 0.0  ;;  %v5610_v2 = vld [vmem:[#allocation8 + $0x30c] ss:$16 sps:$4 sm:$0xff]   ;;  %v5613_v5 = vld [vmem:[#allocation8 + $0x324] ss:$16 sps:$4 sm:$0xff]  }
 0x27f   :  { %v1283_v28 = vmax.f32 %v5181_v16, 0.0  ;;  %v1285_v29 = vmax.f32 %v5185_v19, 0.0  ;;  %v5616_v6 = vld [vmem:[#allocation8 + $0x32c] ss:$16 sps:$4 sm:$0xff]   ;;  %v5619_v8 = vld [vmem:[#allocation8 + $0x344] ss:$16 sps:$4 sm:$0xff]  }
 0x280   :  { %v1286_v30 = vpack.c.bf16 %v1282_v24, %v1278_v21  ;;  %v6477_v31 = vpack.c.bf16 %v1284_v25, %v1280_v23  ;;  %v5622_v9 = vld [vmem:[#allocation8 + $0x34c] ss:$16 sps:$4 sm:$0xff]   ;;  %v5617_v10 = vld [vmem:[#allocation8 + $0x340] ss:$16 sps:$4 sm:$0xff]   ;;  %v5620_v11 = vld [vmem:[#allocation8 + $0x348] ss:$16 sps:$4 sm:$0xff]  }
 0x281   :  { %v1287_v32 = vpack.c.bf16 %v1283_v28, %v1279_v26  ;;  %v1289_v33 = vpack.c.bf16 %v1285_v29, %v1281_v27  ;;  %v5625_v12 = vld [vmem:[#allocation8 + $0x364] ss:$16 sps:$4 sm:$0xff]   ;;  %v5628_v13 = vld [vmem:[#allocation8 + $0x36c] ss:$16 sps:$4 sm:$0xff]   ;;  %v5623_v14 = vld [vmem:[#allocation8 + $0x360] ss:$16 sps:$4 sm:$0xff]  }
 0x282   :  { %v5626_v15 = vld [vmem:[#allocation8 + $0x368] ss:$16 sps:$4 sm:$0xff]   ;;  %v5631_v16 = vld [vmem:[#allocation8 + $0x384] ss:$16 sps:$4 sm:$0xff]   ;;  %v5634_v19 = vld [vmem:[#allocation8 + $0x38c] ss:$16 sps:$4 sm:$0xff]  }
 0x283   :  { %2112 = vmatprep.mubr.bf16.mxu0 %v1287_v32  ;;  %2198 = vmatprep.mubr.bf16.mxu1 %v1287_v32  ;;  %v5629_v21 = vld [vmem:[#allocation8 + $0x380] ss:$16 sps:$4 sm:$0xff]   ;;  %v5632_v23 = vld [vmem:[#allocation8 + $0x388] ss:$16 sps:$4 sm:$0xff]   ;;  %v5637_v24 = vld [vmem:[#allocation8 + $0x3a4] ss:$16 sps:$4 sm:$0xff]  }
 0x284   :  { %2113 = vmatmul.mubr.bf16.vlgmr.msra.gmra.mrb[8].mxu0 %v1286_v30  ;;  %2199 = vmatmul.mubr.bf16.vlgmr.msra.gmra.mrb[8].mxu1 %v1286_v30  ;;  %v5640_v25 = vld [vmem:[#allocation8 + $0x3ac] ss:$16 sps:$4 sm:$0xff]   ;;  %v5635_v26 = vld [vmem:[#allocation8 + $0x3a0] ss:$16 sps:$4 sm:$0xff]   ;;  %v5638_v27 = vld [vmem:[#allocation8 + $0x3a8] ss:$16 sps:$4 sm:$0xff]  }
 0x285   :  { %2124 = vmatpush1.bf16.msra.mxu0 %v5557_v34  ;;  %2210 = vmatpush1.bf16.msra.mxu1 %v5560_v35  ;;  %v5643_v28 = vld [vmem:[#allocation8 + $0x3c4] ss:$16 sps:$4 sm:$0xff]   ;;  %v5646_v29 = vld [vmem:[#allocation8 + $0x3cc] ss:$16 sps:$4 sm:$0xff]   ;;  %v5641_v30 = vld [vmem:[#allocation8 + $0x3c0] ss:$16 sps:$4 sm:$0xff]  }
 0x286   :  { %2155 = vmatprep.mubr.bf16.mxu0 %v1289_v33  ;;  %2241 = vmatprep.mubr.bf16.mxu1 %v1289_v33  ;;  %v5644_v32 = vld [vmem:[#allocation8 + $0x3c8] ss:$16 sps:$4 sm:$0xff]   ;;  %v5649_v33 = vld [vmem:[#allocation8 + $0x3e4] ss:$16 sps:$4 sm:$0xff]   ;;  %v5652_v34 = vld [vmem:[#allocation8 + $0x3ec] ss:$16 sps:$4 sm:$0xff]  }
 0x287   :  { %2125 = vmatprep.subr.bf16.mxu0 %v5565_v36  ;;  %2211 = vmatprep.subr.bf16.mxu1 %v5568_v37  ;;  %v5647_v35 = vld [vmem:[#allocation8 + $0x3e0] ss:$16 sps:$4 sm:$0xff]   ;;  %v5650_v36 = vld [vmem:[#allocation8 + $0x3e8] ss:$16 sps:$4 sm:$0xff]   ;;  %v5655_v37 = vld [vmem:[#allocation10 + $0x4] ss:$16 sps:$4 sm:$0xff]  }
 0x289   :  { %2126 = vmatpush1.bf16.msra.mxu0 %v5563_v38  ;;  %2212 = vmatpush1.bf16.msra.mxu1 %v5566_v39  ;;  %v5658_v38 = vld [vmem:[#allocation10 + $0xc] ss:$16 sps:$4 sm:$0xff]   ;;  %v5653_v39 = vld [vmem:[#allocation10] ss:$16 sps:$4 sm:$0xff]  }
 0x28a   :  { %2127 = vmatprep.subr.bf16.mxu0 %v5571_v40  ;;  %2213 = vmatprep.subr.bf16.mxu1 %v5574_v41  ;;  %v5656_v40 = vld [vmem:[#allocation10 + $0x8] ss:$16 sps:$4 sm:$0xff]   ;;  %v5661_v41 = vld [vmem:[#allocation10 + $0x24] ss:$16 sps:$4 sm:$0xff]  }
 0x28d   :  { %2128 = vmatpush1.bf16.msra.mxu0 %v5569_v42  ;;  %2214 = vmatpush1.bf16.msra.mxu1 %v5572_v43  ;;  %v5664_v42 = vld [vmem:[#allocation10 + $0x2c] ss:$16 sps:$4 sm:$0xff]   ;;  %v5659_v43 = vld [vmem:[#allocation10 + $0x20] ss:$16 sps:$4 sm:$0xff]  }
 0x28e   :  { %2129 = vmatprep.subr.bf16.mxu0 %v5577_v44  ;;  %2215 = vmatprep.subr.bf16.mxu1 %v5580_v45  ;;  %v5662_v44 = vld [vmem:[#allocation10 + $0x28] ss:$16 sps:$4 sm:$0xff]   ;;  %v5667_v45 = vld [vmem:[#allocation10 + $0x44] ss:$16 sps:$4 sm:$0xff]  }
 0x291   :  { %2130 = vmatpush1.bf16.msra.mxu0 %v5575_v46  ;;  %2216 = vmatpush1.bf16.msra.mxu1 %v5578_v47  ;;  %v5670_v46 = vld [vmem:[#allocation10 + $0x4c] ss:$16 sps:$4 sm:$0xff]   ;;  %v5665_v47 = vld [vmem:[#allocation10 + $0x40] ss:$16 sps:$4 sm:$0xff]  }
 0x292   :  { %2131 = vmatprep.subr.bf16.mxu0 %v5583_v48  ;;  %2217 = vmatprep.subr.bf16.mxu1 %v5586_v49  ;;  %v5668_v48 = vld [vmem:[#allocation10 + $0x48] ss:$16 sps:$4 sm:$0xff]   ;;  %v5673_v49 = vld [vmem:[#allocation10 + $0x64] ss:$16 sps:$4 sm:$0xff]  }
 0x295   :  { %2132 = vmatpush1.bf16.msra.mxu0 %v5581_v50  ;;  %2218 = vmatpush1.bf16.msra.mxu1 %v5584_v51  ;;  %v5676_v50 = vld [vmem:[#allocation10 + $0x6c] ss:$16 sps:$4 sm:$0xff]   ;;  %v5671_v51 = vld [vmem:[#allocation10 + $0x60] ss:$16 sps:$4 sm:$0xff]  }
 0x296   :  { %2133 = vmatprep.subr.bf16.mxu0 %v5589_v52  ;;  %2219 = vmatprep.subr.bf16.mxu1 %v5592_v53  ;;  %v5679_v52 = vld [vmem:[#allocation10 + $0x84] ss:$16 sps:$4 sm:$0xff]   ;;  %v5682_v53 = vld [vmem:[#allocation10 + $0x8c] ss:$16 sps:$4 sm:$0xff]  }
 0x299   :  { %2134 = vmatpush1.bf16.msra.mxu0 %v5587_v54  ;;  %2220 = vmatpush1.bf16.msra.mxu1 %v5590_v55  ;;  %v5677_v54 = vld [vmem:[#allocation10 + $0x80] ss:$16 sps:$4 sm:$0xff]   ;;  %v5680_v55 = vld [vmem:[#allocation10 + $0x88] ss:$16 sps:$4 sm:$0xff]  }
 0x29a   :  { %2135 = vmatprep.subr.bf16.mxu0 %v5595_v56  ;;  %2221 = vmatprep.subr.bf16.mxu1 %v5598_v57  ;;  %v5685_v56 = vld [vmem:[#allocation10 + $0xa4] ss:$16 sps:$4 sm:$0xff]   ;;  %v5688_v57 = vld [vmem:[#allocation10 + $0xac] ss:$16 sps:$4 sm:$0xff]  }
 0x29d   :  { %2136 = vmatpush1.bf16.msra.mxu0 %v5593_v58  ;;  %2222 = vmatpush1.bf16.msra.mxu1 %v5596_v60  ;;  %v5683_v58 = vld [vmem:[#allocation10 + $0xa0] ss:$16 sps:$4 sm:$0xff]   ;;  %v5686_v60 = vld [vmem:[#allocation10 + $0xa8] ss:$16 sps:$4 sm:$0xff]  }
 0x29e   :  { %2137 = vmatprep.subr.bf16.mxu0 %v5601_v61  ;;  %2223 = vmatprep.subr.bf16.mxu1 %v5604_v62  ;;  %v5691_v61 = vld [vmem:[#allocation10 + $0xc4] ss:$16 sps:$4 sm:$0xff]   ;;  %v5694_v62 = vld [vmem:[#allocation10 + $0xcc] ss:$16 sps:$4 sm:$0xff]  }
 0x2a1   :  { %2138 = vmatpush1.bf16.msra.mxu0 %v5599_v63  ;;  %2224 = vmatpush1.bf16.msra.mxu1 %v5602_v0  ;;  %v5689_v63 = vld [vmem:[#allocation10 + $0xc0] ss:$16 sps:$4 sm:$0xff]   ;;  %v5692_v0 = vld [vmem:[#allocation10 + $0xc8] ss:$16 sps:$4 sm:$0xff]  }
 0x2a2   :  { %2139 = vmatprep.subr.bf16.mxu0 %v5607_v1  ;;  %2225 = vmatprep.subr.bf16.mxu1 %v5610_v2  ;;  %v5697_v1 = vld [vmem:[#allocation10 + $0xe4] ss:$16 sps:$4 sm:$0xff]   ;;  %v5700_v2 = vld [vmem:[#allocation10 + $0xec] ss:$16 sps:$4 sm:$0xff]  }
 0x2a5   :  { %2140 = vmatpush1.bf16.msra.mxu0 %v5605_v3  ;;  %2226 = vmatpush1.bf16.msra.mxu1 %v5608_v4  ;;  %v5695_v3 = vld [vmem:[#allocation10 + $0xe0] ss:$16 sps:$4 sm:$0xff]   ;;  %v5698_v4 = vld [vmem:[#allocation10 + $0xe8] ss:$16 sps:$4 sm:$0xff]  }
 0x2a6   :  { %2141 = vmatprep.subr.bf16.mxu0 %v5613_v5  ;;  %2227 = vmatprep.subr.bf16.mxu1 %v5616_v6  ;;  %v5703_v5 = vld [vmem:[#allocation10 + $0x104] ss:$16 sps:$4 sm:$0xff]   ;;  %v5706_v6 = vld [vmem:[#allocation10 + $0x10c] ss:$16 sps:$4 sm:$0xff]  }
 0x2a9   :  { %2142 = vmatpush1.bf16.msra.mxu0 %v5611_v59  ;;  %2228 = vmatpush1.bf16.msra.mxu1 %v5614_v7  ;;  %v5701_v59 = vld [vmem:[#allocation10 + $0x100] ss:$16 sps:$4 sm:$0xff]   ;;  %v5704_v7 = vld [vmem:[#allocation10 + $0x108] ss:$16 sps:$4 sm:$0xff]  }
 0x2aa   :  { %2143 = vmatprep.subr.bf16.mxu0 %v5619_v8  ;;  %2229 = vmatprep.subr.bf16.mxu1 %v5622_v9  ;;  %v5709_v8 = vld [vmem:[#allocation10 + $0x124] ss:$16 sps:$4 sm:$0xff]   ;;  %v5712_v9 = vld [vmem:[#allocation10 + $0x12c] ss:$16 sps:$4 sm:$0xff]  }
 0x2ad   :  { %2144 = vmatpush1.bf16.msra.mxu0 %v5617_v10  ;;  %2230 = vmatpush1.bf16.msra.mxu1 %v5620_v11  ;;  %v5707_v10 = vld [vmem:[#allocation10 + $0x120] ss:$16 sps:$4 sm:$0xff]   ;;  %v5710_v11 = vld [vmem:[#allocation10 + $0x128] ss:$16 sps:$4 sm:$0xff]  }
 0x2ae   :  { %2145 = vmatprep.subr.bf16.mxu0 %v5625_v12  ;;  %2231 = vmatprep.subr.bf16.mxu1 %v5628_v13  ;;  %v5715_v12 = vld [vmem:[#allocation10 + $0x144] ss:$16 sps:$4 sm:$0xff]   ;;  %v5718_v13 = vld [vmem:[#allocation10 + $0x14c] ss:$16 sps:$4 sm:$0xff]  }
 0x2b1   :  { %2146 = vmatpush1.bf16.msra.mxu0 %v5623_v14  ;;  %2232 = vmatpush1.bf16.msra.mxu1 %v5626_v15  ;;  %v5713_v14 = vld [vmem:[#allocation10 + $0x140] ss:$16 sps:$4 sm:$0xff]   ;;  %v5716_v15 = vld [vmem:[#allocation10 + $0x148] ss:$16 sps:$4 sm:$0xff]  }
 0x2b2   :  { %2147 = vmatprep.subr.bf16.mxu0 %v5631_v16  ;;  %2233 = vmatprep.subr.bf16.mxu1 %v5634_v19  ;;  %v5721_v16 = vld [vmem:[#allocation10 + $0x164] ss:$16 sps:$4 sm:$0xff]   ;;  %v5724_v19 = vld [vmem:[#allocation10 + $0x16c] ss:$16 sps:$4 sm:$0xff]  }
 0x2b5   :  { %2148 = vmatpush1.bf16.msra.mxu0 %v5629_v21  ;;  %2234 = vmatpush1.bf16.msra.mxu1 %v5632_v23  ;;  %v5719_v21 = vld [vmem:[#allocation10 + $0x160] ss:$16 sps:$4 sm:$0xff]   ;;  %v5722_v23 = vld [vmem:[#allocation10 + $0x168] ss:$16 sps:$4 sm:$0xff]  }
 0x2b6   :  { %2149 = vmatprep.subr.bf16.mxu0 %v5637_v24  ;;  %2235 = vmatprep.subr.bf16.mxu1 %v5640_v25  ;;  %v5727_v24 = vld [vmem:[#allocation10 + $0x184] ss:$16 sps:$4 sm:$0xff]   ;;  %v5730_v25 = vld [vmem:[#allocation10 + $0x18c] ss:$16 sps:$4 sm:$0xff]  }
 0x2b9   :  { %2150 = vmatpush1.bf16.msra.mxu0 %v5635_v26  ;;  %2236 = vmatpush1.bf16.msra.mxu1 %v5638_v27  ;;  %v5725_v26 = vld [vmem:[#allocation10 + $0x180] ss:$16 sps:$4 sm:$0xff]   ;;  %v5728_v27 = vld [vmem:[#allocation10 + $0x188] ss:$16 sps:$4 sm:$0xff]  }
 0x2ba   :  { %2151 = vmatprep.subr.bf16.mxu0 %v5643_v28  ;;  %2237 = vmatprep.subr.bf16.mxu1 %v5646_v29  ;;  %v5733_v28 = vld [vmem:[#allocation10 + $0x1a4] ss:$16 sps:$4 sm:$0xff]   ;;  %v5736_v29 = vld [vmem:[#allocation10 + $0x1ac] ss:$16 sps:$4 sm:$0xff]  }
 0x2bd   :  { %2152 = vmatpush1.bf16.msra.mxu0 %v5641_v30  ;;  %2238 = vmatpush1.bf16.msra.mxu1 %v5644_v32  ;;  %v5731_v30 = vld [vmem:[#allocation10 + $0x1a0] ss:$16 sps:$4 sm:$0xff]   ;;  %v5734_v32 = vld [vmem:[#allocation10 + $0x1a8] ss:$16 sps:$4 sm:$0xff]  }
 0x2be   :  { %2153 = vmatprep.subr.bf16.mxu0 %v5649_v33  ;;  %2239 = vmatprep.subr.bf16.mxu1 %v5652_v34  ;;  %v5739_v33 = vld [vmem:[#allocation10 + $0x1c4] ss:$16 sps:$4 sm:$0xff]   ;;  %v5742_v34 = vld [vmem:[#allocation10 + $0x1cc] ss:$16 sps:$4 sm:$0xff]  }
 0x2c1   :  { %2154 = vmatpush1.bf16.msra.mxu0 %v5647_v35  ;;  %2240 = vmatpush1.bf16.msra.mxu1 %v5650_v36  ;;  %v5737_v35 = vld [vmem:[#allocation10 + $0x1c0] ss:$16 sps:$4 sm:$0xff]   ;;  %v5740_v36 = vld [vmem:[#allocation10 + $0x1c8] ss:$16 sps:$4 sm:$0xff]  }
 0x2c2   :  { %3054 = vmatprep.subr.bf16.mxu0 %v5655_v37  ;;  %3140 = vmatprep.subr.bf16.mxu1 %v5658_v38  ;;  %v5745_v37 = vld [vmem:[#allocation10 + $0x1e4] ss:$16 sps:$4 sm:$0xff]   ;;  %v5748_v38 = vld [vmem:[#allocation10 + $0x1ec] ss:$16 sps:$4 sm:$0xff]  }
 0x2c4   :  { %2156 = vmatmul.mubr.bf16.vlgmr.msra.gmra.mrb[8].mxu0 %v6477_v31  ;;  %2242 = vmatmul.mubr.bf16.vlgmr.msra.gmra.mrb[8].mxu1 %v6477_v31  ;;  %v5674_v31 = vld [vmem:[#allocation10 + $0x68] ss:$16 sps:$4 sm:$0xff]  }
 0x2c5   :  { %3055 = vmatpush1.bf16.msra.mxu0 %v5653_v39  ;;  %3141 = vmatpush1.bf16.msra.mxu1 %v5656_v40  ;;  %v5743_v39 = vld [vmem:[#allocation10 + $0x1e0] ss:$16 sps:$4 sm:$0xff]   ;;  %v5746_v40 = vld [vmem:[#allocation10 + $0x1e8] ss:$16 sps:$4 sm:$0xff]  }
 0x2c6   :  { %3056 = vmatprep.subr.bf16.mxu0 %v5661_v41  ;;  %3142 = vmatprep.subr.bf16.mxu1 %v5664_v42  ;;  %v5751_v41 = vld [vmem:[#allocation10 + $0x204] ss:$16 sps:$4 sm:$0xff]   ;;  %v5754_v42 = vld [vmem:[#allocation10 + $0x20c] ss:$16 sps:$4 sm:$0xff]  }
 0x2c9   :  { %3057 = vmatpush1.bf16.msra.mxu0 %v5659_v43  ;;  %3143 = vmatpush1.bf16.msra.mxu1 %v5662_v44  ;;  %v1418_v43 = vld [vmem:[%s6534_s6] sm:$0xf] }
 0x2ca   :  { %3058 = vmatprep.subr.bf16.mxu0 %v5667_v45  ;;  %3144 = vmatprep.subr.bf16.mxu1 %v5670_v46  ;;  %v1423_v44 = vrot.slane %v1418_v43, %v6454_v17  ;;  %v1431_v45 = vrot.slane %v1418_v43, %v6459_v20  ;;  %v1427_v46 = vrot.slane %v1418_v43, %v6456_v18 }
 0x2cd   :  { %3059 = vmatpush1.bf16.msra.mxu0 %v5665_v47  ;;  %3145 = vmatpush1.bf16.msra.mxu1 %v5668_v48  ;;  %v1435_v47 = vrot.slane %v1418_v43, %v6462_v22  ;;  %v5796_v43 = vld [vmem:[#allocation10 + $0x2ec] ss:$16 sps:$4 sm:$0xff]  }
 0x2ce   :  { %3060 = vmatprep.subr.bf16.mxu0 %v5673_v49  ;;  %3146 = vmatprep.subr.bf16.mxu1 %v5676_v50 }
 0x2d1   :  { %3061 = vmatpush1.bf16.msra.mxu0 %v5671_v51  ;;  %3147 = vmatpush1.bf16.msra.mxu1 %v5674_v31 }
 0x2d2   :  { %3062 = vmatprep.subr.bf16.mxu0 %v5679_v52  ;;  %3148 = vmatprep.subr.bf16.mxu1 %v5682_v53 }
 0x2d5   :  { %3063 = vmatpush1.bf16.msra.mxu0 %v5677_v54  ;;  %3149 = vmatpush1.bf16.msra.mxu1 %v5680_v55 }
 0x2d6   :  { %3064 = vmatprep.subr.bf16.mxu0 %v5685_v56  ;;  %3150 = vmatprep.subr.bf16.mxu1 %v5688_v57 }
 0x2d9   :  { %3065 = vmatpush1.bf16.msra.mxu0 %v5683_v58  ;;  %3151 = vmatpush1.bf16.msra.mxu1 %v5686_v60 }
 0x2da   :  { %3066 = vmatprep.subr.bf16.mxu0 %v5691_v61  ;;  %3152 = vmatprep.subr.bf16.mxu1 %v5694_v62 }
 0x2dd   :  { %3067 = vmatpush1.bf16.msra.mxu0 %v5689_v63  ;;  %3153 = vmatpush1.bf16.msra.mxu1 %v5692_v0 }
 0x2de   :  { %3068 = vmatprep.subr.bf16.mxu0 %v5697_v1  ;;  %3154 = vmatprep.subr.bf16.mxu1 %v5700_v2 }
 0x2e1   :  { %3069 = vmatpush1.bf16.msra.mxu0 %v5695_v3  ;;  %3155 = vmatpush1.bf16.msra.mxu1 %v5698_v4 }
 0x2e2   :  { %3070 = vmatprep.subr.bf16.mxu0 %v5703_v5  ;;  %3156 = vmatprep.subr.bf16.mxu1 %v5706_v6 }
 0x2e5   :  { %3071 = vmatpush1.bf16.msra.mxu0 %v5701_v59  ;;  %3157 = vmatpush1.bf16.msra.mxu1 %v5704_v7 }
 0x2e6   :  { %3072 = vmatprep.subr.bf16.mxu0 %v5709_v8  ;;  %3158 = vmatprep.subr.bf16.mxu1 %v5712_v9 }
 0x2e9   :  { %3073 = vmatpush1.bf16.msra.mxu0 %v5707_v10  ;;  %3159 = vmatpush1.bf16.msra.mxu1 %v5710_v11  ;;  %v5749_v11 = vld [vmem:[#allocation10 + $0x200] ss:$16 sps:$4 sm:$0xff]  }
 0x2ea   :  { %3074 = vmatprep.subr.bf16.mxu0 %v5715_v12  ;;  %3160 = vmatprep.subr.bf16.mxu1 %v5718_v13  ;;  %v5752_v12 = vld [vmem:[#allocation10 + $0x208] ss:$16 sps:$4 sm:$0xff]   ;;  %v5757_v13 = vld [vmem:[#allocation10 + $0x224] ss:$16 sps:$4 sm:$0xff]  }
 0x2ed   :  { %3075 = vmatpush1.bf16.msra.mxu0 %v5713_v14  ;;  %3161 = vmatpush1.bf16.msra.mxu1 %v5716_v15  ;;  %v5760_v14 = vld [vmem:[#allocation10 + $0x22c] ss:$16 sps:$4 sm:$0xff]   ;;  %v5755_v15 = vld [vmem:[#allocation10 + $0x220] ss:$16 sps:$4 sm:$0xff]  }
 0x2ee   :  { %3076 = vmatprep.subr.bf16.mxu0 %v5721_v16  ;;  %3162 = vmatprep.subr.bf16.mxu1 %v5724_v19  ;;  %v5758_v16 = vld [vmem:[#allocation10 + $0x228] ss:$16 sps:$4 sm:$0xff]   ;;  %v5763_v19 = vld [vmem:[#allocation10 + $0x244] ss:$16 sps:$4 sm:$0xff]  }
 0x2f1   :  { %3077 = vmatpush1.bf16.msra.mxu0 %v5719_v21  ;;  %3163 = vmatpush1.bf16.msra.mxu1 %v5722_v23  ;;  %v5766_v21 = vld [vmem:[#allocation10 + $0x24c] ss:$16 sps:$4 sm:$0xff]   ;;  %v5761_v23 = vld [vmem:[#allocation10 + $0x240] ss:$16 sps:$4 sm:$0xff]  }
 0x2f2   :  { %3078 = vmatprep.subr.bf16.mxu0 %v5727_v24  ;;  %3164 = vmatprep.subr.bf16.mxu1 %v5730_v25  ;;  %v5764_v24 = vld [vmem:[#allocation10 + $0x248] ss:$16 sps:$4 sm:$0xff]   ;;  %v5769_v25 = vld [vmem:[#allocation10 + $0x264] ss:$16 sps:$4 sm:$0xff]  }
 0x2f5   :  { %3079 = vmatpush1.bf16.msra.mxu0 %v5725_v26  ;;  %3165 = vmatpush1.bf16.msra.mxu1 %v5728_v27  ;;  %v5772_v26 = vld [vmem:[#allocation10 + $0x26c] ss:$16 sps:$4 sm:$0xff]   ;;  %v5767_v27 = vld [vmem:[#allocation10 + $0x260] ss:$16 sps:$4 sm:$0xff]  }
 0x2f6   :  { %3080 = vmatprep.subr.bf16.mxu0 %v5733_v28  ;;  %3166 = vmatprep.subr.bf16.mxu1 %v5736_v29  ;;  %v5770_v28 = vld [vmem:[#allocation10 + $0x268] ss:$16 sps:$4 sm:$0xff]   ;;  %v5775_v29 = vld [vmem:[#allocation10 + $0x284] ss:$16 sps:$4 sm:$0xff]  }
 0x2f9   :  { %3081 = vmatpush1.bf16.msra.mxu0 %v5731_v30  ;;  %3167 = vmatpush1.bf16.msra.mxu1 %v5734_v32  ;;  %v5778_v30 = vld [vmem:[#allocation10 + $0x28c] ss:$16 sps:$4 sm:$0xff]   ;;  %v5773_v32 = vld [vmem:[#allocation10 + $0x280] ss:$16 sps:$4 sm:$0xff]  }
 0x2fa   :  { %3082 = vmatprep.subr.bf16.mxu0 %v5739_v33  ;;  %3168 = vmatprep.subr.bf16.mxu1 %v5742_v34  ;;  %v5776_v33 = vld [vmem:[#allocation10 + $0x288] ss:$16 sps:$4 sm:$0xff]   ;;  %v5781_v34 = vld [vmem:[#allocation10 + $0x2a4] ss:$16 sps:$4 sm:$0xff]  }
 0x2fd   :  { %3083 = vmatpush1.bf16.msra.mxu0 %v5737_v35  ;;  %3169 = vmatpush1.bf16.msra.mxu1 %v5740_v36  ;;  %v5784_v35 = vld [vmem:[#allocation10 + $0x2ac] ss:$16 sps:$4 sm:$0xff]   ;;  %v5779_v36 = vld [vmem:[#allocation10 + $0x2a0] ss:$16 sps:$4 sm:$0xff]  }
 0x2fe   :  { %3084 = vmatprep.subr.bf16.mxu0 %v5745_v37  ;;  %3170 = vmatprep.subr.bf16.mxu1 %v5748_v38  ;;  %v5782_v37 = vld [vmem:[#allocation10 + $0x2a8] ss:$16 sps:$4 sm:$0xff]   ;;  %v5787_v38 = vld [vmem:[#allocation10 + $0x2c4] ss:$16 sps:$4 sm:$0xff]  }
 0x301   :  { %3085 = vmatpush1.bf16.msra.mxu0 %v5743_v39  ;;  %3171 = vmatpush1.bf16.msra.mxu1 %v5746_v40  ;;  %v5790_v39 = vld [vmem:[#allocation10 + $0x2cc] ss:$16 sps:$4 sm:$0xff]   ;;  %v5785_v40 = vld [vmem:[#allocation10 + $0x2c0] ss:$16 sps:$4 sm:$0xff]  }
 0x302   :  { %3097 = vmatprep.subr.bf16.mxu0 %v5751_v41  ;;  %3183 = vmatprep.subr.bf16.mxu1 %v5754_v42  ;;  %v5788_v41 = vld [vmem:[#allocation10 + $0x2c8] ss:$16 sps:$4 sm:$0xff]   ;;  %v5793_v42 = vld [vmem:[#allocation10 + $0x2e4] ss:$16 sps:$4 sm:$0xff]  }
 0x397   :  { %v2157_v48 = vpop.f32.mrb[8].mxu0  ;;  %v2243_v49 = vpop.f32.mrb[8].mxu1 }
 0x398   :  { %v5186_v50 = vadd.f32 %v2157_v48, %v1423_v44  ;;  %v5190_v51 = vadd.f32 %v2243_v49, %v1431_v45  ;;  %v2159_v31 = vpop.f32.mrb[9].mxu0  ;;  %v2245_v52 = vpop.f32.mrb[9].mxu1  ;;  %v5797_v48 = vld [vmem:[#allocation10 + $0x300] ss:$16 sps:$4 sm:$0xff]   ;;  %v5800_v49 = vld [vmem:[#allocation10 + $0x308] ss:$16 sps:$4 sm:$0xff]  }
 0x399   :  { %v5187_v53 = vadd.f32 %v2159_v31, %v1427_v46  ;;  %v5191_v54 = vadd.f32 %v2245_v52, %v1435_v47  ;;  %v2161_v55 = vpop.f32.mrb[10].mxu0  ;;  %v2247_v56 = vpop.f32.mrb[10].mxu1  ;;  %v5803_v31 = vld [vmem:[#allocation10 + $0x320] ss:$16 sps:$4 sm:$0xff]   ;;  %v5806_v52 = vld [vmem:[#allocation10 + $0x328] ss:$16 sps:$4 sm:$0xff]  }
 0x39a   :  { %v5188_v57 = vadd.f32 %v2161_v55, %v1423_v44  ;;  %v5192_v58 = vadd.f32 %v2247_v56, %v1431_v45  ;;  %v2163_v60 = vpop.f32.mrb[11].mxu0  ;;  %v2249_v61 = vpop.f32.mrb[11].mxu1  ;;  %v2252_v0 = vmax.f32 %v5186_v50, 0.0  ;;  %v2254_v1 = vmax.f32 %v5190_v51, 0.0  ;;  %v5791_v44 = vld [vmem:[#allocation10 + $0x2e0] ss:$16 sps:$4 sm:$0xff]  }
 0x39b   :  { %v5189_v62 = vadd.f32 %v2163_v60, %v1427_v46  ;;  %v5193_v63 = vadd.f32 %v2249_v61, %v1435_v47  ;;  %v2253_v4 = vmax.f32 %v5187_v53, 0.0  ;;  %v2255_v5 = vmax.f32 %v5191_v54, 0.0  ;;  %v5794_v45 = vld [vmem:[#allocation10 + $0x2e8] ss:$16 sps:$4 sm:$0xff]   ;;  %v5799_v46 = vld [vmem:[#allocation10 + $0x304] ss:$16 sps:$4 sm:$0xff]  }
 0x39c   :  { %v2256_v2 = vmax.f32 %v5188_v57, 0.0  ;;  %v2258_v3 = vmax.f32 %v5192_v58, 0.0  ;;  %v5802_v47 = vld [vmem:[#allocation10 + $0x30c] ss:$16 sps:$4 sm:$0xff]   ;;  %v5805_v50 = vld [vmem:[#allocation10 + $0x324] ss:$16 sps:$4 sm:$0xff]  }
 0x39d   :  { %v2257_v6 = vmax.f32 %v5189_v62, 0.0  ;;  %v2259_v59 = vmax.f32 %v5193_v63, 0.0  ;;  %v5808_v51 = vld [vmem:[#allocation10 + $0x32c] ss:$16 sps:$4 sm:$0xff]   ;;  %v5811_v53 = vld [vmem:[#allocation10 + $0x344] ss:$16 sps:$4 sm:$0xff]  }
 0x39e   :  { %v2260_v7 = vpack.c.bf16 %v2256_v2, %v2252_v0  ;;  %v6488_v8 = vpack.c.bf16 %v2258_v3, %v2254_v1  ;;  %v5814_v54 = vld [vmem:[#allocation10 + $0x34c] ss:$16 sps:$4 sm:$0xff]   ;;  %v5809_v55 = vld [vmem:[#allocation10 + $0x340] ss:$16 sps:$4 sm:$0xff]   ;;  %v5812_v56 = vld [vmem:[#allocation10 + $0x348] ss:$16 sps:$4 sm:$0xff]  }
 0x39f   :  { %v2261_v9 = vpack.c.bf16 %v2257_v6, %v2253_v4  ;;  %v2263_v10 = vpack.c.bf16 %v2259_v59, %v2255_v5  ;;  %v5817_v57 = vld [vmem:[#allocation10 + $0x364] ss:$16 sps:$4 sm:$0xff]   ;;  %v5820_v58 = vld [vmem:[#allocation10 + $0x36c] ss:$16 sps:$4 sm:$0xff]   ;;  %v5815_v60 = vld [vmem:[#allocation10 + $0x360] ss:$16 sps:$4 sm:$0xff]  }
 0x3a0   :  { %v5818_v61 = vld [vmem:[#allocation10 + $0x368] ss:$16 sps:$4 sm:$0xff]   ;;  %v5823_v62 = vld [vmem:[#allocation10 + $0x384] ss:$16 sps:$4 sm:$0xff]   ;;  %v5826_v63 = vld [vmem:[#allocation10 + $0x38c] ss:$16 sps:$4 sm:$0xff]  }
 0x3a1   :  { %3086 = vmatprep.mubr.bf16.mxu0 %v2261_v9  ;;  %3172 = vmatprep.mubr.bf16.mxu1 %v2261_v9  ;;  %v5821_v0 = vld [vmem:[#allocation10 + $0x380] ss:$16 sps:$4 sm:$0xff]   ;;  %v5824_v1 = vld [vmem:[#allocation10 + $0x388] ss:$16 sps:$4 sm:$0xff]   ;;  %v5829_v2 = vld [vmem:[#allocation10 + $0x3a4] ss:$16 sps:$4 sm:$0xff]  }
 0x3a2   :  { %3087 = vmatmul.mubr.bf16.vlgmr.msra.gmra.mrb[12].mxu0 %v2260_v7  ;;  %3173 = vmatmul.mubr.bf16.vlgmr.msra.gmra.mrb[12].mxu1 %v2260_v7  ;;  %v5832_v3 = vld [vmem:[#allocation10 + $0x3ac] ss:$16 sps:$4 sm:$0xff]   ;;  %v5827_v4 = vld [vmem:[#allocation10 + $0x3a0] ss:$16 sps:$4 sm:$0xff]   ;;  %v5830_v5 = vld [vmem:[#allocation10 + $0x3a8] ss:$16 sps:$4 sm:$0xff]  }
 0x3a3   :  { %3098 = vmatpush1.bf16.msra.mxu0 %v5749_v11  ;;  %3184 = vmatpush1.bf16.msra.mxu1 %v5752_v12  ;;  %v5835_v6 = vld [vmem:[#allocation10 + $0x3c4] ss:$16 sps:$4 sm:$0xff]   ;;  %v5838_v59 = vld [vmem:[#allocation10 + $0x3cc] ss:$16 sps:$4 sm:$0xff]   ;;  %v5833_v7 = vld [vmem:[#allocation10 + $0x3c0] ss:$16 sps:$4 sm:$0xff]  }
 0x3a4   :  { %3129 = vmatprep.mubr.bf16.mxu0 %v2263_v10  ;;  %3215 = vmatprep.mubr.bf16.mxu1 %v2263_v10  ;;  %v5836_v9 = vld [vmem:[#allocation10 + $0x3c8] ss:$16 sps:$4 sm:$0xff]   ;;  %v5841_v10 = vld [vmem:[#allocation10 + $0x3e4] ss:$16 sps:$4 sm:$0xff]   ;;  %v5844_v11 = vld [vmem:[#allocation10 + $0x3ec] ss:$16 sps:$4 sm:$0xff]  }
 0x3a5   :  { %3099 = vmatprep.subr.bf16.mxu0 %v5757_v13  ;;  %3185 = vmatprep.subr.bf16.mxu1 %v5760_v14  ;;  %v5839_v12 = vld [vmem:[#allocation10 + $0x3e0] ss:$16 sps:$4 sm:$0xff]   ;;  %v5842_v13 = vld [vmem:[#allocation10 + $0x3e8] ss:$16 sps:$4 sm:$0xff]   ;;  %v5847_v14 = vld [vmem:[#allocation11 + $0x4] ss:$16 sps:$4 sm:$0xff]  }
 0x3a7   :  { %3100 = vmatpush1.bf16.msra.mxu0 %v5755_v15  ;;  %3186 = vmatpush1.bf16.msra.mxu1 %v5758_v16  ;;  %v5850_v15 = vld [vmem:[#allocation11 + $0xc] ss:$16 sps:$4 sm:$0xff]   ;;  %v5845_v16 = vld [vmem:[#allocation11] ss:$16 sps:$4 sm:$0xff]  }
 0x3a8   :  { %3101 = vmatprep.subr.bf16.mxu0 %v5763_v19  ;;  %3187 = vmatprep.subr.bf16.mxu1 %v5766_v21  ;;  %v5848_v19 = vld [vmem:[#allocation11 + $0x8] ss:$16 sps:$4 sm:$0xff]   ;;  %v5853_v21 = vld [vmem:[#allocation11 + $0x24] ss:$16 sps:$4 sm:$0xff]  }
 0x3ab   :  { %3102 = vmatpush1.bf16.msra.mxu0 %v5761_v23  ;;  %3188 = vmatpush1.bf16.msra.mxu1 %v5764_v24  ;;  %v5856_v23 = vld [vmem:[#allocation11 + $0x2c] ss:$16 sps:$4 sm:$0xff]   ;;  %v5851_v24 = vld [vmem:[#allocation11 + $0x20] ss:$16 sps:$4 sm:$0xff]  }
 0x3ac   :  { %3103 = vmatprep.subr.bf16.mxu0 %v5769_v25  ;;  %3189 = vmatprep.subr.bf16.mxu1 %v5772_v26  ;;  %v5854_v25 = vld [vmem:[#allocation11 + $0x28] ss:$16 sps:$4 sm:$0xff]   ;;  %v5859_v26 = vld [vmem:[#allocation11 + $0x44] ss:$16 sps:$4 sm:$0xff]  }
 0x3af   :  { %3104 = vmatpush1.bf16.msra.mxu0 %v5767_v27  ;;  %3190 = vmatpush1.bf16.msra.mxu1 %v5770_v28  ;;  %v5862_v27 = vld [vmem:[#allocation11 + $0x4c] ss:$16 sps:$4 sm:$0xff]   ;;  %v5857_v28 = vld [vmem:[#allocation11 + $0x40] ss:$16 sps:$4 sm:$0xff]  }
 0x3b0   :  { %3105 = vmatprep.subr.bf16.mxu0 %v5775_v29  ;;  %3191 = vmatprep.subr.bf16.mxu1 %v5778_v30  ;;  %v5860_v29 = vld [vmem:[#allocation11 + $0x48] ss:$16 sps:$4 sm:$0xff]   ;;  %v5865_v30 = vld [vmem:[#allocation11 + $0x64] ss:$16 sps:$4 sm:$0xff]  }
 0x3b3   :  { %3106 = vmatpush1.bf16.msra.mxu0 %v5773_v32  ;;  %3192 = vmatpush1.bf16.msra.mxu1 %v5776_v33  ;;  %v5868_v32 = vld [vmem:[#allocation11 + $0x6c] ss:$16 sps:$4 sm:$0xff]   ;;  %v5863_v33 = vld [vmem:[#allocation11 + $0x60] ss:$16 sps:$4 sm:$0xff]  }
 0x3b4   :  { %3107 = vmatprep.subr.bf16.mxu0 %v5781_v34  ;;  %3193 = vmatprep.subr.bf16.mxu1 %v5784_v35  ;;  %v5871_v34 = vld [vmem:[#allocation11 + $0x84] ss:$16 sps:$4 sm:$0xff]   ;;  %v5874_v35 = vld [vmem:[#allocation11 + $0x8c] ss:$16 sps:$4 sm:$0xff]  }
 0x3b7   :  { %3108 = vmatpush1.bf16.msra.mxu0 %v5779_v36  ;;  %3194 = vmatpush1.bf16.msra.mxu1 %v5782_v37  ;;  %v5869_v36 = vld [vmem:[#allocation11 + $0x80] ss:$16 sps:$4 sm:$0xff]   ;;  %v5872_v37 = vld [vmem:[#allocation11 + $0x88] ss:$16 sps:$4 sm:$0xff]  }
 0x3b8   :  { %3109 = vmatprep.subr.bf16.mxu0 %v5787_v38  ;;  %3195 = vmatprep.subr.bf16.mxu1 %v5790_v39  ;;  %v5877_v38 = vld [vmem:[#allocation11 + $0xa4] ss:$16 sps:$4 sm:$0xff]   ;;  %v5880_v39 = vld [vmem:[#allocation11 + $0xac] ss:$16 sps:$4 sm:$0xff]  }
 0x3bb   :  { %3110 = vmatpush1.bf16.msra.mxu0 %v5785_v40  ;;  %3196 = vmatpush1.bf16.msra.mxu1 %v5788_v41  ;;  %v5875_v40 = vld [vmem:[#allocation11 + $0xa0] ss:$16 sps:$4 sm:$0xff]   ;;  %v5878_v41 = vld [vmem:[#allocation11 + $0xa8] ss:$16 sps:$4 sm:$0xff]  }
 0x3bc   :  { %3111 = vmatprep.subr.bf16.mxu0 %v5793_v42  ;;  %3197 = vmatprep.subr.bf16.mxu1 %v5796_v43  ;;  %v5883_v42 = vld [vmem:[#allocation11 + $0xc4] ss:$16 sps:$4 sm:$0xff]   ;;  %v5886_v43 = vld [vmem:[#allocation11 + $0xcc] ss:$16 sps:$4 sm:$0xff]  }
 0x3bf   :  { %3112 = vmatpush1.bf16.msra.mxu0 %v5791_v44  ;;  %3198 = vmatpush1.bf16.msra.mxu1 %v5794_v45  ;;  %v5881_v44 = vld [vmem:[#allocation11 + $0xc0] ss:$16 sps:$4 sm:$0xff]   ;;  %v5884_v45 = vld [vmem:[#allocation11 + $0xc8] ss:$16 sps:$4 sm:$0xff]  }
 0x3c0   :  { %3113 = vmatprep.subr.bf16.mxu0 %v5799_v46  ;;  %3199 = vmatprep.subr.bf16.mxu1 %v5802_v47  ;;  %v5889_v46 = vld [vmem:[#allocation11 + $0xe4] ss:$16 sps:$4 sm:$0xff]   ;;  %v5892_v47 = vld [vmem:[#allocation11 + $0xec] ss:$16 sps:$4 sm:$0xff]  }
 0x3c3   :  { %3114 = vmatpush1.bf16.msra.mxu0 %v5797_v48  ;;  %3200 = vmatpush1.bf16.msra.mxu1 %v5800_v49  ;;  %v5887_v48 = vld [vmem:[#allocation11 + $0xe0] ss:$16 sps:$4 sm:$0xff]   ;;  %v5890_v49 = vld [vmem:[#allocation11 + $0xe8] ss:$16 sps:$4 sm:$0xff]  }
 0x3c4   :  { %3115 = vmatprep.subr.bf16.mxu0 %v5805_v50  ;;  %3201 = vmatprep.subr.bf16.mxu1 %v5808_v51  ;;  %v5895_v50 = vld [vmem:[#allocation11 + $0x104] ss:$16 sps:$4 sm:$0xff]   ;;  %v5898_v51 = vld [vmem:[#allocation11 + $0x10c] ss:$16 sps:$4 sm:$0xff]  }
 0x3c7   :  { %3116 = vmatpush1.bf16.msra.mxu0 %v5803_v31  ;;  %3202 = vmatpush1.bf16.msra.mxu1 %v5806_v52  ;;  %v5893_v31 = vld [vmem:[#allocation11 + $0x100] ss:$16 sps:$4 sm:$0xff]   ;;  %v5896_v52 = vld [vmem:[#allocation11 + $0x108] ss:$16 sps:$4 sm:$0xff]  }
 0x3c8   :  { %3117 = vmatprep.subr.bf16.mxu0 %v5811_v53  ;;  %3203 = vmatprep.subr.bf16.mxu1 %v5814_v54  ;;  %v5901_v53 = vld [vmem:[#allocation11 + $0x124] ss:$16 sps:$4 sm:$0xff]   ;;  %v5904_v54 = vld [vmem:[#allocation11 + $0x12c] ss:$16 sps:$4 sm:$0xff]  }
 0x3cb   :  { %3118 = vmatpush1.bf16.msra.mxu0 %v5809_v55  ;;  %3204 = vmatpush1.bf16.msra.mxu1 %v5812_v56  ;;  %v5899_v55 = vld [vmem:[#allocation11 + $0x120] ss:$16 sps:$4 sm:$0xff]   ;;  %v5902_v56 = vld [vmem:[#allocation11 + $0x128] ss:$16 sps:$4 sm:$0xff]  }
 0x3cc   :  { %3119 = vmatprep.subr.bf16.mxu0 %v5817_v57  ;;  %3205 = vmatprep.subr.bf16.mxu1 %v5820_v58  ;;  %v5907_v57 = vld [vmem:[#allocation11 + $0x144] ss:$16 sps:$4 sm:$0xff]   ;;  %v5910_v58 = vld [vmem:[#allocation11 + $0x14c] ss:$16 sps:$4 sm:$0xff]  }
 0x3cf   :  { %3120 = vmatpush1.bf16.msra.mxu0 %v5815_v60  ;;  %3206 = vmatpush1.bf16.msra.mxu1 %v5818_v61  ;;  %v5905_v60 = vld [vmem:[#allocation11 + $0x140] ss:$16 sps:$4 sm:$0xff]   ;;  %v5908_v61 = vld [vmem:[#allocation11 + $0x148] ss:$16 sps:$4 sm:$0xff]  }
 0x3d0   :  { %3121 = vmatprep.subr.bf16.mxu0 %v5823_v62  ;;  %3207 = vmatprep.subr.bf16.mxu1 %v5826_v63  ;;  %v5913_v62 = vld [vmem:[#allocation11 + $0x164] ss:$16 sps:$4 sm:$0xff]   ;;  %v5916_v63 = vld [vmem:[#allocation11 + $0x16c] ss:$16 sps:$4 sm:$0xff]  }
 0x3d3   :  { %3122 = vmatpush1.bf16.msra.mxu0 %v5821_v0  ;;  %3208 = vmatpush1.bf16.msra.mxu1 %v5824_v1  ;;  %v5911_v0 = vld [vmem:[#allocation11 + $0x160] ss:$16 sps:$4 sm:$0xff]   ;;  %v5914_v1 = vld [vmem:[#allocation11 + $0x168] ss:$16 sps:$4 sm:$0xff]  }
 0x3d4   :  { %3123 = vmatprep.subr.bf16.mxu0 %v5829_v2  ;;  %3209 = vmatprep.subr.bf16.mxu1 %v5832_v3  ;;  %v5919_v2 = vld [vmem:[#allocation11 + $0x184] ss:$16 sps:$4 sm:$0xff]   ;;  %v5922_v3 = vld [vmem:[#allocation11 + $0x18c] ss:$16 sps:$4 sm:$0xff]  }
 0x3d7   :  { %3124 = vmatpush1.bf16.msra.mxu0 %v5827_v4  ;;  %3210 = vmatpush1.bf16.msra.mxu1 %v5830_v5  ;;  %v5917_v4 = vld [vmem:[#allocation11 + $0x180] ss:$16 sps:$4 sm:$0xff]   ;;  %v5920_v5 = vld [vmem:[#allocation11 + $0x188] ss:$16 sps:$4 sm:$0xff]  }
 0x3d8   :  { %3125 = vmatprep.subr.bf16.mxu0 %v5835_v6  ;;  %3211 = vmatprep.subr.bf16.mxu1 %v5838_v59  ;;  %v5925_v6 = vld [vmem:[#allocation11 + $0x1a4] ss:$16 sps:$4 sm:$0xff]   ;;  %v5928_v59 = vld [vmem:[#allocation11 + $0x1ac] ss:$16 sps:$4 sm:$0xff]  }
 0x3db   :  { %3126 = vmatpush1.bf16.msra.mxu0 %v5833_v7  ;;  %3212 = vmatpush1.bf16.msra.mxu1 %v5836_v9  ;;  %v5923_v7 = vld [vmem:[#allocation11 + $0x1a0] ss:$16 sps:$4 sm:$0xff]   ;;  %v5926_v9 = vld [vmem:[#allocation11 + $0x1a8] ss:$16 sps:$4 sm:$0xff]  }
 0x3dc   :  { %3127 = vmatprep.subr.bf16.mxu0 %v5841_v10  ;;  %3213 = vmatprep.subr.bf16.mxu1 %v5844_v11  ;;  %v5931_v10 = vld [vmem:[#allocation11 + $0x1c4] ss:$16 sps:$4 sm:$0xff]   ;;  %v5934_v11 = vld [vmem:[#allocation11 + $0x1cc] ss:$16 sps:$4 sm:$0xff]  }
 0x3df   :  { %3128 = vmatpush1.bf16.msra.mxu0 %v5839_v12  ;;  %3214 = vmatpush1.bf16.msra.mxu1 %v5842_v13  ;;  %v5929_v12 = vld [vmem:[#allocation11 + $0x1c0] ss:$16 sps:$4 sm:$0xff]   ;;  %v5932_v13 = vld [vmem:[#allocation11 + $0x1c8] ss:$16 sps:$4 sm:$0xff]  }
 0x3e0   :  { %4028 = vmatprep.subr.bf16.mxu0 %v5847_v14  ;;  %4114 = vmatprep.subr.bf16.mxu1 %v5850_v15  ;;  %v5937_v14 = vld [vmem:[#allocation11 + $0x1e4] ss:$16 sps:$4 sm:$0xff]   ;;  %v5940_v15 = vld [vmem:[#allocation11 + $0x1ec] ss:$16 sps:$4 sm:$0xff]  }
 0x3e2   :  { %3130 = vmatmul.mubr.bf16.vlgmr.msra.gmra.mrb[12].mxu0 %v6488_v8  ;;  %3216 = vmatmul.mubr.bf16.vlgmr.msra.gmra.mrb[12].mxu1 %v6488_v8  ;;  %v5866_v8 = vld [vmem:[#allocation11 + $0x68] ss:$16 sps:$4 sm:$0xff]  }
 0x3e3   :  { %4029 = vmatpush1.bf16.msra.mxu0 %v5845_v16  ;;  %4115 = vmatpush1.bf16.msra.mxu1 %v5848_v19  ;;  %v5935_v16 = vld [vmem:[#allocation11 + $0x1e0] ss:$16 sps:$4 sm:$0xff]   ;;  %v5938_v19 = vld [vmem:[#allocation11 + $0x1e8] ss:$16 sps:$4 sm:$0xff]  }
 0x3e4   :  { %4030 = vmatprep.subr.bf16.mxu0 %v5853_v21  ;;  %4116 = vmatprep.subr.bf16.mxu1 %v5856_v23  ;;  %v5943_v21 = vld [vmem:[#allocation11 + $0x204] ss:$16 sps:$4 sm:$0xff]   ;;  %v5946_v23 = vld [vmem:[#allocation11 + $0x20c] ss:$16 sps:$4 sm:$0xff]  }
 0x3e7   :  { %4031 = vmatpush1.bf16.msra.mxu0 %v5851_v24  ;;  %4117 = vmatpush1.bf16.msra.mxu1 %v5854_v25  ;;  %v2392_v24 = vld [vmem:[%s6536_s8] sm:$0xf] }
 0x3e8   :  { %4032 = vmatprep.subr.bf16.mxu0 %v5859_v26  ;;  %4118 = vmatprep.subr.bf16.mxu1 %v5862_v27  ;;  %v2397_v25 = vrot.slane %v2392_v24, %v6454_v17  ;;  %v2405_v26 = vrot.slane %v2392_v24, %v6459_v20  ;;  %v2401_v27 = vrot.slane %v2392_v24, %v6456_v18 }
 0x3eb   :  { %4033 = vmatpush1.bf16.msra.mxu0 %v5857_v28  ;;  %4119 = vmatpush1.bf16.msra.mxu1 %v5860_v29  ;;  %v2409_v28 = vrot.slane %v2392_v24, %v6462_v22  ;;  %v5988_v24 = vld [vmem:[#allocation11 + $0x2ec] ss:$16 sps:$4 sm:$0xff]  }
 0x3ec   :  { %4034 = vmatprep.subr.bf16.mxu0 %v5865_v30  ;;  %4120 = vmatprep.subr.bf16.mxu1 %v5868_v32 }
 0x3ef   :  { %4035 = vmatpush1.bf16.msra.mxu0 %v5863_v33  ;;  %4121 = vmatpush1.bf16.msra.mxu1 %v5866_v8 }
 0x3f0   :  { %4036 = vmatprep.subr.bf16.mxu0 %v5871_v34  ;;  %4122 = vmatprep.subr.bf16.mxu1 %v5874_v35 }
 0x3f3   :  { %4037 = vmatpush1.bf16.msra.mxu0 %v5869_v36  ;;  %4123 = vmatpush1.bf16.msra.mxu1 %v5872_v37 }
 0x3f4   :  { %4038 = vmatprep.subr.bf16.mxu0 %v5877_v38  ;;  %4124 = vmatprep.subr.bf16.mxu1 %v5880_v39 }
 0x3f7   :  { %4039 = vmatpush1.bf16.msra.mxu0 %v5875_v40  ;;  %4125 = vmatpush1.bf16.msra.mxu1 %v5878_v41 }
 0x3f8   :  { %4040 = vmatprep.subr.bf16.mxu0 %v5883_v42  ;;  %4126 = vmatprep.subr.bf16.mxu1 %v5886_v43 }
 0x3fb   :  { %4041 = vmatpush1.bf16.msra.mxu0 %v5881_v44  ;;  %4127 = vmatpush1.bf16.msra.mxu1 %v5884_v45 }
 0x3fc   :  { %4042 = vmatprep.subr.bf16.mxu0 %v5889_v46  ;;  %4128 = vmatprep.subr.bf16.mxu1 %v5892_v47 }
 0x3ff   :  { %4043 = vmatpush1.bf16.msra.mxu0 %v5887_v48  ;;  %4129 = vmatpush1.bf16.msra.mxu1 %v5890_v49 }
 0x400   :  { %4044 = vmatprep.subr.bf16.mxu0 %v5895_v50  ;;  %4130 = vmatprep.subr.bf16.mxu1 %v5898_v51 }
 0x403   :  { %4045 = vmatpush1.bf16.msra.mxu0 %v5893_v31  ;;  %4131 = vmatpush1.bf16.msra.mxu1 %v5896_v52 }
 0x404   :  { %4046 = vmatprep.subr.bf16.mxu0 %v5901_v53  ;;  %4132 = vmatprep.subr.bf16.mxu1 %v5904_v54 }
 0x407   :  { %4047 = vmatpush1.bf16.msra.mxu0 %v5899_v55  ;;  %4133 = vmatpush1.bf16.msra.mxu1 %v5902_v56  ;;  %v5941_v56 = vld [vmem:[#allocation11 + $0x200] ss:$16 sps:$4 sm:$0xff]  }
 0x408   :  { %4048 = vmatprep.subr.bf16.mxu0 %v5907_v57  ;;  %4134 = vmatprep.subr.bf16.mxu1 %v5910_v58  ;;  %v5944_v57 = vld [vmem:[#allocation11 + $0x208] ss:$16 sps:$4 sm:$0xff]   ;;  %v5949_v58 = vld [vmem:[#allocation11 + $0x224] ss:$16 sps:$4 sm:$0xff]  }
 0x40b   :  { %4049 = vmatpush1.bf16.msra.mxu0 %v5905_v60  ;;  %4135 = vmatpush1.bf16.msra.mxu1 %v5908_v61  ;;  %v5952_v60 = vld [vmem:[#allocation11 + $0x22c] ss:$16 sps:$4 sm:$0xff]   ;;  %v5947_v61 = vld [vmem:[#allocation11 + $0x220] ss:$16 sps:$4 sm:$0xff]  }
 0x40c   :  { %4050 = vmatprep.subr.bf16.mxu0 %v5913_v62  ;;  %4136 = vmatprep.subr.bf16.mxu1 %v5916_v63  ;;  %v5950_v62 = vld [vmem:[#allocation11 + $0x228] ss:$16 sps:$4 sm:$0xff]   ;;  %v5955_v63 = vld [vmem:[#allocation11 + $0x244] ss:$16 sps:$4 sm:$0xff]  }
 0x40f   :  { %4051 = vmatpush1.bf16.msra.mxu0 %v5911_v0  ;;  %4137 = vmatpush1.bf16.msra.mxu1 %v5914_v1  ;;  %v5958_v0 = vld [vmem:[#allocation11 + $0x24c] ss:$16 sps:$4 sm:$0xff]   ;;  %v5953_v1 = vld [vmem:[#allocation11 + $0x240] ss:$16 sps:$4 sm:$0xff]  }
 0x410   :  { %4052 = vmatprep.subr.bf16.mxu0 %v5919_v2  ;;  %4138 = vmatprep.subr.bf16.mxu1 %v5922_v3  ;;  %v5956_v2 = vld [vmem:[#allocation11 + $0x248] ss:$16 sps:$4 sm:$0xff]   ;;  %v5961_v3 = vld [vmem:[#allocation11 + $0x264] ss:$16 sps:$4 sm:$0xff]  }
 0x413   :  { %4053 = vmatpush1.bf16.msra.mxu0 %v5917_v4  ;;  %4139 = vmatpush1.bf16.msra.mxu1 %v5920_v5  ;;  %v5964_v4 = vld [vmem:[#allocation11 + $0x26c] ss:$16 sps:$4 sm:$0xff]   ;;  %v5959_v5 = vld [vmem:[#allocation11 + $0x260] ss:$16 sps:$4 sm:$0xff]  }
 0x414   :  { %4054 = vmatprep.subr.bf16.mxu0 %v5925_v6  ;;  %4140 = vmatprep.subr.bf16.mxu1 %v5928_v59  ;;  %v5962_v6 = vld [vmem:[#allocation11 + $0x268] ss:$16 sps:$4 sm:$0xff]   ;;  %v5967_v59 = vld [vmem:[#allocation11 + $0x284] ss:$16 sps:$4 sm:$0xff]  }
 0x417   :  { %4055 = vmatpush1.bf16.msra.mxu0 %v5923_v7  ;;  %4141 = vmatpush1.bf16.msra.mxu1 %v5926_v9  ;;  %v5970_v7 = vld [vmem:[#allocation11 + $0x28c] ss:$16 sps:$4 sm:$0xff]   ;;  %v5965_v9 = vld [vmem:[#allocation11 + $0x280] ss:$16 sps:$4 sm:$0xff]  }
 0x418   :  { %4056 = vmatprep.subr.bf16.mxu0 %v5931_v10  ;;  %4142 = vmatprep.subr.bf16.mxu1 %v5934_v11  ;;  %v5968_v10 = vld [vmem:[#allocation11 + $0x288] ss:$16 sps:$4 sm:$0xff]   ;;  %v5973_v11 = vld [vmem:[#allocation11 + $0x2a4] ss:$16 sps:$4 sm:$0xff]  }
 0x41b   :  { %4057 = vmatpush1.bf16.msra.mxu0 %v5929_v12  ;;  %4143 = vmatpush1.bf16.msra.mxu1 %v5932_v13  ;;  %v5976_v12 = vld [vmem:[#allocation11 + $0x2ac] ss:$16 sps:$4 sm:$0xff]   ;;  %v5971_v13 = vld [vmem:[#allocation11 + $0x2a0] ss:$16 sps:$4 sm:$0xff]  }
 0x41c   :  { %4058 = vmatprep.subr.bf16.mxu0 %v5937_v14  ;;  %4144 = vmatprep.subr.bf16.mxu1 %v5940_v15  ;;  %v5974_v14 = vld [vmem:[#allocation11 + $0x2a8] ss:$16 sps:$4 sm:$0xff]   ;;  %v5979_v15 = vld [vmem:[#allocation11 + $0x2c4] ss:$16 sps:$4 sm:$0xff]  }
 0x41f   :  { %4059 = vmatpush1.bf16.msra.mxu0 %v5935_v16  ;;  %4145 = vmatpush1.bf16.msra.mxu1 %v5938_v19  ;;  %v5982_v16 = vld [vmem:[#allocation11 + $0x2cc] ss:$16 sps:$4 sm:$0xff]   ;;  %v5977_v19 = vld [vmem:[#allocation11 + $0x2c0] ss:$16 sps:$4 sm:$0xff]  }
 0x420   :  { %4071 = vmatprep.subr.bf16.mxu0 %v5943_v21  ;;  %4157 = vmatprep.subr.bf16.mxu1 %v5946_v23  ;;  %v5980_v21 = vld [vmem:[#allocation11 + $0x2c8] ss:$16 sps:$4 sm:$0xff]   ;;  %v5985_v23 = vld [vmem:[#allocation11 + $0x2e4] ss:$16 sps:$4 sm:$0xff]  }
 0x4b5   :  { %v3131_v29 = vpop.f32.mrb[12].mxu0  ;;  %v3217_v30 = vpop.f32.mrb[12].mxu1 }
 0x4b6   :  { %v5194_v32 = vadd.f32 %v3131_v29, %v2397_v25  ;;  %v5198_v33 = vadd.f32 %v3217_v30, %v2405_v26  ;;  %v3133_v8 = vpop.f32.mrb[13].mxu0  ;;  %v3219_v34 = vpop.f32.mrb[13].mxu1  ;;  %v5989_v29 = vld [vmem:[#allocation11 + $0x300] ss:$16 sps:$4 sm:$0xff]   ;;  %v5992_v30 = vld [vmem:[#allocation11 + $0x308] ss:$16 sps:$4 sm:$0xff]  }
 0x4b7   :  { %v5195_v35 = vadd.f32 %v3133_v8, %v2401_v27  ;;  %v5199_v36 = vadd.f32 %v3219_v34, %v2409_v28  ;;  %v3135_v37 = vpop.f32.mrb[14].mxu0  ;;  %v3221_v38 = vpop.f32.mrb[14].mxu1  ;;  %v5995_v8 = vld [vmem:[#allocation11 + $0x320] ss:$16 sps:$4 sm:$0xff]   ;;  %v5998_v34 = vld [vmem:[#allocation11 + $0x328] ss:$16 sps:$4 sm:$0xff]  }
 0x4b8   :  { %v5196_v39 = vadd.f32 %v3135_v37, %v2397_v25  ;;  %v5200_v40 = vadd.f32 %v3221_v38, %v2405_v26  ;;  %v3137_v41 = vpop.f32.mrb[15].mxu0  ;;  %v3223_v42 = vpop.f32.mrb[15].mxu1  ;;  %v3226_v45 = vmax.f32 %v5194_v32, 0.0  ;;  %v3228_v46 = vmax.f32 %v5198_v33, 0.0  ;;  %v5983_v25 = vld [vmem:[#allocation11 + $0x2e0] ss:$16 sps:$4 sm:$0xff]  }
 0x4b9   :  { %v5197_v43 = vadd.f32 %v3137_v41, %v2401_v27  ;;  %v5201_v44 = vadd.f32 %v3223_v42, %v2409_v28  ;;  %v3227_v49 = vmax.f32 %v5195_v35, 0.0  ;;  %v3229_v50 = vmax.f32 %v5199_v36, 0.0  ;;  %v5986_v26 = vld [vmem:[#allocation11 + $0x2e8] ss:$16 sps:$4 sm:$0xff]   ;;  %v5991_v27 = vld [vmem:[#allocation11 + $0x304] ss:$16 sps:$4 sm:$0xff]  }
 0x4ba   :  { %v3230_v47 = vmax.f32 %v5196_v39, 0.0  ;;  %v3232_v48 = vmax.f32 %v5200_v40, 0.0  ;;  %v5994_v28 = vld [vmem:[#allocation11 + $0x30c] ss:$16 sps:$4 sm:$0xff]   ;;  %v5997_v32 = vld [vmem:[#allocation11 + $0x324] ss:$16 sps:$4 sm:$0xff]  }
 0x4bb   :  { %v3231_v51 = vmax.f32 %v5197_v43, 0.0  ;;  %v3233_v31 = vmax.f32 %v5201_v44, 0.0  ;;  %v6000_v33 = vld [vmem:[#allocation11 + $0x32c] ss:$16 sps:$4 sm:$0xff]   ;;  %v6003_v35 = vld [vmem:[#allocation11 + $0x344] ss:$16 sps:$4 sm:$0xff]  }
 0x4bc   :  { %v3234_v52 = vpack.c.bf16 %v3230_v47, %v3226_v45  ;;  %v6499_v53 = vpack.c.bf16 %v3232_v48, %v3228_v46  ;;  %v6006_v36 = vld [vmem:[#allocation11 + $0x34c] ss:$16 sps:$4 sm:$0xff]   ;;  %v6001_v37 = vld [vmem:[#allocation11 + $0x340] ss:$16 sps:$4 sm:$0xff]   ;;  %v6004_v38 = vld [vmem:[#allocation11 + $0x348] ss:$16 sps:$4 sm:$0xff]  }
 0x4bd   :  { %v3235_v54 = vpack.c.bf16 %v3231_v51, %v3227_v49  ;;  %v3237_v55 = vpack.c.bf16 %v3233_v31, %v3229_v50  ;;  %v6009_v39 = vld [vmem:[#allocation11 + $0x364] ss:$16 sps:$4 sm:$0xff]   ;;  %v6012_v40 = vld [vmem:[#allocation11 + $0x36c] ss:$16 sps:$4 sm:$0xff]   ;;  %v6007_v41 = vld [vmem:[#allocation11 + $0x360] ss:$16 sps:$4 sm:$0xff]  }
 0x4be   :  { %v6010_v42 = vld [vmem:[#allocation11 + $0x368] ss:$16 sps:$4 sm:$0xff]   ;;  %v6015_v43 = vld [vmem:[#allocation11 + $0x384] ss:$16 sps:$4 sm:$0xff]   ;;  %v6018_v44 = vld [vmem:[#allocation11 + $0x38c] ss:$16 sps:$4 sm:$0xff]  }
 0x4bf   :  { %4060 = vmatprep.mubr.bf16.mxu0 %v3235_v54  ;;  %4146 = vmatprep.mubr.bf16.mxu1 %v3235_v54  ;;  %v6013_v45 = vld [vmem:[#allocation11 + $0x380] ss:$16 sps:$4 sm:$0xff]   ;;  %v6016_v46 = vld [vmem:[#allocation11 + $0x388] ss:$16 sps:$4 sm:$0xff]   ;;  %v6021_v47 = vld [vmem:[#allocation11 + $0x3a4] ss:$16 sps:$4 sm:$0xff]  }
 0x4c0   :  { %4061 = vmatmul.mubr.bf16.vlgmr.msra.gmra.mrb[16].mxu0 %v3234_v52  ;;  %4147 = vmatmul.mubr.bf16.vlgmr.msra.gmra.mrb[16].mxu1 %v3234_v52  ;;  %v6024_v48 = vld [vmem:[#allocation11 + $0x3ac] ss:$16 sps:$4 sm:$0xff]   ;;  %v6019_v49 = vld [vmem:[#allocation11 + $0x3a0] ss:$16 sps:$4 sm:$0xff]   ;;  %v6022_v50 = vld [vmem:[#allocation11 + $0x3a8] ss:$16 sps:$4 sm:$0xff]  }
 0x4c1   :  { %4072 = vmatpush1.bf16.msra.mxu0 %v5941_v56  ;;  %4158 = vmatpush1.bf16.msra.mxu1 %v5944_v57  ;;  %v6027_v51 = vld [vmem:[#allocation11 + $0x3c4] ss:$16 sps:$4 sm:$0xff]   ;;  %v6030_v31 = vld [vmem:[#allocation11 + $0x3cc] ss:$16 sps:$4 sm:$0xff]   ;;  %v6025_v52 = vld [vmem:[#allocation11 + $0x3c0] ss:$16 sps:$4 sm:$0xff]  }
 0x4c2   :  { %4103 = vmatprep.mubr.bf16.mxu0 %v3237_v55  ;;  %4189 = vmatprep.mubr.bf16.mxu1 %v3237_v55  ;;  %v6028_v54 = vld [vmem:[#allocation11 + $0x3c8] ss:$16 sps:$4 sm:$0xff]   ;;  %v6033_v55 = vld [vmem:[#allocation11 + $0x3e4] ss:$16 sps:$4 sm:$0xff]   ;;  %v6036_v56 = vld [vmem:[#allocation11 + $0x3ec] ss:$16 sps:$4 sm:$0xff]  }
 0x4c3   :  { %4073 = vmatprep.subr.bf16.mxu0 %v5949_v58  ;;  %4159 = vmatprep.subr.bf16.mxu1 %v5952_v60  ;;  %v6031_v57 = vld [vmem:[#allocation11 + $0x3e0] ss:$16 sps:$4 sm:$0xff]   ;;  %v6034_v58 = vld [vmem:[#allocation11 + $0x3e8] ss:$16 sps:$4 sm:$0xff]  }
 0x4c4   :  { %v6037_v60 = vld [vmem:[#allocation13 + $0x40] sm:$0xff]  }
 0x4c5   :  { %4074 = vmatpush1.bf16.msra.mxu0 %v5947_v61  ;;  %4160 = vmatpush1.bf16.msra.mxu1 %v5950_v62  ;;  %v6038_v61 = vld [vmem:[#allocation13 + $0xc0] sm:$0xff]  }
 0x4c6   :  { %4075 = vmatprep.subr.bf16.mxu0 %v5955_v63  ;;  %4161 = vmatprep.subr.bf16.mxu1 %v5958_v0  ;;  %v6039_v62 = vld [vmem:[#allocation13] sm:$0xff]   ;;  %v6041_v0 = vld [vmem:[#allocation13 + $0x48] sm:$0xff]  }
 0x4c7   :  { %v6040_v63 = vld [vmem:[#allocation13 + $0x80] sm:$0xff]  }
 0x4c9   :  { %4076 = vmatpush1.bf16.msra.mxu0 %v5953_v1  ;;  %4162 = vmatpush1.bf16.msra.mxu1 %v5956_v2  ;;  %v6042_v1 = vld [vmem:[#allocation13 + $0xc8] sm:$0xff]  }
 0x4ca   :  { %4077 = vmatprep.subr.bf16.mxu0 %v5961_v3  ;;  %4163 = vmatprep.subr.bf16.mxu1 %v5964_v4  ;;  %v6043_v2 = vld [vmem:[#allocation13 + $0x8] sm:$0xff]   ;;  %v6045_v4 = vld [vmem:[#allocation13 + $0x50] sm:$0xff]  }
 0x4cb   :  { %v6044_v3 = vld [vmem:[#allocation13 + $0x88] sm:$0xff]  }
 0x4cd   :  { %4078 = vmatpush1.bf16.msra.mxu0 %v5959_v5  ;;  %4164 = vmatpush1.bf16.msra.mxu1 %v5962_v6  ;;  %v6046_v5 = vld [vmem:[#allocation13 + $0xd0] sm:$0xff]  }
 0x4ce   :  { %4079 = vmatprep.subr.bf16.mxu0 %v5967_v59  ;;  %4165 = vmatprep.subr.bf16.mxu1 %v5970_v7  ;;  %v6047_v6 = vld [vmem:[#allocation13 + $0x10] sm:$0xff]   ;;  %v6049_v7 = vld [vmem:[#allocation13 + $0x58] sm:$0xff]  }
 0x4cf   :  { %v6048_v59 = vld [vmem:[#allocation13 + $0x90] sm:$0xff]  }
 0x4d1   :  { %4080 = vmatpush1.bf16.msra.mxu0 %v5965_v9  ;;  %4166 = vmatpush1.bf16.msra.mxu1 %v5968_v10  ;;  %v6050_v9 = vld [vmem:[#allocation13 + $0xd8] sm:$0xff]  }
 0x4d2   :  { %4081 = vmatprep.subr.bf16.mxu0 %v5973_v11  ;;  %4167 = vmatprep.subr.bf16.mxu1 %v5976_v12  ;;  %v6051_v10 = vld [vmem:[#allocation13 + $0x18] sm:$0xff]   ;;  %v6053_v11 = vld [vmem:[#allocation13 + $0x60] sm:$0xff]  }
 0x4d3   :  { %v6054_v12 = vld [vmem:[#allocation13 + $0xe0] sm:$0xff]  }
 0x4d5   :  { %4082 = vmatpush1.bf16.msra.mxu0 %v5971_v13  ;;  %4168 = vmatpush1.bf16.msra.mxu1 %v5974_v14  ;;  %v6055_v13 = vld [vmem:[#allocation13 + $0x20] sm:$0xff]  }
 0x4d6   :  { %4083 = vmatprep.subr.bf16.mxu0 %v5979_v15  ;;  %4169 = vmatprep.subr.bf16.mxu1 %v5982_v16  ;;  %v6056_v14 = vld [vmem:[#allocation13 + $0xa0] sm:$0xff]   ;;  %v6057_v15 = vld [vmem:[#allocation13 + $0x68] sm:$0xff]  }
 0x4d7   :  { %v6058_v16 = vld [vmem:[#allocation13 + $0xe8] sm:$0xff]  }
 0x4d9   :  { %4084 = vmatpush1.bf16.msra.mxu0 %v5977_v19  ;;  %4170 = vmatpush1.bf16.msra.mxu1 %v5980_v21  ;;  %v6059_v19 = vld [vmem:[#allocation13 + $0x28] sm:$0xff]  }
 0x4da   :  { %4085 = vmatprep.subr.bf16.mxu0 %v5985_v23  ;;  %4171 = vmatprep.subr.bf16.mxu1 %v5988_v24  ;;  %v6060_v21 = vld [vmem:[#allocation13 + $0xa8] sm:$0xff]   ;;  %v6061_v23 = vld [vmem:[#allocation13 + $0x70] sm:$0xff]  }
 0x4db   :  { %v6062_v24 = vld [vmem:[#allocation13 + $0xf0] sm:$0xff]  }
 0x4dd   :  { %4086 = vmatpush1.bf16.msra.mxu0 %v5983_v25  ;;  %4172 = vmatpush1.bf16.msra.mxu1 %v5986_v26  ;;  %v6063_v25 = vld [vmem:[#allocation13 + $0x30] sm:$0xff]  }
 0x4de   :  { %4087 = vmatprep.subr.bf16.mxu0 %v5991_v27  ;;  %4173 = vmatprep.subr.bf16.mxu1 %v5994_v28  ;;  %v6064_v26 = vld [vmem:[#allocation13 + $0xb0] sm:$0xff]   ;;  %v6065_v27 = vld [vmem:[#allocation13 + $0x78] sm:$0xff]  }
 0x4df   :  { %v6066_v28 = vld [vmem:[#allocation13 + $0xf8] sm:$0xff]  }
 0x4e1   :  { %4088 = vmatpush1.bf16.msra.mxu0 %v5989_v29  ;;  %4174 = vmatpush1.bf16.msra.mxu1 %v5992_v30  ;;  %v6067_v29 = vld [vmem:[#allocation13 + $0x38] sm:$0xff]  }
 0x4e2   :  { %4089 = vmatprep.subr.bf16.mxu0 %v5997_v32  ;;  %4175 = vmatprep.subr.bf16.mxu1 %v6000_v33  ;;  %v6068_v30 = vld [vmem:[#allocation13 + $0xb8] sm:$0xff]   ;;  %v3366_v32 = vld [vmem:[%s6538_s10] sm:$0xf] }
 0x4e3   :  { %v3371_v33 = vrot.slane %v3366_v32, %v6454_v17 }
 0x4e5   :  { %4090 = vmatpush1.bf16.msra.mxu0 %v5995_v8  ;;  %4176 = vmatpush1.bf16.msra.mxu1 %v5998_v34  ;;  %v3379_v8 = vrot.slane %v3366_v32, %v6459_v20  ;;  %v3375_v34 = vrot.slane %v3366_v32, %v6456_v18 }
 0x4e6   :  { %4091 = vmatprep.subr.bf16.mxu0 %v6003_v35  ;;  %4177 = vmatprep.subr.bf16.mxu1 %v6006_v36  ;;  %v3383_v35 = vrot.slane %v3366_v32, %v6462_v22 }
 0x4e9   :  { %4092 = vmatpush1.bf16.msra.mxu0 %v6001_v37  ;;  %4178 = vmatpush1.bf16.msra.mxu1 %v6004_v38 }
 0x4ea   :  { %4093 = vmatprep.subr.bf16.mxu0 %v6009_v39  ;;  %4179 = vmatprep.subr.bf16.mxu1 %v6012_v40 }
 0x4ed   :  { %4094 = vmatpush1.bf16.msra.mxu0 %v6007_v41  ;;  %4180 = vmatpush1.bf16.msra.mxu1 %v6010_v42 }
 0x4ee   :  { %4095 = vmatprep.subr.bf16.mxu0 %v6015_v43  ;;  %4181 = vmatprep.subr.bf16.mxu1 %v6018_v44 }
 0x4f1   :  { %4096 = vmatpush1.bf16.msra.mxu0 %v6013_v45  ;;  %4182 = vmatpush1.bf16.msra.mxu1 %v6016_v46 }
 0x4f2   :  { %4097 = vmatprep.subr.bf16.mxu0 %v6021_v47  ;;  %4183 = vmatprep.subr.bf16.mxu1 %v6024_v48 }
 0x4f5   :  { %4098 = vmatpush1.bf16.msra.mxu0 %v6019_v49  ;;  %4184 = vmatpush1.bf16.msra.mxu1 %v6022_v50 }
 0x4f6   :  { %4099 = vmatprep.subr.bf16.mxu0 %v6027_v51  ;;  %4185 = vmatprep.subr.bf16.mxu1 %v6030_v31 }
 0x4f9   :  { %4100 = vmatpush1.bf16.msra.mxu0 %v6025_v52  ;;  %4186 = vmatpush1.bf16.msra.mxu1 %v6028_v54 }
 0x4fa   :  { %4101 = vmatprep.subr.bf16.mxu0 %v6033_v55  ;;  %4187 = vmatprep.subr.bf16.mxu1 %v6036_v56 }
 0x4fd   :  { %4102 = vmatpush1.bf16.msra.mxu0 %v6031_v57  ;;  %4188 = vmatpush1.bf16.msra.mxu1 %v6034_v58 }
 0x4fe   :  { %5134 = vmatprep.subr.bf16.mxu0 %v6037_v60  ;;  %5156 = vmatprep.subr.bf16.mxu1 %v6038_v61 }
 0x500   :  { %4104 = vmatmul.mubr.bf16.vlgmr.msra.gmra.mrb[16].mxu0 %v6499_v53  ;;  %4190 = vmatmul.mubr.bf16.vlgmr.msra.gmra.mrb[16].mxu1 %v6499_v53  ;;  %v6052_v53 = vld [vmem:[#allocation13 + $0x98] sm:$0xff]  }
 0x501   :  { %5135 = vmatpush3.bf16.msra.mxu0 %v6039_v62  ;;  %5157 = vmatpush3.bf16.msra.mxu1 %v6040_v63  ;;  %v5101_v63 = vld [vmem:[%s6540_s12] ss:$0 sm:$0xff]  ;;  %s6223_s12 = scalar_lea.vmem %s4565_s26, 256 }
 0x502   :  { %5136 = vmatprep.subr.bf16.mxu0 %v6041_v0  ;;  %5158 = vmatprep.subr.bf16.mxu1 %v6042_v1  ;;  %p6224_p0 = scmp.ne.s32.totalorder %s4565_s26, %s6223_s12  ;;  %p6229_p2 = scmp.lt.s32.totalorder %s6223_s12, %s6223_s12 }
 0x504   :  { %p6230_p3 = por %p6229_p2, %p6228_p1 }
 0x505   :  { %5137 = vmatpush3.bf16.msra.mxu0 %v6043_v2  ;;  %5159 = vmatpush3.bf16.msra.mxu1 %v6044_v3 }
 0x506   :  { %5138 = vmatprep.subr.bf16.mxu0 %v6045_v4  ;;  %5160 = vmatprep.subr.bf16.mxu1 %v6046_v5  ;;  %p6231_p4 = pnand %p6230_p3, %p6224_p0 }
 0x509   :  { %5139 = vmatpush3.bf16.msra.mxu0 %v6047_v6  ;;  %5161 = vmatpush3.bf16.msra.mxu1 %v6048_v59 }
 0x50a   :  { %5140 = vmatprep.subr.bf16.mxu0 %v6049_v7  ;;  %5162 = vmatprep.subr.bf16.mxu1 %v6050_v9 }
 0x50d   :  { %5141 = vmatpush3.bf16.msra.mxu0 %v6051_v10  ;;  %5163 = vmatpush3.bf16.msra.mxu1 %v6052_v53 }
 0x50e   :  { %5142 = vmatprep.subr.bf16.mxu0 %v6053_v11  ;;  %5164 = vmatprep.subr.bf16.mxu1 %v6054_v12 }
 0x511   :  { %5143 = vmatpush3.bf16.msra.mxu0 %v6055_v13  ;;  %5165 = vmatpush3.bf16.msra.mxu1 %v6056_v14 }
 0x512   :  { %5144 = vmatprep.subr.bf16.mxu0 %v6057_v15  ;;  %5166 = vmatprep.subr.bf16.mxu1 %v6058_v16 }
 0x515   :  { %5145 = vmatpush3.bf16.msra.mxu0 %v6059_v19  ;;  %5167 = vmatpush3.bf16.msra.mxu1 %v6060_v21 }
 0x516   :  { %5146 = vmatprep.subr.bf16.mxu0 %v6061_v23  ;;  %5168 = vmatprep.subr.bf16.mxu1 %v6062_v24 }
 0x519   :  { %5147 = vmatpush3.bf16.msra.mxu0 %v6063_v25  ;;  %5169 = vmatpush3.bf16.msra.mxu1 %v6064_v26 }
 0x51a   :  { %5148 = vmatprep.subr.bf16.mxu0 %v6065_v27  ;;  %5170 = vmatprep.subr.bf16.mxu1 %v6066_v28 }
 0x51d   :  { %5149 = vmatpush3.bf16.msra.mxu0 %v6067_v29  ;;  %5171 = vmatpush3.bf16.msra.mxu1 %v6068_v30 }
 0x5d3   :  { %v4105_v36 = vpop.f32.mrb[16].mxu0  ;;  %v4191_v37 = vpop.f32.mrb[16].mxu1 }
 0x5d4   :  { %v5202_v38 = vadd.f32 %v4105_v36, %v3371_v33  ;;  %v5206_v39 = vadd.f32 %v4191_v37, %v3379_v8  ;;  %v4107_v40 = vpop.f32.mrb[17].mxu0  ;;  %v4193_v41 = vpop.f32.mrb[17].mxu1 }
 0x5d5   :  { %v5203_v42 = vadd.f32 %v4107_v40, %v3375_v34  ;;  %v5207_v43 = vadd.f32 %v4193_v41, %v3383_v35  ;;  %v4109_v44 = vpop.f32.mrb[18].mxu0  ;;  %v4195_v45 = vpop.f32.mrb[18].mxu1 }
 0x5d6   :  { %v5204_v46 = vadd.f32 %v4109_v44, %v3371_v33  ;;  %v5208_v47 = vadd.f32 %v4195_v45, %v3379_v8  ;;  %v4111_v48 = vpop.f32.mrb[19].mxu0  ;;  %v4197_v17 = vpop.f32.mrb[19].mxu1  ;;  %v4200_v50 = vmax.f32 %v5202_v38, 0.0  ;;  %v4202_v18 = vmax.f32 %v5206_v39, 0.0 }
 0x5d7   :  { %v5205_v49 = vadd.f32 %v4111_v48, %v3375_v34  ;;  %v5209_v20 = vadd.f32 %v4197_v17, %v3383_v35  ;;  %v4201_v31 = vmax.f32 %v5203_v42, 0.0  ;;  %v4203_v52 = vmax.f32 %v5207_v43, 0.0 }
 0x5d8   :  { %v4204_v51 = vmax.f32 %v5204_v46, 0.0  ;;  %v4206_v22 = vmax.f32 %v5208_v47, 0.0 }
 0x5d9   :  { %v4205_v54 = vmax.f32 %v5205_v49, 0.0  ;;  %v4207_v55 = vmax.f32 %v5209_v20, 0.0 }
 0x5da   :  { %v4208_v56 = vpack.c.bf16 %v4204_v51, %v4200_v50  ;;  %v4210_v57 = vpack.c.bf16 %v4206_v22, %v4202_v18 }
 0x5db   :  { %v4209_v58 = vpack.c.bf16 %v4205_v54, %v4201_v31  ;;  %v4211_v60 = vpack.c.bf16 %v4207_v55, %v4203_v52 }
 0x5dd   :  { %4507 = vmatprep.mubr.bf16.mxu0 %v4209_v58  ;;  %4548 = vmatprep.mubr.bf16.mxu1 %v4211_v60 }
 0x5de   :  { %4508 = vmatmul.mubr.bf16.vlgmr.msra.gmra.mrb[20].mxu0 %v4208_v56  ;;  %4549 = vmatmul.mubr.bf16.vlgmr.msra.gmra.mrb[20].mxu1 %v4210_v57 }
 0x6b1   :  { %v5150_v61 = vpop.f32.mrb[20].mxu0  ;;  %v5172_v62 = vpop.f32.mrb[20].mxu1 }
 0x6b2   :  { %v5151_v0 = vpop.f32.mrb[21].mxu0  ;;  %v5173_v1 = vpop.f32.mrb[21].mxu1 }
 0x6b3   :  { %v5152_v2 = vadd.f32 %v5151_v0, %v5150_v61  ;;  %v5174_v3 = vadd.f32 %v5173_v1, %v5172_v62  ;;  %v5153_v4 = vpop.f32.mrb[22].mxu0  ;;  %v5175_v5 = vpop.f32.mrb[22].mxu1 }
 0x6b4   :  { %v5154_v6 = vpop.f32.mrb[23].mxu0  ;;  %v5176_v59 = vpop.f32.mrb[23].mxu1 }
 0x6b5   :  { %v4510_v7 = vadd.f32 %v5152_v2, %v5101_v63  ;;  %v5155_v9 = vadd.f32 %v5154_v6, %v5153_v4  ;;  %v5177_v10 = vadd.f32 %v5176_v59, %v5175_v5 }
 0x6b7   :  { %v4551_v53 = vadd.f32 %v5174_v3, %v4510_v7  ;;  %v4513_v11 = vadd.f32 %v5155_v9, %v5101_v63 }
 0x6b9   :  { %4557 = vst [vmem:[#allocation14] sm:$0xff] %v4551_v53  ;;  %v4554_v12 = vadd.f32 %v5177_v10, %v4513_v11 }
 0x6bb   :  { %4558 = vst [vmem:[#allocation14 + $0x8] sm:$0xff] %v4554_v12 }
 0x6bc   :  { %6234 = shalt.err (!%p6231_p4)
}
 0x6bd   :  { %s6235_s21 = scalar_lea.hbm %s6541_s13, 256 }
 0x6be   :  { %p6236_p5 = scmp.ne.s32.totalorder %s6541_s13, %s6235_s21  ;;  %p6239_p6 = scmp.lt.u32.totalorder %s6235_s21, %s6541_s13 }
 0x6c0   :  { %p6241_p7 = pnand %p6239_p6, %p6236_p5 }
 0x6c2   :  { %6244 = shalt.err (!%p6241_p7)
}
 0x6c3   :  { %4570 = dma.vmem_to_hbm [thread:$0]  %s4565_s26, 256, %s6541_s13, [#allocation4], %s6261_s9, %s6261_s9, %s6262_s25  }
 0x6c4   :  { %6253 = dma.done.wait [#allocation4], 256  }
 0x6c5   :  { %6254 = vsyncadd [#allocation4], 4294967040 }
 0x6c6   :  { %4574 = vsyncpa [#allocation3], 1 }
 0x6c7   :  { %4575 = vsyncpa [#allocation6], 1 }
 0x6c8   :  { %4576 = vsyncpa [#allocation9], 1 }
 0x6c9   :  { %4577 = vsyncpa [#allocation12], 1 }
 0x6ca   :  { %4578 = vsyncpa [#allocation4], 1 }

// kernel: tpu_custom_call.1
= control target key start
LH: loop header
LB: loop body
LE: loop exit
PB: predicated region body
PF: predicated region fallthrough
CT: control target
= control target key end

     0   :  { %18 = vsyncpa [#allocation3], 0  ;;  %s6528_s0 = inlined_call_operand.hbm [shape: f32[16,32], index: 0, kind: input, shape index: {}]   ;;  %s6529_s1 = inlined_call_operand.hbm [shape: bf16[32,512], index: 1, kind: input, shape index: {}]   ;;  %s6530_s2 = inlined_call_operand.vmem [shape: f32[1,512], index: 2, kind: input, shape index: {}]   ;;  %s6531_s3 = inlined_call_operand.hbm [shape: bf16[512,512], index: 3, kind: input, shape index: {}]   ;;  %s6532_s4 = inlined_call_operand.vmem [shape: f32[1,512], index: 4, kind: input, shape index: {}]   ;;  %s6533_s5 = inlined_call_operand.hbm [shape: bf16[512,512], index: 5, kind: input, shape index: {}]   ;;  %s6534_s6 = inlined_call_operand.vmem [shape: f32[1,512], index: 6, kind: input, shape index: {}]   ;;  %s6535_s7 = inlined_call_operand.hbm [shape: bf16[512,512], index: 7, kind: input, shape index: {}]   ;;  %s6536_s8 = inlined_call_operand.vmem [shape: f32[1,512], index: 8, kind: input, shape index: {}]   ;;  %s6537_s9 = inlined_call_operand.hbm [shape: bf16[512,512], index: 9, kind: input, shape index: {}]   ;;  %s6538_s10 = inlined_call_operand.vmem [shape: f32[1,512], index: 10, kind: input, shape index: {}]   ;;  %s6539_s11 = inlined_call_operand.hbm [shape: bf16[512,128], index: 11, kind: input, shape index: {}]   ;;  %s6540_s12 = inlined_call_operand.vmem [shape: f32[1,128], index: 12, kind: input, shape index: {}]   ;;  %s6541_s13 = inlined_call_operand.hbm [shape: f32[16,128], index: 13, kind: output, shape index: {}]  }
   0x1   :  { %19 = vsyncpa [#allocation6], 0 }
   0x2   :  { %20 = vsyncpa [#allocation9], 0 }
   0x3   :  { %21 = vsyncpa [#allocation12], 0 }
   0x4   :  { %22 = vsyncpa [#allocation4], 0  ;;  %s6255_s25 = smov [#allocation5]   ;;  %s6069_s29 = scalar_lea.hbm %s6529_s1, 1024 }
   0x5   :  { %s40_s26 = sshll.u32 %s6255_s25, 4  ;;  %p6070_p0 = scmp.ne.s32.totalorder %s6529_s1, %s6069_s29  ;;  %s41_s26 = int_to_ptr.vmem [resolvable:$true] %s40_s26 }
   0x6   :  { %p6073_p1 = scmp.lt.u32.totalorder %s6069_s29, %s6529_s1 }
   0x8   :  { %p6075_p2 = pnand %p6073_p1, %p6070_p0 }
   0xa   :  { %6078 = shalt.err (!%p6075_p2)
}
   0xb   :  { %s6079_s17 = scalar_lea.vmem %s41_s26, 1024  ;;  %p6084_p4 = scmp.lt.s32.totalorder %s41_s26, %s41_s26 }
   0xc   :  { %p6080_p3 = scmp.ne.s32.totalorder %s41_s26, %s6079_s17  ;;  %p6085_p5 = scmp.lt.s32.totalorder %s6079_s17, %s6079_s17 }
   0xe   :  { %p6086_p6 = por %p6085_p5, %p6084_p4 }
  0x10   :  { %p6087_p7 = pnand %p6086_p6, %p6080_p3 }
  0x12   :  { %6090 = shalt.err (!%p6087_p7)
}
  0x13   :  { %s6256_s18 = smov 256   ;;  %s6257_s19 = smov 16  }
  0x14   :  { %46 = dma.hbm_to_vmem [thread:$0]  %s6529_s1, 1024, %s41_s26, [#allocation6], %s6256_s18, %s6256_s18, %s6257_s19  }
  0x15   :  { %s6258_s22 = smov [#allocation8]   ;;  %s6259_s24 = smov [#allocation11]  }
  0x16   :  { %s68_s23 = sshll.u32 %s6258_s22, 4  ;;  %s96_s25 = sshll.u32 %s6259_s24, 4  ;;  %s69_s23 = int_to_ptr.vmem [resolvable:$true] %s68_s23  ;;  %s97_s25 = int_to_ptr.vmem [resolvable:$true] %s96_s25 }
  0x17   :  { %s6091_s29 = scalar_lea.hbm %s6533_s5, 16384 }
  0x18   :  { %p6092_p8 = scmp.ne.s32.totalorder %s6533_s5, %s6091_s29  ;;  %p6095_p9 = scmp.lt.u32.totalorder %s6091_s29, %s6533_s5 }
  0x1a   :  { %p6097_p10 = pnand %p6095_p9, %p6092_p8 }
  0x1c   :  { %6100 = shalt.err (!%p6097_p10)
}
  0x1d   :  { %s6101_s1 = scalar_lea.vmem %s69_s23, 16384  ;;  %p6106_p12 = scmp.lt.s32.totalorder %s69_s23, %s69_s23 }
  0x1e   :  { %p6102_p11 = scmp.ne.s32.totalorder %s69_s23, %s6101_s1  ;;  %p6107_p13 = scmp.lt.s32.totalorder %s6101_s1, %s6101_s1 }
  0x20   :  { %p6108_p0 = por %p6107_p13, %p6106_p12 }
  0x22   :  { %p6109_p1 = pnand %p6108_p0, %p6102_p11 }
  0x24   :  { %6112 = shalt.err (!%p6109_p1)
}
  0x25   :  { %74 = dma.hbm_to_vmem [thread:$0]  %s6533_s5, 16384, %s69_s23, [#allocation9], %s6256_s18, %s6256_s18, %s6257_s19  }
  0x26   :  { %s6113_s22 = scalar_lea.hbm %s6537_s9, 16384 }
  0x27   :  { %p6114_p2 = scmp.ne.s32.totalorder %s6537_s9, %s6113_s22  ;;  %p6117_p3 = scmp.lt.u32.totalorder %s6113_s22, %s6537_s9 }
  0x29   :  { %p6119_p4 = pnand %p6117_p3, %p6114_p2 }
  0x2b   :  { %6122 = shalt.err (!%p6119_p4)
}
  0x2c   :  { %s6123_s30 = scalar_lea.vmem %s97_s25, 16384  ;;  %p6128_p6 = scmp.lt.s32.totalorder %s97_s25, %s97_s25 }
  0x2d   :  { %p6124_p5 = scmp.ne.s32.totalorder %s97_s25, %s6123_s30  ;;  %p6129_p7 = scmp.lt.s32.totalorder %s6123_s30, %s6123_s30 }
  0x2f   :  { %p6130_p8 = por %p6129_p7, %p6128_p6 }
  0x31   :  { %p6131_p9 = pnand %p6130_p8, %p6124_p5 }
  0x33   :  { %6134 = shalt.err (!%p6131_p9)
}
  0x34   :  { %102 = dma.hbm_to_vmem [thread:$0]  %s6537_s9, 16384, %s97_s25, [#allocation12], %s6256_s18, %s6256_s18, %s6257_s19  }
  0x35   :  { %s6260_s14 = smov [#allocation2]   ;;  %s6135_s26 = scalar_lea.hbm %s6528_s0, 256 }
  0x36   :  { %s28_s15 = sshll.u32 %s6260_s14, 4  ;;  %p6136_p10 = scmp.ne.s32.totalorder %s6528_s0, %s6135_s26  ;;  %s29_s15 = int_to_ptr.vmem [resolvable:$true] %s28_s15 }
  0x37   :  { %p6139_p11 = scmp.lt.u32.totalorder %s6135_s26, %s6528_s0 }
  0x39   :  { %p6141_p12 = pnand %p6139_p11, %p6136_p10 }
  0x3b   :  { %6144 = shalt.err (!%p6141_p12)
}
  0x3c   :  { %s6145_s24 = scalar_lea.vmem %s29_s15, 256  ;;  %p6150_p0 = scmp.lt.s32.totalorder %s29_s15, %s29_s15 }
  0x3d   :  { %p6146_p13 = scmp.ne.s32.totalorder %s29_s15, %s6145_s24  ;;  %p6151_p1 = scmp.lt.s32.totalorder %s6145_s24, %s6145_s24 }
  0x3f   :  { %p6152_p2 = por %p6151_p1, %p6150_p0 }
  0x41   :  { %p6153_p3 = pnand %p6152_p2, %p6146_p13 }
  0x43   :  { %6156 = shalt.err (!%p6153_p3)
}
  0x44   :  { %s6261_s9 = smov 128   ;;  %s6262_s25 = smov 8  }
  0x45   :  { %34 = dma.hbm_to_vmem [thread:$0]  %s6528_s0, 256, %s29_s15, [#allocation3], %s6261_s9, %s6261_s9, %s6262_s25  }
  0x46   :  { %s6263_s29 = smov [#allocation7]   ;;  %s6264_s5 = smov [#allocation10]  }
  0x47   :  { %s54_s30 = sshll.u32 %s6263_s29, 4  ;;  %s82_s23 = sshll.u32 %s6264_s5, 4  ;;  %s55_s30 = int_to_ptr.vmem [resolvable:$true] %s54_s30  ;;  %s6400_s23 = int_to_ptr.vmem [resolvable:$true] %s82_s23 }
  0x48   :  { %s6157_s1 = scalar_lea.hbm %s6531_s3, 16384 }
  0x49   :  { %p6158_p4 = scmp.ne.s32.totalorder %s6531_s3, %s6157_s1  ;;  %p6161_p5 = scmp.lt.u32.totalorder %s6157_s1, %s6531_s3 }
  0x4b   :  { %p6163_p6 = pnand %p6161_p5, %p6158_p4 }
  0x4d   :  { %6166 = shalt.err (!%p6163_p6)
}
  0x4e   :  { %s6167_s0 = scalar_lea.vmem %s55_s30, 16384  ;;  %p6172_p8 = scmp.lt.s32.totalorder %s55_s30, %s55_s30 }
  0x4f   :  { %p6168_p7 = scmp.ne.s32.totalorder %s55_s30, %s6167_s0  ;;  %p6173_p9 = scmp.lt.s32.totalorder %s6167_s0, %s6167_s0 }
  0x51   :  { %p6174_p10 = por %p6173_p9, %p6172_p8 }
  0x53   :  { %p6175_p11 = pnand %p6174_p10, %p6168_p7 }
  0x55   :  { %6178 = shalt.err (!%p6175_p11)
}
  0x56   :  { %60 = dma.hbm_to_vmem [thread:$0]  %s6531_s3, 16384, %s55_s30, [#allocation6], %s6256_s18, %s6256_s18, %s6257_s19  }
  0x57   :  { %s6179_s28 = scalar_lea.hbm %s6535_s7, 16384 }
  0x58   :  { %p6180_p12 = scmp.ne.s32.totalorder %s6535_s7, %s6179_s28  ;;  %p6183_p13 = scmp.lt.u32.totalorder %s6179_s28, %s6535_s7 }
  0x5a   :  { %p6185_p0 = pnand %p6183_p13, %p6180_p12 }
  0x5c   :  { %6188 = shalt.err (!%p6185_p0)
}
  0x5d   :  { %s6189_s1 = scalar_lea.vmem %s6400_s23, 16384  ;;  %p6194_p2 = scmp.lt.s32.totalorder %s6400_s23, %s6400_s23 }
  0x5e   :  { %p6190_p1 = scmp.ne.s32.totalorder %s6400_s23, %s6189_s1  ;;  %p6195_p3 = scmp.lt.s32.totalorder %s6189_s1, %s6189_s1 }
  0x60   :  { %p6196_p4 = por %p6195_p3, %p6194_p2 }
  0x62   :  { %p6197_p5 = pnand %p6196_p4, %p6190_p1 }
  0x64   :  { %6200 = shalt.err (!%p6197_p5)
}
  0x65   :  { %88 = dma.hbm_to_vmem [thread:$0]  %s6535_s7, 16384, %s6400_s23, [#allocation9], %s6256_s18, %s6256_s18, %s6257_s19  }
  0x66   :  { %s6265_s26 = smov [#allocation13]   ;;  %s6201_s0 = scalar_lea.hbm %s6539_s11, 4096 }
  0x67   :  { %s110_s17 = sshll.u32 %s6265_s26, 4  ;;  %p6202_p6 = scmp.ne.s32.totalorder %s6539_s11, %s6201_s0  ;;  %s111_s17 = int_to_ptr.vmem [resolvable:$true] %s110_s17 }
  0x68   :  { %p6205_p7 = scmp.lt.u32.totalorder %s6201_s0, %s6539_s11 }
  0x6a   :  { %p6207_p8 = pnand %p6205_p7, %p6202_p6 }
  0x6c   :  { %6210 = shalt.err (!%p6207_p8)
}
  0x6d   :  { %s6211_s28 = scalar_lea.vmem %s111_s17, 4096  ;;  %p6216_p10 = scmp.lt.s32.totalorder %s111_s17, %s111_s17 }
  0x6e   :  { %p6212_p9 = scmp.ne.s32.totalorder %s111_s17, %s6211_s28  ;;  %p6217_p11 = scmp.lt.s32.totalorder %s6211_s28, %s6211_s28 }
  0x70   :  { %p6218_p12 = por %p6217_p11, %p6216_p10 }
  0x72   :  { %p6219_p13 = pnand %p6218_p12, %p6212_p9 }
  0x74   :  { %6222 = shalt.err (!%p6219_p13)
}
  0x75   :  { %s6266_s7 = smov 64   ;;  %s6267_s18 = smov 4  }
  0x76   :  { %116 = dma.hbm_to_vmem [thread:$0]  %s6539_s11, 4096, %s111_s17, [#allocation12], %s6266_s7, %s6266_s7, %s6267_s18  }
  0x77   :  { %6245 = dma.done.wait [#allocation3], 256  }
  0x78   :  { %6246 = vsyncadd [#allocation3], 4294967040 }
  0x79   :  { %6247 = dma.done.wait [#allocation6], 17408  }
  0x7a   :  { %6248 = vsyncadd [#allocation6], 4294949888 }
  0x7b   :  { %6249 = dma.done.wait [#allocation9], 32768  }
  0x7c   :  { %6250 = vsyncadd [#allocation9], 4294934528 }
  0x7d   :  { %6251 = dma.done.wait [#allocation12], 20480  }
  0x7e   :  { %6252 = vsyncadd [#allocation12], 4294946816  ;;  %v6268_v0 = vmov 0   ;;  %v5257_v1 = vld [vmem:[#allocation5 + $0x4] ss:$16 sps:$4 sm:$0xff]   ;;  %v142_v6 = vld [vmem:[#allocation2 + $0x8] sm:$0xff] }
  0x7f   :  { %250 = vmatprep.mubr.bf16.mxu0 %v6268_v0  ;;  %293 = vmatprep.mubr.bf16.mxu1 %v6268_v0  ;;  %v5259_v2 = vld [vmem:[#allocation5] ss:$16 sps:$4 sm:$0xff]   ;;  %v5260_v3 = vld [vmem:[#allocation5 + $0x24] ss:$16 sps:$4 sm:$0xff]   ;;  %v5263_v7 = vld [vmem:[#allocation5 + $0xc] ss:$16 sps:$4 sm:$0xff]  }
  0x80   :  { %218 = vmatprep.subr.bf16.mxu0 %v5257_v1  ;;  %v5262_v4 = vld [vmem:[#allocation5 + $0x20] ss:$16 sps:$4 sm:$0xff]   ;;  %v5265_v8 = vld [vmem:[#allocation5 + $0x8] ss:$16 sps:$4 sm:$0xff]   ;;  %v5266_v9 = vld [vmem:[#allocation5 + $0x2c] ss:$16 sps:$4 sm:$0xff]   ;;  %261 = vmatprep.subr.bf16.mxu1 %v5263_v7 }
  0x81   :  { %v141_v5 = vld [vmem:[#allocation2] sm:$0xff]  ;;  %219 = vmatpush1.bf16.msra.mxu0 %v5259_v2  ;;  %v5268_v10 = vld [vmem:[#allocation5 + $0x28] ss:$16 sps:$4 sm:$0xff]   ;;  %vm214_vm0 = vcmask 261120   ;;  %262 = vmatpush1.bf16.msra.mxu1 %v5265_v8  ;;  %v5274_v14 = vld [vmem:[#allocation7 + $0xc] ss:$16 sps:$4 sm:$0xff]  }
  0x82   :  { %220 = vmatprep.subr.bf16.mxu0 %v5260_v3  ;;  %v143_v11 = vpack.c.bf16 %v142_v6, %v141_v5  ;;  %v5269_v12 = vld [vmem:[#allocation7] ss:$16 sps:$4 sm:$0xff]   ;;  %v5271_v13 = vld [vmem:[#allocation7 + $0x4] ss:$16 sps:$4 sm:$0xff]   ;;  %263 = vmatprep.subr.bf16.mxu1 %v5266_v9  ;;  %v5272_v16 = vld [vmem:[#allocation7 + $0x8] ss:$16 sps:$4 sm:$0xff]  }
  0x83   :  { %v5277_v15 = vld [vmem:[#allocation7 + $0x24] ss:$16 sps:$4 sm:$0xff]   ;;  %v5275_v17 = vld [vmem:[#allocation7 + $0x20] ss:$16 sps:$4 sm:$0xff]   ;;  %v5280_v18 = vld [vmem:[#allocation7 + $0x2c] ss:$16 sps:$4 sm:$0xff]  }
  0x84   :  { %v5283_v19 = vld [vmem:[#allocation7 + $0x44] ss:$16 sps:$4 sm:$0xff]   ;;  %v5278_v20 = vld [vmem:[#allocation7 + $0x28] ss:$16 sps:$4 sm:$0xff]   ;;  %v5281_v21 = vld [vmem:[#allocation7 + $0x40] ss:$16 sps:$4 sm:$0xff]  }
  0x85   :  { %221 = vmatpush1.bf16.msra.mxu0 %v5262_v4  ;;  %264 = vmatpush1.bf16.msra.mxu1 %v5268_v10  ;;  %v5286_v22 = vld [vmem:[#allocation7 + $0x4c] ss:$16 sps:$4 sm:$0xff]   ;;  %v5289_v23 = vld [vmem:[#allocation7 + $0x64] ss:$16 sps:$4 sm:$0xff]   ;;  %v5284_v24 = vld [vmem:[#allocation7 + $0x48] ss:$16 sps:$4 sm:$0xff]  }
  0x86   :  { %1106 = vmatprep.subr.bf16.mxu0 %v5271_v13  ;;  %1192 = vmatprep.subr.bf16.mxu1 %v5274_v14  ;;  %v5287_v25 = vld [vmem:[#allocation7 + $0x60] ss:$16 sps:$4 sm:$0xff]   ;;  %v5292_v26 = vld [vmem:[#allocation7 + $0x6c] ss:$16 sps:$4 sm:$0xff]   ;;  %v5295_v27 = vld [vmem:[#allocation7 + $0x84] ss:$16 sps:$4 sm:$0xff]   ;;  %v154_v14 = vlaneseq }
  0x87   :  { %v5290_v28 = vld [vmem:[#allocation7 + $0x68] ss:$16 sps:$4 sm:$0xff]   ;;  %v5293_v29 = vld [vmem:[#allocation7 + $0x80] ss:$16 sps:$4 sm:$0xff]   ;;  %v5298_v30 = vld [vmem:[#allocation7 + $0x8c] ss:$16 sps:$4 sm:$0xff]  }
  0x88   :  { %4587 = vmatmul.mubr.msk.bf16.vlgmr.msra.gmra.mrb[0].mxu0 %vm214_vm0, %v143_v11  ;;  %4588 = vmatmul.mubr.msk.bf16.vlgmr.msra.gmra.mrb[0].mxu1 %vm214_vm0, %v143_v11  ;;  %v5301_v31 = vld [vmem:[#allocation7 + $0xa4] ss:$16 sps:$4 sm:$0xff]   ;;  %v5296_v32 = vld [vmem:[#allocation7 + $0x88] ss:$16 sps:$4 sm:$0xff]   ;;  %v5299_v33 = vld [vmem:[#allocation7 + $0xa0] ss:$16 sps:$4 sm:$0xff]  }
  0x89   :  { %1107 = vmatpush1.bf16.msra.mxu0 %v5269_v12  ;;  %1193 = vmatpush1.bf16.msra.mxu1 %v5272_v16  ;;  %v5304_v34 = vld [vmem:[#allocation7 + $0xac] ss:$16 sps:$4 sm:$0xff]   ;;  %v5307_v35 = vld [vmem:[#allocation7 + $0xc4] ss:$16 sps:$4 sm:$0xff]   ;;  %v5302_v36 = vld [vmem:[#allocation7 + $0xa8] ss:$16 sps:$4 sm:$0xff]  }
  0x8a   :  { %1108 = vmatprep.subr.bf16.mxu0 %v5277_v15  ;;  %1194 = vmatprep.subr.bf16.mxu1 %v5280_v18  ;;  %v5305_v37 = vld [vmem:[#allocation7 + $0xc0] ss:$16 sps:$4 sm:$0xff]   ;;  %v5310_v38 = vld [vmem:[#allocation7 + $0xcc] ss:$16 sps:$4 sm:$0xff]   ;;  %v5313_v39 = vld [vmem:[#allocation7 + $0xe4] ss:$16 sps:$4 sm:$0xff]  }
  0x8b   :  { %v5308_v40 = vld [vmem:[#allocation7 + $0xc8] ss:$16 sps:$4 sm:$0xff]   ;;  %v5311_v41 = vld [vmem:[#allocation7 + $0xe0] ss:$16 sps:$4 sm:$0xff]   ;;  %v5316_v42 = vld [vmem:[#allocation7 + $0xec] ss:$16 sps:$4 sm:$0xff]  }
  0x8c   :  { %v5319_v43 = vld [vmem:[#allocation7 + $0x104] ss:$16 sps:$4 sm:$0xff]   ;;  %v5314_v44 = vld [vmem:[#allocation7 + $0xe8] ss:$16 sps:$4 sm:$0xff]   ;;  %v5317_v45 = vld [vmem:[#allocation7 + $0x100] ss:$16 sps:$4 sm:$0xff]  }
  0x8d   :  { %1109 = vmatpush1.bf16.msra.mxu0 %v5275_v17  ;;  %1195 = vmatpush1.bf16.msra.mxu1 %v5278_v20  ;;  %v5322_v46 = vld [vmem:[#allocation7 + $0x10c] ss:$16 sps:$4 sm:$0xff]   ;;  %v5325_v47 = vld [vmem:[#allocation7 + $0x124] ss:$16 sps:$4 sm:$0xff]   ;;  %v5320_v48 = vld [vmem:[#allocation7 + $0x108] ss:$16 sps:$4 sm:$0xff]  }
  0x8e   :  { %1110 = vmatprep.subr.bf16.mxu0 %v5283_v19  ;;  %1196 = vmatprep.subr.bf16.mxu1 %v5286_v22  ;;  %v5323_v49 = vld [vmem:[#allocation7 + $0x120] ss:$16 sps:$4 sm:$0xff]   ;;  %v5328_v50 = vld [vmem:[#allocation7 + $0x12c] ss:$16 sps:$4 sm:$0xff]   ;;  %v5331_v51 = vld [vmem:[#allocation7 + $0x144] ss:$16 sps:$4 sm:$0xff]  }
  0x8f   :  { %v5326_v52 = vld [vmem:[#allocation7 + $0x128] ss:$16 sps:$4 sm:$0xff]   ;;  %v5329_v53 = vld [vmem:[#allocation7 + $0x140] ss:$16 sps:$4 sm:$0xff]   ;;  %v5334_v54 = vld [vmem:[#allocation7 + $0x14c] ss:$16 sps:$4 sm:$0xff]  }
  0x90   :  { %v5337_v55 = vld [vmem:[#allocation7 + $0x164] ss:$16 sps:$4 sm:$0xff]   ;;  %v5332_v56 = vld [vmem:[#allocation7 + $0x148] ss:$16 sps:$4 sm:$0xff]   ;;  %v5335_v57 = vld [vmem:[#allocation7 + $0x160] ss:$16 sps:$4 sm:$0xff]  }
  0x91   :  { %1111 = vmatpush1.bf16.msra.mxu0 %v5281_v21  ;;  %1197 = vmatpush1.bf16.msra.mxu1 %v5284_v24  ;;  %v5340_v58 = vld [vmem:[#allocation7 + $0x16c] ss:$16 sps:$4 sm:$0xff]   ;;  %v5343_v59 = vld [vmem:[#allocation7 + $0x184] ss:$16 sps:$4 sm:$0xff]   ;;  %v5338_v60 = vld [vmem:[#allocation7 + $0x168] ss:$16 sps:$4 sm:$0xff]  }
  0x92   :  { %1112 = vmatprep.subr.bf16.mxu0 %v5289_v23  ;;  %1198 = vmatprep.subr.bf16.mxu1 %v5292_v26  ;;  %v5341_v61 = vld [vmem:[#allocation7 + $0x180] ss:$16 sps:$4 sm:$0xff]   ;;  %v5346_v62 = vld [vmem:[#allocation7 + $0x18c] ss:$16 sps:$4 sm:$0xff]   ;;  %v5349_v63 = vld [vmem:[#allocation7 + $0x1a4] ss:$16 sps:$4 sm:$0xff]  }
  0x93   :  { %v5344_v0 = vld [vmem:[#allocation7 + $0x188] ss:$16 sps:$4 sm:$0xff]   ;;  %v5347_v1 = vld [vmem:[#allocation7 + $0x1a0] ss:$16 sps:$4 sm:$0xff]   ;;  %v5352_v2 = vld [vmem:[#allocation7 + $0x1ac] ss:$16 sps:$4 sm:$0xff]  }
  0x94   :  { %v5350_v3 = vld [vmem:[#allocation7 + $0x1a8] ss:$16 sps:$4 sm:$0xff]   ;;  %v5355_v4 = vld [vmem:[#allocation7 + $0x1c4] ss:$16 sps:$4 sm:$0xff]   ;;  %v5358_v5 = vld [vmem:[#allocation7 + $0x1cc] ss:$16 sps:$4 sm:$0xff]  }
  0x95   :  { %1113 = vmatpush1.bf16.msra.mxu0 %v5287_v25  ;;  %1199 = vmatpush1.bf16.msra.mxu1 %v5290_v28  ;;  %v5353_v6 = vld [vmem:[#allocation7 + $0x1c0] ss:$16 sps:$4 sm:$0xff]   ;;  %v5356_v7 = vld [vmem:[#allocation7 + $0x1c8] ss:$16 sps:$4 sm:$0xff]   ;;  %v5361_v8 = vld [vmem:[#allocation7 + $0x1e4] ss:$16 sps:$4 sm:$0xff]  }
  0x96   :  { %1114 = vmatprep.subr.bf16.mxu0 %v5295_v27  ;;  %1200 = vmatprep.subr.bf16.mxu1 %v5298_v30  ;;  %v5364_v9 = vld [vmem:[#allocation7 + $0x1ec] ss:$16 sps:$4 sm:$0xff]   ;;  %v5359_v10 = vld [vmem:[#allocation7 + $0x1e0] ss:$16 sps:$4 sm:$0xff]   ;;  %v5362_v11 = vld [vmem:[#allocation7 + $0x1e8] ss:$16 sps:$4 sm:$0xff]  }
  0x97   :  { %v5367_v12 = vld [vmem:[#allocation7 + $0x204] ss:$16 sps:$4 sm:$0xff]   ;;  %v5370_v13 = vld [vmem:[#allocation7 + $0x20c] ss:$16 sps:$4 sm:$0xff]   ;;  %v155_v15 = vshrl.u32 %v154_v14, 7  ;;  %s6269_s30 = smov [#allocation14]  }
  0x98   :  { %v152_v16 = vld [vmem:[%s6530_s2] sm:$0xf]  ;;  %v5404_v14 = vld [vmem:[#allocation7 + $0x2c8] ss:$16 sps:$4 sm:$0xff]   ;;  %s4564_s26 = sshll.u32 %s6269_s30, 4  ;;  %s4565_s26 = int_to_ptr.vmem [resolvable:$true] %s4564_s26 }
  0x99   :  { %1115 = vmatpush1.bf16.msra.mxu0 %v5293_v29  ;;  %1201 = vmatpush1.bf16.msra.mxu1 %v5296_v32  ;;  %v6454_v17 = vsub.s32 0, %v155_v15  ;;  %v6456_v18 = vsub.s32 1, %v155_v15  ;;  %v6459_v20 = vsub.s32 2, %v155_v15  ;;  %v6462_v22 = vsub.s32 3, %v155_v15  ;;  %v5409_v15 = vld [vmem:[#allocation7 + $0x2e4] ss:$16 sps:$4 sm:$0xff]   ;;  %p6228_p1 = scmp.lt.s32.totalorder %s4565_s26, %s4565_s26 }
  0x9a   :  { %1116 = vmatprep.subr.bf16.mxu0 %v5301_v31  ;;  %1202 = vmatprep.subr.bf16.mxu1 %v5304_v34 }
  0x9b   :  { %v157_v19 = vrot.slane %v152_v16, %v6454_v17  ;;  %v161_v21 = vrot.slane %v152_v16, %v6456_v18  ;;  %v165_v26 = vrot.slane %v152_v16, %v6459_v20  ;;  %v169_v29 = vrot.slane %v152_v16, %v6462_v22  ;;  %v5412_v16 = vld [vmem:[#allocation7 + $0x2ec] ss:$16 sps:$4 sm:$0xff]  }
  0x9d   :  { %1117 = vmatpush1.bf16.msra.mxu0 %v5299_v33  ;;  %1203 = vmatpush1.bf16.msra.mxu1 %v5302_v36 }
  0x9e   :  { %1118 = vmatprep.subr.bf16.mxu0 %v5307_v35  ;;  %1204 = vmatprep.subr.bf16.mxu1 %v5310_v38 }
  0xa1   :  { %1119 = vmatpush1.bf16.msra.mxu0 %v5305_v37  ;;  %1205 = vmatpush1.bf16.msra.mxu1 %v5308_v40  ;;  %v5365_v40 = vld [vmem:[#allocation7 + $0x200] ss:$16 sps:$4 sm:$0xff]  }
  0xa2   :  { %1120 = vmatprep.subr.bf16.mxu0 %v5313_v39  ;;  %1206 = vmatprep.subr.bf16.mxu1 %v5316_v42 }
  0xa5   :  { %1121 = vmatpush1.bf16.msra.mxu0 %v5311_v41  ;;  %1207 = vmatpush1.bf16.msra.mxu1 %v5314_v44  ;;  %v5368_v41 = vld [vmem:[#allocation7 + $0x208] ss:$16 sps:$4 sm:$0xff]  }
  0xa6   :  { %1122 = vmatprep.subr.bf16.mxu0 %v5319_v43  ;;  %1208 = vmatprep.subr.bf16.mxu1 %v5322_v46  ;;  %v5376_v46 = vld [vmem:[#allocation7 + $0x22c] ss:$16 sps:$4 sm:$0xff]  }
  0xa9   :  { %1123 = vmatpush1.bf16.msra.mxu0 %v5317_v45  ;;  %1209 = vmatpush1.bf16.msra.mxu1 %v5320_v48  ;;  %v5373_v45 = vld [vmem:[#allocation7 + $0x224] ss:$16 sps:$4 sm:$0xff]  }
  0xaa   :  { %1124 = vmatprep.subr.bf16.mxu0 %v5325_v47  ;;  %1210 = vmatprep.subr.bf16.mxu1 %v5328_v50 }
  0xad   :  { %1125 = vmatpush1.bf16.msra.mxu0 %v5323_v49  ;;  %1211 = vmatpush1.bf16.msra.mxu1 %v5326_v52 }
  0xae   :  { %1126 = vmatprep.subr.bf16.mxu0 %v5331_v51  ;;  %1212 = vmatprep.subr.bf16.mxu1 %v5334_v54  ;;  %v5371_v54 = vld [vmem:[#allocation7 + $0x220] ss:$16 sps:$4 sm:$0xff]  }
  0xb1   :  { %1127 = vmatpush1.bf16.msra.mxu0 %v5329_v53  ;;  %1213 = vmatpush1.bf16.msra.mxu1 %v5332_v56 }
  0xb2   :  { %1128 = vmatprep.subr.bf16.mxu0 %v5337_v55  ;;  %1214 = vmatprep.subr.bf16.mxu1 %v5340_v58  ;;  %v5374_v55 = vld [vmem:[#allocation7 + $0x228] ss:$16 sps:$4 sm:$0xff]   ;;  %v5382_v58 = vld [vmem:[#allocation7 + $0x24c] ss:$16 sps:$4 sm:$0xff]  }
  0xb5   :  { %1129 = vmatpush1.bf16.msra.mxu0 %v5335_v57  ;;  %1215 = vmatpush1.bf16.msra.mxu1 %v5338_v60  ;;  %v5379_v57 = vld [vmem:[#allocation7 + $0x244] ss:$16 sps:$4 sm:$0xff]  }
  0xb6   :  { %1130 = vmatprep.subr.bf16.mxu0 %v5343_v59  ;;  %1216 = vmatprep.subr.bf16.mxu1 %v5346_v62  ;;  %v5380_v62 = vld [vmem:[#allocation7 + $0x248] ss:$16 sps:$4 sm:$0xff]  }
  0xb9   :  { %1131 = vmatpush1.bf16.msra.mxu0 %v5341_v61  ;;  %1217 = vmatpush1.bf16.msra.mxu1 %v5344_v0  ;;  %v5377_v61 = vld [vmem:[#allocation7 + $0x240] ss:$16 sps:$4 sm:$0xff]   ;;  %v5388_v0 = vld [vmem:[#allocation7 + $0x26c] ss:$16 sps:$4 sm:$0xff]  }
  0xba   :  { %1132 = vmatprep.subr.bf16.mxu0 %v5349_v63  ;;  %1218 = vmatprep.subr.bf16.mxu1 %v5352_v2  ;;  %v5385_v63 = vld [vmem:[#allocation7 + $0x264] ss:$16 sps:$4 sm:$0xff]   ;;  %v5386_v2 = vld [vmem:[#allocation7 + $0x268] ss:$16 sps:$4 sm:$0xff]  }
  0xbd   :  { %1133 = vmatpush1.bf16.msra.mxu0 %v5347_v1  ;;  %1219 = vmatpush1.bf16.msra.mxu1 %v5350_v3  ;;  %v5383_v1 = vld [vmem:[#allocation7 + $0x260] ss:$16 sps:$4 sm:$0xff]   ;;  %v5391_v3 = vld [vmem:[#allocation7 + $0x284] ss:$16 sps:$4 sm:$0xff]  }
  0xbe   :  { %1134 = vmatprep.subr.bf16.mxu0 %v5355_v4  ;;  %1220 = vmatprep.subr.bf16.mxu1 %v5358_v5  ;;  %v5394_v4 = vld [vmem:[#allocation7 + $0x28c] ss:$16 sps:$4 sm:$0xff]   ;;  %v5389_v5 = vld [vmem:[#allocation7 + $0x280] ss:$16 sps:$4 sm:$0xff]  }
  0xc1   :  { %1135 = vmatpush1.bf16.msra.mxu0 %v5353_v6  ;;  %1221 = vmatpush1.bf16.msra.mxu1 %v5356_v7  ;;  %v5392_v6 = vld [vmem:[#allocation7 + $0x288] ss:$16 sps:$4 sm:$0xff]   ;;  %v5397_v7 = vld [vmem:[#allocation7 + $0x2a4] ss:$16 sps:$4 sm:$0xff]  }
  0xc2   :  { %1136 = vmatprep.subr.bf16.mxu0 %v5361_v8  ;;  %1222 = vmatprep.subr.bf16.mxu1 %v5364_v9  ;;  %v5400_v8 = vld [vmem:[#allocation7 + $0x2ac] ss:$16 sps:$4 sm:$0xff]   ;;  %v5395_v9 = vld [vmem:[#allocation7 + $0x2a0] ss:$16 sps:$4 sm:$0xff]  }
  0xc5   :  { %1137 = vmatpush1.bf16.msra.mxu0 %v5359_v10  ;;  %1223 = vmatpush1.bf16.msra.mxu1 %v5362_v11  ;;  %v5398_v10 = vld [vmem:[#allocation7 + $0x2a8] ss:$16 sps:$4 sm:$0xff]   ;;  %v5403_v11 = vld [vmem:[#allocation7 + $0x2c4] ss:$16 sps:$4 sm:$0xff]  }
  0xc6   :  { %1149 = vmatprep.subr.bf16.mxu0 %v5367_v12  ;;  %1235 = vmatprep.subr.bf16.mxu1 %v5370_v13  ;;  %v5406_v12 = vld [vmem:[#allocation7 + $0x2cc] ss:$16 sps:$4 sm:$0xff]   ;;  %v5401_v13 = vld [vmem:[#allocation7 + $0x2c0] ss:$16 sps:$4 sm:$0xff]  }
 0x15b   :  { %v252_v23 = vpop.f32.mrb[0].mxu0  ;;  %v295_v33 = vpop.f32.mrb[0].mxu1 }
 0x15c   :  { %v253_v24 = vadd.f32 %v252_v23, %v157_v19  ;;  %v254_v25 = vpop.f32.mrb[1].mxu0  ;;  %v296_v36 = vadd.f32 %v295_v33, %v165_v26  ;;  %v297_v37 = vpop.f32.mrb[1].mxu1  ;;  %v5415_v23 = vld [vmem:[#allocation7 + $0x304] ss:$16 sps:$4 sm:$0xff]   ;;  %v5425_v33 = vld [vmem:[#allocation7 + $0x340] ss:$16 sps:$4 sm:$0xff]  }
 0x15d   :  { %v255_v27 = vadd.f32 %v254_v25, %v161_v21  ;;  %v256_v28 = vpop.f32.mrb[2].mxu0  ;;  %v298_v42 = vadd.f32 %v297_v37, %v169_v29  ;;  %v299_v43 = vpop.f32.mrb[2].mxu1  ;;  %v5413_v25 = vld [vmem:[#allocation7 + $0x300] ss:$16 sps:$4 sm:$0xff]  }
 0x15e   :  { %v257_v30 = vadd.f32 %v256_v28, %v157_v19  ;;  %v258_v31 = vpop.f32.mrb[3].mxu0  ;;  %v304_v34 = vmax.f32 %v253_v24, 0.0  ;;  %v306_v47 = vmax.f32 %v296_v36, 0.0  ;;  %v300_v48 = vadd.f32 %v299_v43, %v165_v26  ;;  %v301_v49 = vpop.f32.mrb[3].mxu1  ;;  %v5407_v19 = vld [vmem:[#allocation7 + $0x2e0] ss:$16 sps:$4 sm:$0xff]  }
 0x15f   :  { %v259_v32 = vadd.f32 %v258_v31, %v161_v21  ;;  %v305_v38 = vmax.f32 %v255_v27, 0.0  ;;  %v307_v51 = vmax.f32 %v298_v42, 0.0  ;;  %v302_v52 = vadd.f32 %v301_v49, %v169_v29  ;;  %v5410_v21 = vld [vmem:[#allocation7 + $0x2e8] ss:$16 sps:$4 sm:$0xff]   ;;  %v5418_v24 = vld [vmem:[#allocation7 + $0x30c] ss:$16 sps:$4 sm:$0xff]  }
 0x160   :  { %v308_v35 = vmax.f32 %v257_v30, 0.0  ;;  %v310_v53 = vmax.f32 %v300_v48, 0.0  ;;  %v5416_v26 = vld [vmem:[#allocation7 + $0x308] ss:$16 sps:$4 sm:$0xff]   ;;  %v5421_v27 = vld [vmem:[#allocation7 + $0x324] ss:$16 sps:$4 sm:$0xff]  }
 0x161   :  { %v309_v39 = vmax.f32 %v259_v32, 0.0  ;;  %v311_v56 = vmax.f32 %v302_v52, 0.0  ;;  %v5424_v28 = vld [vmem:[#allocation7 + $0x32c] ss:$16 sps:$4 sm:$0xff]   ;;  %v5419_v29 = vld [vmem:[#allocation7 + $0x320] ss:$16 sps:$4 sm:$0xff]  }
 0x162   :  { %v312_v44 = vpack.c.bf16 %v308_v35, %v304_v34  ;;  %v6466_v59 = vpack.c.bf16 %v310_v53, %v306_v47  ;;  %v5422_v30 = vld [vmem:[#allocation7 + $0x328] ss:$16 sps:$4 sm:$0xff]   ;;  %v5427_v31 = vld [vmem:[#allocation7 + $0x344] ss:$16 sps:$4 sm:$0xff]   ;;  %v5430_v32 = vld [vmem:[#allocation7 + $0x34c] ss:$16 sps:$4 sm:$0xff]  }
 0x163   :  { %v313_v50 = vpack.c.bf16 %v309_v39, %v305_v38  ;;  %v315_v60 = vpack.c.bf16 %v311_v56, %v307_v51  ;;  %v5428_v34 = vld [vmem:[#allocation7 + $0x348] ss:$16 sps:$4 sm:$0xff]   ;;  %v5433_v35 = vld [vmem:[#allocation7 + $0x364] ss:$16 sps:$4 sm:$0xff]   ;;  %v5436_v36 = vld [vmem:[#allocation7 + $0x36c] ss:$16 sps:$4 sm:$0xff]  }
 0x164   :  { %v5431_v37 = vld [vmem:[#allocation7 + $0x360] ss:$16 sps:$4 sm:$0xff]   ;;  %v5434_v38 = vld [vmem:[#allocation7 + $0x368] ss:$16 sps:$4 sm:$0xff]   ;;  %v5439_v39 = vld [vmem:[#allocation7 + $0x384] ss:$16 sps:$4 sm:$0xff]  }
 0x165   :  { %1138 = vmatprep.mubr.bf16.mxu0 %v313_v50  ;;  %1224 = vmatprep.mubr.bf16.mxu1 %v313_v50  ;;  %v5440_v42 = vld [vmem:[#allocation7 + $0x388] ss:$16 sps:$4 sm:$0xff]   ;;  %v5445_v43 = vld [vmem:[#allocation7 + $0x3a4] ss:$16 sps:$4 sm:$0xff]   ;;  %v5454_v48 = vld [vmem:[#allocation7 + $0x3cc] ss:$16 sps:$4 sm:$0xff]  }
 0x166   :  { %1139 = vmatmul.mubr.bf16.vlgmr.msra.gmra.mrb[4].mxu0 %v312_v44  ;;  %1225 = vmatmul.mubr.bf16.vlgmr.msra.gmra.mrb[4].mxu1 %v312_v44  ;;  %v5448_v44 = vld [vmem:[#allocation7 + $0x3ac] ss:$16 sps:$4 sm:$0xff]   ;;  %v5451_v47 = vld [vmem:[#allocation7 + $0x3c4] ss:$16 sps:$4 sm:$0xff]   ;;  %v5449_v49 = vld [vmem:[#allocation7 + $0x3c0] ss:$16 sps:$4 sm:$0xff]  }
 0x167   :  { %1150 = vmatpush1.bf16.msra.mxu0 %v5365_v40  ;;  %1236 = vmatpush1.bf16.msra.mxu1 %v5368_v41  ;;  %v5442_v40 = vld [vmem:[#allocation7 + $0x38c] ss:$16 sps:$4 sm:$0xff]   ;;  %v5437_v41 = vld [vmem:[#allocation7 + $0x380] ss:$16 sps:$4 sm:$0xff]   ;;  %v5452_v50 = vld [vmem:[#allocation7 + $0x3c8] ss:$16 sps:$4 sm:$0xff]  }
 0x168   :  { %1151 = vmatprep.subr.bf16.mxu0 %v5373_v45  ;;  %1237 = vmatprep.subr.bf16.mxu1 %v5376_v46  ;;  %v5443_v45 = vld [vmem:[#allocation7 + $0x3a0] ss:$16 sps:$4 sm:$0xff]   ;;  %v5446_v46 = vld [vmem:[#allocation7 + $0x3a8] ss:$16 sps:$4 sm:$0xff]   ;;  %v5457_v51 = vld [vmem:[#allocation7 + $0x3e4] ss:$16 sps:$4 sm:$0xff]  }
 0x169   :  { %1181 = vmatprep.mubr.bf16.mxu0 %v315_v60  ;;  %1267 = vmatprep.mubr.bf16.mxu1 %v315_v60  ;;  %v5460_v52 = vld [vmem:[#allocation7 + $0x3ec] ss:$16 sps:$4 sm:$0xff]   ;;  %v5455_v53 = vld [vmem:[#allocation7 + $0x3e0] ss:$16 sps:$4 sm:$0xff]   ;;  %v5469_v60 = vld [vmem:[#allocation8 + $0x24] ss:$16 sps:$4 sm:$0xff]  }
 0x16a   :  { %v5466_v56 = vld [vmem:[#allocation8 + $0xc] ss:$16 sps:$4 sm:$0xff]  }
 0x16b   :  { %1152 = vmatpush1.bf16.msra.mxu0 %v5371_v54  ;;  %1238 = vmatpush1.bf16.msra.mxu1 %v5374_v55  ;;  %v5458_v54 = vld [vmem:[#allocation7 + $0x3e8] ss:$16 sps:$4 sm:$0xff]   ;;  %v5463_v55 = vld [vmem:[#allocation8 + $0x4] ss:$16 sps:$4 sm:$0xff]  }
 0x16c   :  { %1153 = vmatprep.subr.bf16.mxu0 %v5379_v57  ;;  %1239 = vmatprep.subr.bf16.mxu1 %v5382_v58  ;;  %v5461_v57 = vld [vmem:[#allocation8] ss:$16 sps:$4 sm:$0xff]   ;;  %v5464_v58 = vld [vmem:[#allocation8 + $0x8] ss:$16 sps:$4 sm:$0xff]  }
 0x16f   :  { %1154 = vmatpush1.bf16.msra.mxu0 %v5377_v61  ;;  %1240 = vmatpush1.bf16.msra.mxu1 %v5380_v62  ;;  %v5472_v61 = vld [vmem:[#allocation8 + $0x2c] ss:$16 sps:$4 sm:$0xff]   ;;  %v5467_v62 = vld [vmem:[#allocation8 + $0x20] ss:$16 sps:$4 sm:$0xff]  }
 0x170   :  { %1155 = vmatprep.subr.bf16.mxu0 %v5385_v63  ;;  %1241 = vmatprep.subr.bf16.mxu1 %v5388_v0  ;;  %v5470_v63 = vld [vmem:[#allocation8 + $0x28] ss:$16 sps:$4 sm:$0xff]   ;;  %v5475_v0 = vld [vmem:[#allocation8 + $0x44] ss:$16 sps:$4 sm:$0xff]  }
 0x173   :  { %1156 = vmatpush1.bf16.msra.mxu0 %v5383_v1  ;;  %1242 = vmatpush1.bf16.msra.mxu1 %v5386_v2  ;;  %v5478_v1 = vld [vmem:[#allocation8 + $0x4c] ss:$16 sps:$4 sm:$0xff]   ;;  %v5473_v2 = vld [vmem:[#allocation8 + $0x40] ss:$16 sps:$4 sm:$0xff]  }
 0x174   :  { %1157 = vmatprep.subr.bf16.mxu0 %v5391_v3  ;;  %1243 = vmatprep.subr.bf16.mxu1 %v5394_v4  ;;  %v5476_v3 = vld [vmem:[#allocation8 + $0x48] ss:$16 sps:$4 sm:$0xff]   ;;  %v5481_v4 = vld [vmem:[#allocation8 + $0x64] ss:$16 sps:$4 sm:$0xff]  }
 0x177   :  { %1158 = vmatpush1.bf16.msra.mxu0 %v5389_v5  ;;  %1244 = vmatpush1.bf16.msra.mxu1 %v5392_v6  ;;  %v5484_v5 = vld [vmem:[#allocation8 + $0x6c] ss:$16 sps:$4 sm:$0xff]   ;;  %v5479_v6 = vld [vmem:[#allocation8 + $0x60] ss:$16 sps:$4 sm:$0xff]  }
 0x178   :  { %1159 = vmatprep.subr.bf16.mxu0 %v5397_v7  ;;  %1245 = vmatprep.subr.bf16.mxu1 %v5400_v8  ;;  %v5487_v7 = vld [vmem:[#allocation8 + $0x84] ss:$16 sps:$4 sm:$0xff]   ;;  %v5490_v8 = vld [vmem:[#allocation8 + $0x8c] ss:$16 sps:$4 sm:$0xff]  }
 0x17b   :  { %1160 = vmatpush1.bf16.msra.mxu0 %v5395_v9  ;;  %1246 = vmatpush1.bf16.msra.mxu1 %v5398_v10  ;;  %v5485_v9 = vld [vmem:[#allocation8 + $0x80] ss:$16 sps:$4 sm:$0xff]   ;;  %v5488_v10 = vld [vmem:[#allocation8 + $0x88] ss:$16 sps:$4 sm:$0xff]  }
 0x17c   :  { %1161 = vmatprep.subr.bf16.mxu0 %v5403_v11  ;;  %1247 = vmatprep.subr.bf16.mxu1 %v5406_v12  ;;  %v5493_v11 = vld [vmem:[#allocation8 + $0xa4] ss:$16 sps:$4 sm:$0xff]   ;;  %v5496_v12 = vld [vmem:[#allocation8 + $0xac] ss:$16 sps:$4 sm:$0xff]  }
 0x17f   :  { %1162 = vmatpush1.bf16.msra.mxu0 %v5401_v13  ;;  %1248 = vmatpush1.bf16.msra.mxu1 %v5404_v14  ;;  %v5491_v13 = vld [vmem:[#allocation8 + $0xa0] ss:$16 sps:$4 sm:$0xff]   ;;  %v5494_v14 = vld [vmem:[#allocation8 + $0xa8] ss:$16 sps:$4 sm:$0xff]  }
 0x180   :  { %1163 = vmatprep.subr.bf16.mxu0 %v5409_v15  ;;  %1249 = vmatprep.subr.bf16.mxu1 %v5412_v16  ;;  %v5499_v15 = vld [vmem:[#allocation8 + $0xc4] ss:$16 sps:$4 sm:$0xff]   ;;  %v5502_v16 = vld [vmem:[#allocation8 + $0xcc] ss:$16 sps:$4 sm:$0xff]  }
 0x183   :  { %1164 = vmatpush1.bf16.msra.mxu0 %v5407_v19  ;;  %1250 = vmatpush1.bf16.msra.mxu1 %v5410_v21  ;;  %v5497_v19 = vld [vmem:[#allocation8 + $0xc0] ss:$16 sps:$4 sm:$0xff]   ;;  %v5500_v21 = vld [vmem:[#allocation8 + $0xc8] ss:$16 sps:$4 sm:$0xff]  }
 0x184   :  { %1165 = vmatprep.subr.bf16.mxu0 %v5415_v23  ;;  %1251 = vmatprep.subr.bf16.mxu1 %v5418_v24  ;;  %v5505_v23 = vld [vmem:[#allocation8 + $0xe4] ss:$16 sps:$4 sm:$0xff]   ;;  %v5508_v24 = vld [vmem:[#allocation8 + $0xec] ss:$16 sps:$4 sm:$0xff]  }
 0x187   :  { %1166 = vmatpush1.bf16.msra.mxu0 %v5413_v25  ;;  %1252 = vmatpush1.bf16.msra.mxu1 %v5416_v26  ;;  %v5503_v25 = vld [vmem:[#allocation8 + $0xe0] ss:$16 sps:$4 sm:$0xff]   ;;  %v5506_v26 = vld [vmem:[#allocation8 + $0xe8] ss:$16 sps:$4 sm:$0xff]  }
 0x188   :  { %1167 = vmatprep.subr.bf16.mxu0 %v5421_v27  ;;  %1253 = vmatprep.subr.bf16.mxu1 %v5424_v28  ;;  %v5511_v27 = vld [vmem:[#allocation8 + $0x104] ss:$16 sps:$4 sm:$0xff]   ;;  %v5514_v28 = vld [vmem:[#allocation8 + $0x10c] ss:$16 sps:$4 sm:$0xff]  }
 0x18b   :  { %1168 = vmatpush1.bf16.msra.mxu0 %v5419_v29  ;;  %1254 = vmatpush1.bf16.msra.mxu1 %v5422_v30  ;;  %v5509_v29 = vld [vmem:[#allocation8 + $0x100] ss:$16 sps:$4 sm:$0xff]   ;;  %v5512_v30 = vld [vmem:[#allocation8 + $0x108] ss:$16 sps:$4 sm:$0xff]  }
 0x18c   :  { %1169 = vmatprep.subr.bf16.mxu0 %v5427_v31  ;;  %1255 = vmatprep.subr.bf16.mxu1 %v5430_v32  ;;  %v5517_v31 = vld [vmem:[#allocation8 + $0x124] ss:$16 sps:$4 sm:$0xff]   ;;  %v5520_v32 = vld [vmem:[#allocation8 + $0x12c] ss:$16 sps:$4 sm:$0xff]  }
 0x18f   :  { %1170 = vmatpush1.bf16.msra.mxu0 %v5425_v33  ;;  %1256 = vmatpush1.bf16.msra.mxu1 %v5428_v34  ;;  %v5515_v33 = vld [vmem:[#allocation8 + $0x120] ss:$16 sps:$4 sm:$0xff]   ;;  %v5518_v34 = vld [vmem:[#allocation8 + $0x128] ss:$16 sps:$4 sm:$0xff]  }
 0x190   :  { %1171 = vmatprep.subr.bf16.mxu0 %v5433_v35  ;;  %1257 = vmatprep.subr.bf16.mxu1 %v5436_v36  ;;  %v5523_v35 = vld [vmem:[#allocation8 + $0x144] ss:$16 sps:$4 sm:$0xff]   ;;  %v5526_v36 = vld [vmem:[#allocation8 + $0x14c] ss:$16 sps:$4 sm:$0xff]  }
 0x193   :  { %1172 = vmatpush1.bf16.msra.mxu0 %v5431_v37  ;;  %1258 = vmatpush1.bf16.msra.mxu1 %v5434_v38  ;;  %v5521_v37 = vld [vmem:[#allocation8 + $0x140] ss:$16 sps:$4 sm:$0xff]   ;;  %v5524_v38 = vld [vmem:[#allocation8 + $0x148] ss:$16 sps:$4 sm:$0xff]  }
 0x194   :  { %1173 = vmatprep.subr.bf16.mxu0 %v5439_v39  ;;  %1259 = vmatprep.subr.bf16.mxu1 %v5442_v40  ;;  %v5529_v39 = vld [vmem:[#allocation8 + $0x164] ss:$16 sps:$4 sm:$0xff]   ;;  %v5532_v40 = vld [vmem:[#allocation8 + $0x16c] ss:$16 sps:$4 sm:$0xff]  }
 0x197   :  { %1174 = vmatpush1.bf16.msra.mxu0 %v5437_v41  ;;  %1260 = vmatpush1.bf16.msra.mxu1 %v5440_v42  ;;  %v5527_v41 = vld [vmem:[#allocation8 + $0x160] ss:$16 sps:$4 sm:$0xff]   ;;  %v5530_v42 = vld [vmem:[#allocation8 + $0x168] ss:$16 sps:$4 sm:$0xff]  }
 0x198   :  { %1175 = vmatprep.subr.bf16.mxu0 %v5445_v43  ;;  %1261 = vmatprep.subr.bf16.mxu1 %v5448_v44  ;;  %v5535_v43 = vld [vmem:[#allocation8 + $0x184] ss:$16 sps:$4 sm:$0xff]   ;;  %v5538_v44 = vld [vmem:[#allocation8 + $0x18c] ss:$16 sps:$4 sm:$0xff]  }
 0x19b   :  { %1176 = vmatpush1.bf16.msra.mxu0 %v5443_v45  ;;  %1262 = vmatpush1.bf16.msra.mxu1 %v5446_v46  ;;  %v5533_v45 = vld [vmem:[#allocation8 + $0x180] ss:$16 sps:$4 sm:$0xff]   ;;  %v5536_v46 = vld [vmem:[#allocation8 + $0x188] ss:$16 sps:$4 sm:$0xff]  }
 0x19c   :  { %1177 = vmatprep.subr.bf16.mxu0 %v5451_v47  ;;  %1263 = vmatprep.subr.bf16.mxu1 %v5454_v48  ;;  %v5541_v47 = vld [vmem:[#allocation8 + $0x1a4] ss:$16 sps:$4 sm:$0xff]   ;;  %v5544_v48 = vld [vmem:[#allocation8 + $0x1ac] ss:$16 sps:$4 sm:$0xff]  }
 0x19f   :  { %1178 = vmatpush1.bf16.msra.mxu0 %v5449_v49  ;;  %1264 = vmatpush1.bf16.msra.mxu1 %v5452_v50  ;;  %v5539_v49 = vld [vmem:[#allocation8 + $0x1a0] ss:$16 sps:$4 sm:$0xff]   ;;  %v5542_v50 = vld [vmem:[#allocation8 + $0x1a8] ss:$16 sps:$4 sm:$0xff]  }
 0x1a0   :  { %1179 = vmatprep.subr.bf16.mxu0 %v5457_v51  ;;  %1265 = vmatprep.subr.bf16.mxu1 %v5460_v52  ;;  %v5547_v51 = vld [vmem:[#allocation8 + $0x1c4] ss:$16 sps:$4 sm:$0xff]   ;;  %v5550_v52 = vld [vmem:[#allocation8 + $0x1cc] ss:$16 sps:$4 sm:$0xff]  }
 0x1a3   :  { %1180 = vmatpush1.bf16.msra.mxu0 %v5455_v53  ;;  %1266 = vmatpush1.bf16.msra.mxu1 %v5458_v54  ;;  %v5545_v53 = vld [vmem:[#allocation8 + $0x1c0] ss:$16 sps:$4 sm:$0xff]   ;;  %v5548_v54 = vld [vmem:[#allocation8 + $0x1c8] ss:$16 sps:$4 sm:$0xff]  }
 0x1a4   :  { %2080 = vmatprep.subr.bf16.mxu0 %v5463_v55  ;;  %2166 = vmatprep.subr.bf16.mxu1 %v5466_v56  ;;  %v5553_v55 = vld [vmem:[#allocation8 + $0x1e4] ss:$16 sps:$4 sm:$0xff]   ;;  %v5556_v56 = vld [vmem:[#allocation8 + $0x1ec] ss:$16 sps:$4 sm:$0xff]  }
 0x1a6   :  { %1182 = vmatmul.mubr.bf16.vlgmr.msra.gmra.mrb[4].mxu0 %v6466_v59  ;;  %1268 = vmatmul.mubr.bf16.vlgmr.msra.gmra.mrb[4].mxu1 %v6466_v59  ;;  %v5482_v59 = vld [vmem:[#allocation8 + $0x68] ss:$16 sps:$4 sm:$0xff]  }
 0x1a7   :  { %2081 = vmatpush1.bf16.msra.mxu0 %v5461_v57  ;;  %2167 = vmatpush1.bf16.msra.mxu1 %v5464_v58  ;;  %v5551_v57 = vld [vmem:[#allocation8 + $0x1e0] ss:$16 sps:$4 sm:$0xff]   ;;  %v5554_v58 = vld [vmem:[#allocation8 + $0x1e8] ss:$16 sps:$4 sm:$0xff]  }
 0x1a8   :  { %2082 = vmatprep.subr.bf16.mxu0 %v5469_v60  ;;  %2168 = vmatprep.subr.bf16.mxu1 %v5472_v61  ;;  %v5559_v60 = vld [vmem:[#allocation8 + $0x204] ss:$16 sps:$4 sm:$0xff]   ;;  %v5562_v61 = vld [vmem:[#allocation8 + $0x20c] ss:$16 sps:$4 sm:$0xff]  }
 0x1ab   :  { %2083 = vmatpush1.bf16.msra.mxu0 %v5467_v62  ;;  %2169 = vmatpush1.bf16.msra.mxu1 %v5470_v63  ;;  %v444_v62 = vld [vmem:[%s6532_s4] sm:$0xf] }
 0x1ac   :  { %2084 = vmatprep.subr.bf16.mxu0 %v5475_v0  ;;  %2170 = vmatprep.subr.bf16.mxu1 %v5478_v1  ;;  %v449_v63 = vrot.slane %v444_v62, %v6454_v17  ;;  %v457_v0 = vrot.slane %v444_v62, %v6459_v20  ;;  %v453_v1 = vrot.slane %v444_v62, %v6456_v18 }
 0x1af   :  { %2085 = vmatpush1.bf16.msra.mxu0 %v5473_v2  ;;  %2171 = vmatpush1.bf16.msra.mxu1 %v5476_v3  ;;  %v461_v2 = vrot.slane %v444_v62, %v6462_v22  ;;  %v5604_v62 = vld [vmem:[#allocation8 + $0x2ec] ss:$16 sps:$4 sm:$0xff]  }
 0x1b0   :  { %2086 = vmatprep.subr.bf16.mxu0 %v5481_v4  ;;  %2172 = vmatprep.subr.bf16.mxu1 %v5484_v5 }
 0x1b3   :  { %2087 = vmatpush1.bf16.msra.mxu0 %v5479_v6  ;;  %2173 = vmatpush1.bf16.msra.mxu1 %v5482_v59 }
 0x1b4   :  { %2088 = vmatprep.subr.bf16.mxu0 %v5487_v7  ;;  %2174 = vmatprep.subr.bf16.mxu1 %v5490_v8 }
 0x1b7   :  { %2089 = vmatpush1.bf16.msra.mxu0 %v5485_v9  ;;  %2175 = vmatpush1.bf16.msra.mxu1 %v5488_v10 }
 0x1b8   :  { %2090 = vmatprep.subr.bf16.mxu0 %v5493_v11  ;;  %2176 = vmatprep.subr.bf16.mxu1 %v5496_v12 }
 0x1bb   :  { %2091 = vmatpush1.bf16.msra.mxu0 %v5491_v13  ;;  %2177 = vmatpush1.bf16.msra.mxu1 %v5494_v14 }
 0x1bc   :  { %2092 = vmatprep.subr.bf16.mxu0 %v5499_v15  ;;  %2178 = vmatprep.subr.bf16.mxu1 %v5502_v16 }
 0x1bf   :  { %2093 = vmatpush1.bf16.msra.mxu0 %v5497_v19  ;;  %2179 = vmatpush1.bf16.msra.mxu1 %v5500_v21 }
 0x1c0   :  { %2094 = vmatprep.subr.bf16.mxu0 %v5505_v23  ;;  %2180 = vmatprep.subr.bf16.mxu1 %v5508_v24 }
 0x1c3   :  { %2095 = vmatpush1.bf16.msra.mxu0 %v5503_v25  ;;  %2181 = vmatpush1.bf16.msra.mxu1 %v5506_v26 }
 0x1c4   :  { %2096 = vmatprep.subr.bf16.mxu0 %v5511_v27  ;;  %2182 = vmatprep.subr.bf16.mxu1 %v5514_v28 }
 0x1c7   :  { %2097 = vmatpush1.bf16.msra.mxu0 %v5509_v29  ;;  %2183 = vmatpush1.bf16.msra.mxu1 %v5512_v30 }
 0x1c8   :  { %2098 = vmatprep.subr.bf16.mxu0 %v5517_v31  ;;  %2184 = vmatprep.subr.bf16.mxu1 %v5520_v32 }
 0x1cb   :  { %2099 = vmatpush1.bf16.msra.mxu0 %v5515_v33  ;;  %2185 = vmatpush1.bf16.msra.mxu1 %v5518_v34  ;;  %v5557_v34 = vld [vmem:[#allocation8 + $0x200] ss:$16 sps:$4 sm:$0xff]  }
 0x1cc   :  { %2100 = vmatprep.subr.bf16.mxu0 %v5523_v35  ;;  %2186 = vmatprep.subr.bf16.mxu1 %v5526_v36  ;;  %v5560_v35 = vld [vmem:[#allocation8 + $0x208] ss:$16 sps:$4 sm:$0xff]   ;;  %v5565_v36 = vld [vmem:[#allocation8 + $0x224] ss:$16 sps:$4 sm:$0xff]  }
 0x1cf   :  { %2101 = vmatpush1.bf16.msra.mxu0 %v5521_v37  ;;  %2187 = vmatpush1.bf16.msra.mxu1 %v5524_v38  ;;  %v5568_v37 = vld [vmem:[#allocation8 + $0x22c] ss:$16 sps:$4 sm:$0xff]   ;;  %v5563_v38 = vld [vmem:[#allocation8 + $0x220] ss:$16 sps:$4 sm:$0xff]  }
 0x1d0   :  { %2102 = vmatprep.subr.bf16.mxu0 %v5529_v39  ;;  %2188 = vmatprep.subr.bf16.mxu1 %v5532_v40  ;;  %v5566_v39 = vld [vmem:[#allocation8 + $0x228] ss:$16 sps:$4 sm:$0xff]   ;;  %v5571_v40 = vld [vmem:[#allocation8 + $0x244] ss:$16 sps:$4 sm:$0xff]  }
 0x1d3   :  { %2103 = vmatpush1.bf16.msra.mxu0 %v5527_v41  ;;  %2189 = vmatpush1.bf16.msra.mxu1 %v5530_v42  ;;  %v5574_v41 = vld [vmem:[#allocation8 + $0x24c] ss:$16 sps:$4 sm:$0xff]   ;;  %v5569_v42 = vld [vmem:[#allocation8 + $0x240] ss:$16 sps:$4 sm:$0xff]  }
 0x1d4   :  { %2104 = vmatprep.subr.bf16.mxu0 %v5535_v43  ;;  %2190 = vmatprep.subr.bf16.mxu1 %v5538_v44  ;;  %v5572_v43 = vld [vmem:[#allocation8 + $0x248] ss:$16 sps:$4 sm:$0xff]   ;;  %v5577_v44 = vld [vmem:[#allocation8 + $0x264] ss:$16 sps:$4 sm:$0xff]  }
 0x1d7   :  { %2105 = vmatpush1.bf16.msra.mxu0 %v5533_v45  ;;  %2191 = vmatpush1.bf16.msra.mxu1 %v5536_v46  ;;  %v5580_v45 = vld [vmem:[#allocation8 + $0x26c] ss:$16 sps:$4 sm:$0xff]   ;;  %v5575_v46 = vld [vmem:[#allocation8 + $0x260] ss:$16 sps:$4 sm:$0xff]  }
 0x1d8   :  { %2106 = vmatprep.subr.bf16.mxu0 %v5541_v47  ;;  %2192 = vmatprep.subr.bf16.mxu1 %v5544_v48  ;;  %v5578_v47 = vld [vmem:[#allocation8 + $0x268] ss:$16 sps:$4 sm:$0xff]   ;;  %v5583_v48 = vld [vmem:[#allocation8 + $0x284] ss:$16 sps:$4 sm:$0xff]  }
 0x1db   :  { %2107 = vmatpush1.bf16.msra.mxu0 %v5539_v49  ;;  %2193 = vmatpush1.bf16.msra.mxu1 %v5542_v50  ;;  %v5586_v49 = vld [vmem:[#allocation8 + $0x28c] ss:$16 sps:$4 sm:$0xff]   ;;  %v5581_v50 = vld [vmem:[#allocation8 + $0x280] ss:$16 sps:$4 sm:$0xff]  }
 0x1dc   :  { %2108 = vmatprep.subr.bf16.mxu0 %v5547_v51  ;;  %2194 = vmatprep.subr.bf16.mxu1 %v5550_v52  ;;  %v5584_v51 = vld [vmem:[#allocation8 + $0x288] ss:$16 sps:$4 sm:$0xff]   ;;  %v5589_v52 = vld [vmem:[#allocation8 + $0x2a4] ss:$16 sps:$4 sm:$0xff]  }
 0x1df   :  { %2109 = vmatpush1.bf16.msra.mxu0 %v5545_v53  ;;  %2195 = vmatpush1.bf16.msra.mxu1 %v5548_v54  ;;  %v5592_v53 = vld [vmem:[#allocation8 + $0x2ac] ss:$16 sps:$4 sm:$0xff]   ;;  %v5587_v54 = vld [vmem:[#allocation8 + $0x2a0] ss:$16 sps:$4 sm:$0xff]  }
 0x1e0   :  { %2110 = vmatprep.subr.bf16.mxu0 %v5553_v55  ;;  %2196 = vmatprep.subr.bf16.mxu1 %v5556_v56  ;;  %v5590_v55 = vld [vmem:[#allocation8 + $0x2a8] ss:$16 sps:$4 sm:$0xff]   ;;  %v5595_v56 = vld [vmem:[#allocation8 + $0x2c4] ss:$16 sps:$4 sm:$0xff]  }
 0x1e3   :  { %2111 = vmatpush1.bf16.msra.mxu0 %v5551_v57  ;;  %2197 = vmatpush1.bf16.msra.mxu1 %v5554_v58  ;;  %v5598_v57 = vld [vmem:[#allocation8 + $0x2cc] ss:$16 sps:$4 sm:$0xff]   ;;  %v5593_v58 = vld [vmem:[#allocation8 + $0x2c0] ss:$16 sps:$4 sm:$0xff]  }
 0x1e4   :  { %2123 = vmatprep.subr.bf16.mxu0 %v5559_v60  ;;  %2209 = vmatprep.subr.bf16.mxu1 %v5562_v61  ;;  %v5596_v60 = vld [vmem:[#allocation8 + $0x2c8] ss:$16 sps:$4 sm:$0xff]   ;;  %v5601_v61 = vld [vmem:[#allocation8 + $0x2e4] ss:$16 sps:$4 sm:$0xff]  }
 0x279   :  { %v1183_v3 = vpop.f32.mrb[4].mxu0  ;;  %v1269_v4 = vpop.f32.mrb[4].mxu1 }
 0x27a   :  { %v5178_v5 = vadd.f32 %v1183_v3, %v449_v63  ;;  %v5182_v6 = vadd.f32 %v1269_v4, %v457_v0  ;;  %v1185_v59 = vpop.f32.mrb[5].mxu0  ;;  %v1271_v7 = vpop.f32.mrb[5].mxu1  ;;  %v5605_v3 = vld [vmem:[#allocation8 + $0x300] ss:$16 sps:$4 sm:$0xff]   ;;  %v5608_v4 = vld [vmem:[#allocation8 + $0x308] ss:$16 sps:$4 sm:$0xff]  }
 0x27b   :  { %v5179_v8 = vadd.f32 %v1185_v59, %v453_v1  ;;  %v5183_v9 = vadd.f32 %v1271_v7, %v461_v2  ;;  %v1187_v10 = vpop.f32.mrb[6].mxu0  ;;  %v1273_v11 = vpop.f32.mrb[6].mxu1  ;;  %v5611_v59 = vld [vmem:[#allocation8 + $0x320] ss:$16 sps:$4 sm:$0xff]   ;;  %v5614_v7 = vld [vmem:[#allocation8 + $0x328] ss:$16 sps:$4 sm:$0xff]  }
 0x27c   :  { %v5180_v12 = vadd.f32 %v1187_v10, %v449_v63  ;;  %v5184_v13 = vadd.f32 %v1273_v11, %v457_v0  ;;  %v1189_v14 = vpop.f32.mrb[7].mxu0  ;;  %v1275_v15 = vpop.f32.mrb[7].mxu1  ;;  %v1278_v21 = vmax.f32 %v5178_v5, 0.0  ;;  %v1280_v23 = vmax.f32 %v5182_v6, 0.0  ;;  %v5599_v63 = vld [vmem:[#allocation8 + $0x2e0] ss:$16 sps:$4 sm:$0xff]  }
 0x27d   :  { %v5181_v16 = vadd.f32 %v1189_v14, %v453_v1  ;;  %v5185_v19 = vadd.f32 %v1275_v15, %v461_v2  ;;  %v1279_v26 = vmax.f32 %v5179_v8, 0.0  ;;  %v1281_v27 = vmax.f32 %v5183_v9, 0.0  ;;  %v5602_v0 = vld [vmem:[#allocation8 + $0x2e8] ss:$16 sps:$4 sm:$0xff]   ;;  %v5607_v1 = vld [vmem:[#allocation8 + $0x304] ss:$16 sps:$4 sm:$0xff]  }
 0x27e   :  { %v1282_v24 = vmax.f32 %v5180_v12, 0.0  ;;  %v1284_v25 = vmax.f32 %v5184_v13, 0.0  ;;  %v5610_v2 = vld [vmem:[#allocation8 + $0x30c] ss:$16 sps:$4 sm:$0xff]   ;;  %v5613_v5 = vld [vmem:[#allocation8 + $0x324] ss:$16 sps:$4 sm:$0xff]  }
 0x27f   :  { %v1283_v28 = vmax.f32 %v5181_v16, 0.0  ;;  %v1285_v29 = vmax.f32 %v5185_v19, 0.0  ;;  %v5616_v6 = vld [vmem:[#allocation8 + $0x32c] ss:$16 sps:$4 sm:$0xff]   ;;  %v5619_v8 = vld [vmem:[#allocation8 + $0x344] ss:$16 sps:$4 sm:$0xff]  }
 0x280   :  { %v1286_v30 = vpack.c.bf16 %v1282_v24, %v1278_v21  ;;  %v6477_v31 = vpack.c.bf16 %v1284_v25, %v1280_v23  ;;  %v5622_v9 = vld [vmem:[#allocation8 + $0x34c] ss:$16 sps:$4 sm:$0xff]   ;;  %v5617_v10 = vld [vmem:[#allocation8 + $0x340] ss:$16 sps:$4 sm:$0xff]   ;;  %v5620_v11 = vld [vmem:[#allocation8 + $0x348] ss:$16 sps:$4 sm:$0xff]  }
 0x281   :  { %v1287_v32 = vpack.c.bf16 %v1283_v28, %v1279_v26  ;;  %v1289_v33 = vpack.c.bf16 %v1285_v29, %v1281_v27  ;;  %v5625_v12 = vld [vmem:[#allocation8 + $0x364] ss:$16 sps:$4 sm:$0xff]   ;;  %v5628_v13 = vld [vmem:[#allocation8 + $0x36c] ss:$16 sps:$4 sm:$0xff]   ;;  %v5623_v14 = vld [vmem:[#allocation8 + $0x360] ss:$16 sps:$4 sm:$0xff]  }
 0x282   :  { %v5626_v15 = vld [vmem:[#allocation8 + $0x368] ss:$16 sps:$4 sm:$0xff]   ;;  %v5631_v16 = vld [vmem:[#allocation8 + $0x384] ss:$16 sps:$4 sm:$0xff]   ;;  %v5634_v19 = vld [vmem:[#allocation8 + $0x38c] ss:$16 sps:$4 sm:$0xff]  }
 0x283   :  { %2112 = vmatprep.mubr.bf16.mxu0 %v1287_v32  ;;  %2198 = vmatprep.mubr.bf16.mxu1 %v1287_v32  ;;  %v5629_v21 = vld [vmem:[#allocation8 + $0x380] ss:$16 sps:$4 sm:$0xff]   ;;  %v5632_v23 = vld [vmem:[#allocation8 + $0x388] ss:$16 sps:$4 sm:$0xff]   ;;  %v5637_v24 = vld [vmem:[#allocation8 + $0x3a4] ss:$16 sps:$4 sm:$0xff]  }
 0x284   :  { %2113 = vmatmul.mubr.bf16.vlgmr.msra.gmra.mrb[8].mxu0 %v1286_v30  ;;  %2199 = vmatmul.mubr.bf16.vlgmr.msra.gmra.mrb[8].mxu1 %v1286_v30  ;;  %v5640_v25 = vld [vmem:[#allocation8 + $0x3ac] ss:$16 sps:$4 sm:$0xff]   ;;  %v5635_v26 = vld [vmem:[#allocation8 + $0x3a0] ss:$16 sps:$4 sm:$0xff]   ;;  %v5638_v27 = vld [vmem:[#allocation8 + $0x3a8] ss:$16 sps:$4 sm:$0xff]  }
 0x285   :  { %2124 = vmatpush1.bf16.msra.mxu0 %v5557_v34  ;;  %2210 = vmatpush1.bf16.msra.mxu1 %v5560_v35  ;;  %v5643_v28 = vld [vmem:[#allocation8 + $0x3c4] ss:$16 sps:$4 sm:$0xff]   ;;  %v5646_v29 = vld [vmem:[#allocation8 + $0x3cc] ss:$16 sps:$4 sm:$0xff]   ;;  %v5641_v30 = vld [vmem:[#allocation8 + $0x3c0] ss:$16 sps:$4 sm:$0xff]  }
 0x286   :  { %2155 = vmatprep.mubr.bf16.mxu0 %v1289_v33  ;;  %2241 = vmatprep.mubr.bf16.mxu1 %v1289_v33  ;;  %v5644_v32 = vld [vmem:[#allocation8 + $0x3c8] ss:$16 sps:$4 sm:$0xff]   ;;  %v5649_v33 = vld [vmem:[#allocation8 + $0x3e4] ss:$16 sps:$4 sm:$0xff]   ;;  %v5652_v34 = vld [vmem:[#allocation8 + $0x3ec] ss:$16 sps:$4 sm:$0xff]  }
 0x287   :  { %2125 = vmatprep.subr.bf16.mxu0 %v5565_v36  ;;  %2211 = vmatprep.subr.bf16.mxu1 %v5568_v37  ;;  %v5647_v35 = vld [vmem:[#allocation8 + $0x3e0] ss:$16 sps:$4 sm:$0xff]   ;;  %v5650_v36 = vld [vmem:[#allocation8 + $0x3e8] ss:$16 sps:$4 sm:$0xff]   ;;  %v5655_v37 = vld [vmem:[#allocation10 + $0x4] ss:$16 sps:$4 sm:$0xff]  }
 0x289   :  { %2126 = vmatpush1.bf16.msra.mxu0 %v5563_v38  ;;  %2212 = vmatpush1.bf16.msra.mxu1 %v5566_v39  ;;  %v5658_v38 = vld [vmem:[#allocation10 + $0xc] ss:$16 sps:$4 sm:$0xff]   ;;  %v5653_v39 = vld [vmem:[#allocation10] ss:$16 sps:$4 sm:$0xff]  }
 0x28a   :  { %2127 = vmatprep.subr.bf16.mxu0 %v5571_v40  ;;  %2213 = vmatprep.subr.bf16.mxu1 %v5574_v41  ;;  %v5656_v40 = vld [vmem:[#allocation10 + $0x8] ss:$16 sps:$4 sm:$0xff]   ;;  %v5661_v41 = vld [vmem:[#allocation10 + $0x24] ss:$16 sps:$4 sm:$0xff]  }
 0x28d   :  { %2128 = vmatpush1.bf16.msra.mxu0 %v5569_v42  ;;  %2214 = vmatpush1.bf16.msra.mxu1 %v5572_v43  ;;  %v5664_v42 = vld [vmem:[#allocation10 + $0x2c] ss:$16 sps:$4 sm:$0xff]   ;;  %v5659_v43 = vld [vmem:[#allocation10 + $0x20] ss:$16 sps:$4 sm:$0xff]  }
 0x28e   :  { %2129 = vmatprep.subr.bf16.mxu0 %v5577_v44  ;;  %2215 = vmatprep.subr.bf16.mxu1 %v5580_v45  ;;  %v5662_v44 = vld [vmem:[#allocation10 + $0x28] ss:$16 sps:$4 sm:$0xff]   ;;  %v5667_v45 = vld [vmem:[#allocation10 + $0x44] ss:$16 sps:$4 sm:$0xff]  }
 0x291   :  { %2130 = vmatpush1.bf16.msra.mxu0 %v5575_v46  ;;  %2216 = vmatpush1.bf16.msra.mxu1 %v5578_v47  ;;  %v5670_v46 = vld [vmem:[#allocation10 + $0x4c] ss:$16 sps:$4 sm:$0xff]   ;;  %v5665_v47 = vld [vmem:[#allocation10 + $0x40] ss:$16 sps:$4 sm:$0xff]  }
 0x292   :  { %2131 = vmatprep.subr.bf16.mxu0 %v5583_v48  ;;  %2217 = vmatprep.subr.bf16.mxu1 %v5586_v49  ;;  %v5668_v48 = vld [vmem:[#allocation10 + $0x48] ss:$16 sps:$4 sm:$0xff]   ;;  %v5673_v49 = vld [vmem:[#allocation10 + $0x64] ss:$16 sps:$4 sm:$0xff]  }
 0x295   :  { %2132 = vmatpush1.bf16.msra.mxu0 %v5581_v50  ;;  %2218 = vmatpush1.bf16.msra.mxu1 %v5584_v51  ;;  %v5676_v50 = vld [vmem:[#allocation10 + $0x6c] ss:$16 sps:$4 sm:$0xff]   ;;  %v5671_v51 = vld [vmem:[#allocation10 + $0x60] ss:$16 sps:$4 sm:$0xff]  }
 0x296   :  { %2133 = vmatprep.subr.bf16.mxu0 %v5589_v52  ;;  %2219 = vmatprep.subr.bf16.mxu1 %v5592_v53  ;;  %v5679_v52 = vld [vmem:[#allocation10 + $0x84] ss:$16 sps:$4 sm:$0xff]   ;;  %v5682_v53 = vld [vmem:[#allocation10 + $0x8c] ss:$16 sps:$4 sm:$0xff]  }
 0x299   :  { %2134 = vmatpush1.bf16.msra.mxu0 %v5587_v54  ;;  %2220 = vmatpush1.bf16.msra.mxu1 %v5590_v55  ;;  %v5677_v54 = vld [vmem:[#allocation10 + $0x80] ss:$16 sps:$4 sm:$0xff]   ;;  %v5680_v55 = vld [vmem:[#allocation10 + $0x88] ss:$16 sps:$4 sm:$0xff]  }
 0x29a   :  { %2135 = vmatprep.subr.bf16.mxu0 %v5595_v56  ;;  %2221 = vmatprep.subr.bf16.mxu1 %v5598_v57  ;;  %v5685_v56 = vld [vmem:[#allocation10 + $0xa4] ss:$16 sps:$4 sm:$0xff]   ;;  %v5688_v57 = vld [vmem:[#allocation10 + $0xac] ss:$16 sps:$4 sm:$0xff]  }
 0x29d   :  { %2136 = vmatpush1.bf16.msra.mxu0 %v5593_v58  ;;  %2222 = vmatpush1.bf16.msra.mxu1 %v5596_v60  ;;  %v5683_v58 = vld [vmem:[#allocation10 + $0xa0] ss:$16 sps:$4 sm:$0xff]   ;;  %v5686_v60 = vld [vmem:[#allocation10 + $0xa8] ss:$16 sps:$4 sm:$0xff]  }
 0x29e   :  { %2137 = vmatprep.subr.bf16.mxu0 %v5601_v61  ;;  %2223 = vmatprep.subr.bf16.mxu1 %v5604_v62  ;;  %v5691_v61 = vld [vmem:[#allocation10 + $0xc4] ss:$16 sps:$4 sm:$0xff]   ;;  %v5694_v62 = vld [vmem:[#allocation10 + $0xcc] ss:$16 sps:$4 sm:$0xff]  }
 0x2a1   :  { %2138 = vmatpush1.bf16.msra.mxu0 %v5599_v63  ;;  %2224 = vmatpush1.bf16.msra.mxu1 %v5602_v0  ;;  %v5689_v63 = vld [vmem:[#allocation10 + $0xc0] ss:$16 sps:$4 sm:$0xff]   ;;  %v5692_v0 = vld [vmem:[#allocation10 + $0xc8] ss:$16 sps:$4 sm:$0xff]  }
 0x2a2   :  { %2139 = vmatprep.subr.bf16.mxu0 %v5607_v1  ;;  %2225 = vmatprep.subr.bf16.mxu1 %v5610_v2  ;;  %v5697_v1 = vld [vmem:[#allocation10 + $0xe4] ss:$16 sps:$4 sm:$0xff]   ;;  %v5700_v2 = vld [vmem:[#allocation10 + $0xec] ss:$16 sps:$4 sm:$0xff]  }
 0x2a5   :  { %2140 = vmatpush1.bf16.msra.mxu0 %v5605_v3  ;;  %2226 = vmatpush1.bf16.msra.mxu1 %v5608_v4  ;;  %v5695_v3 = vld [vmem:[#allocation10 + $0xe0] ss:$16 sps:$4 sm:$0xff]   ;;  %v5698_v4 = vld [vmem:[#allocation10 + $0xe8] ss:$16 sps:$4 sm:$0xff]  }
 0x2a6   :  { %2141 = vmatprep.subr.bf16.mxu0 %v5613_v5  ;;  %2227 = vmatprep.subr.bf16.mxu1 %v5616_v6  ;;  %v5703_v5 = vld [vmem:[#allocation10 + $0x104] ss:$16 sps:$4 sm:$0xff]   ;;  %v5706_v6 = vld [vmem:[#allocation10 + $0x10c] ss:$16 sps:$4 sm:$0xff]  }
 0x2a9   :  { %2142 = vmatpush1.bf16.msra.mxu0 %v5611_v59  ;;  %2228 = vmatpush1.bf16.msra.mxu1 %v5614_v7  ;;  %v5701_v59 = vld [vmem:[#allocation10 + $0x100] ss:$16 sps:$4 sm:$0xff]   ;;  %v5704_v7 = vld [vmem:[#allocation10 + $0x108] ss:$16 sps:$4 sm:$0xff]  }
 0x2aa   :  { %2143 = vmatprep.subr.bf16.mxu0 %v5619_v8  ;;  %2229 = vmatprep.subr.bf16.mxu1 %v5622_v9  ;;  %v5709_v8 = vld [vmem:[#allocation10 + $0x124] ss:$16 sps:$4 sm:$0xff]   ;;  %v5712_v9 = vld [vmem:[#allocation10 + $0x12c] ss:$16 sps:$4 sm:$0xff]  }
 0x2ad   :  { %2144 = vmatpush1.bf16.msra.mxu0 %v5617_v10  ;;  %2230 = vmatpush1.bf16.msra.mxu1 %v5620_v11  ;;  %v5707_v10 = vld [vmem:[#allocation10 + $0x120] ss:$16 sps:$4 sm:$0xff]   ;;  %v5710_v11 = vld [vmem:[#allocation10 + $0x128] ss:$16 sps:$4 sm:$0xff]  }
 0x2ae   :  { %2145 = vmatprep.subr.bf16.mxu0 %v5625_v12  ;;  %2231 = vmatprep.subr.bf16.mxu1 %v5628_v13  ;;  %v5715_v12 = vld [vmem:[#allocation10 + $0x144] ss:$16 sps:$4 sm:$0xff]   ;;  %v5718_v13 = vld [vmem:[#allocation10 + $0x14c] ss:$16 sps:$4 sm:$0xff]  }
 0x2b1   :  { %2146 = vmatpush1.bf16.msra.mxu0 %v5623_v14  ;;  %2232 = vmatpush1.bf16.msra.mxu1 %v5626_v15  ;;  %v5713_v14 = vld [vmem:[#allocation10 + $0x140] ss:$16 sps:$4 sm:$0xff]   ;;  %v5716_v15 = vld [vmem:[#allocation10 + $0x148] ss:$16 sps:$4 sm:$0xff]  }
 0x2b2   :  { %2147 = vmatprep.subr.bf16.mxu0 %v5631_v16  ;;  %2233 = vmatprep.subr.bf16.mxu1 %v5634_v19  ;;  %v5721_v16 = vld [vmem:[#allocation10 + $0x164] ss:$16 sps:$4 sm:$0xff]   ;;  %v5724_v19 = vld [vmem:[#allocation10 + $0x16c] ss:$16 sps:$4 sm:$0xff]  }
 0x2b5   :  { %2148 = vmatpush1.bf16.msra.mxu0 %v5629_v21  ;;  %2234 = vmatpush1.bf16.msra.mxu1 %v5632_v23  ;;  %v5719_v21 = vld [vmem:[#allocation10 + $0x160] ss:$16 sps:$4 sm:$0xff]   ;;  %v5722_v23 = vld [vmem:[#allocation10 + $0x168] ss:$16 sps:$4 sm:$0xff]  }
 0x2b6   :  { %2149 = vmatprep.subr.bf16.mxu0 %v5637_v24  ;;  %2235 = vmatprep.subr.bf16.mxu1 %v5640_v25  ;;  %v5727_v24 = vld [vmem:[#allocation10 + $0x184] ss:$16 sps:$4 sm:$0xff]   ;;  %v5730_v25 = vld [vmem:[#allocation10 + $0x18c] ss:$16 sps:$4 sm:$0xff]  }
 0x2b9   :  { %2150 = vmatpush1.bf16.msra.mxu0 %v5635_v26  ;;  %2236 = vmatpush1.bf16.msra.mxu1 %v5638_v27  ;;  %v5725_v26 = vld [vmem:[#allocation10 + $0x180] ss:$16 sps:$4 sm:$0xff]   ;;  %v5728_v27 = vld [vmem:[#allocation10 + $0x188] ss:$16 sps:$4 sm:$0xff]  }
 0x2ba   :  { %2151 = vmatprep.subr.bf16.mxu0 %v5643_v28  ;;  %2237 = vmatprep.subr.bf16.mxu1 %v5646_v29  ;;  %v5733_v28 = vld [vmem:[#allocation10 + $0x1a4] ss:$16 sps:$4 sm:$0xff]   ;;  %v5736_v29 = vld [vmem:[#allocation10 + $0x1ac] ss:$16 sps:$4 sm:$0xff]  }
 0x2bd   :  { %2152 = vmatpush1.bf16.msra.mxu0 %v5641_v30  ;;  %2238 = vmatpush1.bf16.msra.mxu1 %v5644_v32  ;;  %v5731_v30 = vld [vmem:[#allocation10 + $0x1a0] ss:$16 sps:$4 sm:$0xff]   ;;  %v5734_v32 = vld [vmem:[#allocation10 + $0x1a8] ss:$16 sps:$4 sm:$0xff]  }
 0x2be   :  { %2153 = vmatprep.subr.bf16.mxu0 %v5649_v33  ;;  %2239 = vmatprep.subr.bf16.mxu1 %v5652_v34  ;;  %v5739_v33 = vld [vmem:[#allocation10 + $0x1c4] ss:$16 sps:$4 sm:$0xff]   ;;  %v5742_v34 = vld [vmem:[#allocation10 + $0x1cc] ss:$16 sps:$4 sm:$0xff]  }
 0x2c1   :  { %2154 = vmatpush1.bf16.msra.mxu0 %v5647_v35  ;;  %2240 = vmatpush1.bf16.msra.mxu1 %v5650_v36  ;;  %v5737_v35 = vld [vmem:[#allocation10 + $0x1c0] ss:$16 sps:$4 sm:$0xff]   ;;  %v5740_v36 = vld [vmem:[#allocation10 + $0x1c8] ss:$16 sps:$4 sm:$0xff]  }
 0x2c2   :  { %3054 = vmatprep.subr.bf16.mxu0 %v5655_v37  ;;  %3140 = vmatprep.subr.bf16.mxu1 %v5658_v38  ;;  %v5745_v37 = vld [vmem:[#allocation10 + $0x1e4] ss:$16 sps:$4 sm:$0xff]   ;;  %v5748_v38 = vld [vmem:[#allocation10 + $0x1ec] ss:$16 sps:$4 sm:$0xff]  }
 0x2c4   :  { %2156 = vmatmul.mubr.bf16.vlgmr.msra.gmra.mrb[8].mxu0 %v6477_v31  ;;  %2242 = vmatmul.mubr.bf16.vlgmr.msra.gmra.mrb[8].mxu1 %v6477_v31  ;;  %v5674_v31 = vld [vmem:[#allocation10 + $0x68] ss:$16 sps:$4 sm:$0xff]  }
 0x2c5   :  { %3055 = vmatpush1.bf16.msra.mxu0 %v5653_v39  ;;  %3141 = vmatpush1.bf16.msra.mxu1 %v5656_v40  ;;  %v5743_v39 = vld [vmem:[#allocation10 + $0x1e0] ss:$16 sps:$4 sm:$0xff]   ;;  %v5746_v40 = vld [vmem:[#allocation10 + $0x1e8] ss:$16 sps:$4 sm:$0xff]  }
 0x2c6   :  { %3056 = vmatprep.subr.bf16.mxu0 %v5661_v41  ;;  %3142 = vmatprep.subr.bf16.mxu1 %v5664_v42  ;;  %v5751_v41 = vld [vmem:[#allocation10 + $0x204] ss:$16 sps:$4 sm:$0xff]   ;;  %v5754_v42 = vld [vmem:[#allocation10 + $0x20c] ss:$16 sps:$4 sm:$0xff]  }
 0x2c9   :  { %3057 = vmatpush1.bf16.msra.mxu0 %v5659_v43  ;;  %3143 = vmatpush1.bf16.msra.mxu1 %v5662_v44  ;;  %v1418_v43 = vld [vmem:[%s6534_s6] sm:$0xf] }
 0x2ca   :  { %3058 = vmatprep.subr.bf16.mxu0 %v5667_v45  ;;  %3144 = vmatprep.subr.bf16.mxu1 %v5670_v46  ;;  %v1423_v44 = vrot.slane %v1418_v43, %v6454_v17  ;;  %v1431_v45 = vrot.slane %v1418_v43, %v6459_v20  ;;  %v1427_v46 = vrot.slane %v1418_v43, %v6456_v18 }
 0x2cd   :  { %3059 = vmatpush1.bf16.msra.mxu0 %v5665_v47  ;;  %3145 = vmatpush1.bf16.msra.mxu1 %v5668_v48  ;;  %v1435_v47 = vrot.slane %v1418_v43, %v6462_v22  ;;  %v5796_v43 = vld [vmem:[#allocation10 + $0x2ec] ss:$16 sps:$4 sm:$0xff]  }
 0x2ce   :  { %3060 = vmatprep.subr.bf16.mxu0 %v5673_v49  ;;  %3146 = vmatprep.subr.bf16.mxu1 %v5676_v50 }
 0x2d1   :  { %3061 = vmatpush1.bf16.msra.mxu0 %v5671_v51  ;;  %3147 = vmatpush1.bf16.msra.mxu1 %v5674_v31 }
 0x2d2   :  { %3062 = vmatprep.subr.bf16.mxu0 %v5679_v52  ;;  %3148 = vmatprep.subr.bf16.mxu1 %v5682_v53 }
 0x2d5   :  { %3063 = vmatpush1.bf16.msra.mxu0 %v5677_v54  ;;  %3149 = vmatpush1.bf16.msra.mxu1 %v5680_v55 }
 0x2d6   :  { %3064 = vmatprep.subr.bf16.mxu0 %v5685_v56  ;;  %3150 = vmatprep.subr.bf16.mxu1 %v5688_v57 }
 0x2d9   :  { %3065 = vmatpush1.bf16.msra.mxu0 %v5683_v58  ;;  %3151 = vmatpush1.bf16.msra.mxu1 %v5686_v60 }
 0x2da   :  { %3066 = vmatprep.subr.bf16.mxu0 %v5691_v61  ;;  %3152 = vmatprep.subr.bf16.mxu1 %v5694_v62 }
 0x2dd   :  { %3067 = vmatpush1.bf16.msra.mxu0 %v5689_v63  ;;  %3153 = vmatpush1.bf16.msra.mxu1 %v5692_v0 }
 0x2de   :  { %3068 = vmatprep.subr.bf16.mxu0 %v5697_v1  ;;  %3154 = vmatprep.subr.bf16.mxu1 %v5700_v2 }
 0x2e1   :  { %3069 = vmatpush1.bf16.msra.mxu0 %v5695_v3  ;;  %3155 = vmatpush1.bf16.msra.mxu1 %v5698_v4 }
 0x2e2   :  { %3070 = vmatprep.subr.bf16.mxu0 %v5703_v5  ;;  %3156 = vmatprep.subr.bf16.mxu1 %v5706_v6 }
 0x2e5   :  { %3071 = vmatpush1.bf16.msra.mxu0 %v5701_v59  ;;  %3157 = vmatpush1.bf16.msra.mxu1 %v5704_v7 }
 0x2e6   :  { %3072 = vmatprep.subr.bf16.mxu0 %v5709_v8  ;;  %3158 = vmatprep.subr.bf16.mxu1 %v5712_v9 }
 0x2e9   :  { %3073 = vmatpush1.bf16.msra.mxu0 %v5707_v10  ;;  %3159 = vmatpush1.bf16.msra.mxu1 %v5710_v11  ;;  %v5749_v11 = vld [vmem:[#allocation10 + $0x200] ss:$16 sps:$4 sm:$0xff]  }
 0x2ea   :  { %3074 = vmatprep.subr.bf16.mxu0 %v5715_v12  ;;  %3160 = vmatprep.subr.bf16.mxu1 %v5718_v13  ;;  %v5752_v12 = vld [vmem:[#allocation10 + $0x208] ss:$16 sps:$4 sm:$0xff]   ;;  %v5757_v13 = vld [vmem:[#allocation10 + $0x224] ss:$16 sps:$4 sm:$0xff]  }
 0x2ed   :  { %3075 = vmatpush1.bf16.msra.mxu0 %v5713_v14  ;;  %3161 = vmatpush1.bf16.msra.mxu1 %v5716_v15  ;;  %v5760_v14 = vld [vmem:[#allocation10 + $0x22c] ss:$16 sps:$4 sm:$0xff]   ;;  %v5755_v15 = vld [vmem:[#allocation10 + $0x220] ss:$16 sps:$4 sm:$0xff]  }
 0x2ee   :  { %3076 = vmatprep.subr.bf16.mxu0 %v5721_v16  ;;  %3162 = vmatprep.subr.bf16.mxu1 %v5724_v19  ;;  %v5758_v16 = vld [vmem:[#allocation10 + $0x228] ss:$16 sps:$4 sm:$0xff]   ;;  %v5763_v19 = vld [vmem:[#allocation10 + $0x244] ss:$16 sps:$4 sm:$0xff]  }
 0x2f1   :  { %3077 = vmatpush1.bf16.msra.mxu0 %v5719_v21  ;;  %3163 = vmatpush1.bf16.msra.mxu1 %v5722_v23  ;;  %v5766_v21 = vld [vmem:[#allocation10 + $0x24c] ss:$16 sps:$4 sm:$0xff]   ;;  %v5761_v23 = vld [vmem:[#allocation10 + $0x240] ss:$16 sps:$4 sm:$0xff]  }
 0x2f2   :  { %3078 = vmatprep.subr.bf16.mxu0 %v5727_v24  ;;  %3164 = vmatprep.subr.bf16.mxu1 %v5730_v25  ;;  %v5764_v24 = vld [vmem:[#allocation10 + $0x248] ss:$16 sps:$4 sm:$0xff]   ;;  %v5769_v25 = vld [vmem:[#allocation10 + $0x264] ss:$16 sps:$4 sm:$0xff]  }
 0x2f5   :  { %3079 = vmatpush1.bf16.msra.mxu0 %v5725_v26  ;;  %3165 = vmatpush1.bf16.msra.mxu1 %v5728_v27  ;;  %v5772_v26 = vld [vmem:[#allocation10 + $0x26c] ss:$16 sps:$4 sm:$0xff]   ;;  %v5767_v27 = vld [vmem:[#allocation10 + $0x260] ss:$16 sps:$4 sm:$0xff]  }
 0x2f6   :  { %3080 = vmatprep.subr.bf16.mxu0 %v5733_v28  ;;  %3166 = vmatprep.subr.bf16.mxu1 %v5736_v29  ;;  %v5770_v28 = vld [vmem:[#allocation10 + $0x268] ss:$16 sps:$4 sm:$0xff]   ;;  %v5775_v29 = vld [vmem:[#allocation10 + $0x284] ss:$16 sps:$4 sm:$0xff]  }
 0x2f9   :  { %3081 = vmatpush1.bf16.msra.mxu0 %v5731_v30  ;;  %3167 = vmatpush1.bf16.msra.mxu1 %v5734_v32  ;;  %v5778_v30 = vld [vmem:[#allocation10 + $0x28c] ss:$16 sps:$4 sm:$0xff]   ;;  %v5773_v32 = vld [vmem:[#allocation10 + $0x280] ss:$16 sps:$4 sm:$0xff]  }
 0x2fa   :  { %3082 = vmatprep.subr.bf16.mxu0 %v5739_v33  ;;  %3168 = vmatprep.subr.bf16.mxu1 %v5742_v34  ;;  %v5776_v33 = vld [vmem:[#allocation10 + $0x288] ss:$16 sps:$4 sm:$0xff]   ;;  %v5781_v34 = vld [vmem:[#allocation10 + $0x2a4] ss:$16 sps:$4 sm:$0xff]  }
 0x2fd   :  { %3083 = vmatpush1.bf16.msra.mxu0 %v5737_v35  ;;  %3169 = vmatpush1.bf16.msra.mxu1 %v5740_v36  ;;  %v5784_v35 = vld [vmem:[#allocation10 + $0x2ac] ss:$16 sps:$4 sm:$0xff]   ;;  %v5779_v36 = vld [vmem:[#allocation10 + $0x2a0] ss:$16 sps:$4 sm:$0xff]  }
 0x2fe   :  { %3084 = vmatprep.subr.bf16.mxu0 %v5745_v37  ;;  %3170 = vmatprep.subr.bf16.mxu1 %v5748_v38  ;;  %v5782_v37 = vld [vmem:[#allocation10 + $0x2a8] ss:$16 sps:$4 sm:$0xff]   ;;  %v5787_v38 = vld [vmem:[#allocation10 + $0x2c4] ss:$16 sps:$4 sm:$0xff]  }
 0x301   :  { %3085 = vmatpush1.bf16.msra.mxu0 %v5743_v39  ;;  %3171 = vmatpush1.bf16.msra.mxu1 %v5746_v40  ;;  %v5790_v39 = vld [vmem:[#allocation10 + $0x2cc] ss:$16 sps:$4 sm:$0xff]   ;;  %v5785_v40 = vld [vmem:[#allocation10 + $0x2c0] ss:$16 sps:$4 sm:$0xff]  }
 0x302   :  { %3097 = vmatprep.subr.bf16.mxu0 %v5751_v41  ;;  %3183 = vmatprep.subr.bf16.mxu1 %v5754_v42  ;;  %v5788_v41 = vld [vmem:[#allocation10 + $0x2c8] ss:$16 sps:$4 sm:$0xff]   ;;  %v5793_v42 = vld [vmem:[#allocation10 + $0x2e4] ss:$16 sps:$4 sm:$0xff]  }
 0x397   :  { %v2157_v48 = vpop.f32.mrb[8].mxu0  ;;  %v2243_v49 = vpop.f32.mrb[8].mxu1 }
 0x398   :  { %v5186_v50 = vadd.f32 %v2157_v48, %v1423_v44  ;;  %v5190_v51 = vadd.f32 %v2243_v49, %v1431_v45  ;;  %v2159_v31 = vpop.f32.mrb[9].mxu0  ;;  %v2245_v52 = vpop.f32.mrb[9].mxu1  ;;  %v5797_v48 = vld [vmem:[#allocation10 + $0x300] ss:$16 sps:$4 sm:$0xff]   ;;  %v5800_v49 = vld [vmem:[#allocation10 + $0x308] ss:$16 sps:$4 sm:$0xff]  }
 0x399   :  { %v5187_v53 = vadd.f32 %v2159_v31, %v1427_v46  ;;  %v5191_v54 = vadd.f32 %v2245_v52, %v1435_v47  ;;  %v2161_v55 = vpop.f32.mrb[10].mxu0  ;;  %v2247_v56 = vpop.f32.mrb[10].mxu1  ;;  %v5803_v31 = vld [vmem:[#allocation10 + $0x320] ss:$16 sps:$4 sm:$0xff]   ;;  %v5806_v52 = vld [vmem:[#allocation10 + $0x328] ss:$16 sps:$4 sm:$0xff]  }
 0x39a   :  { %v5188_v57 = vadd.f32 %v2161_v55, %v1423_v44  ;;  %v5192_v58 = vadd.f32 %v2247_v56, %v1431_v45  ;;  %v2163_v60 = vpop.f32.mrb[11].mxu0  ;;  %v2249_v61 = vpop.f32.mrb[11].mxu1  ;;  %v2252_v0 = vmax.f32 %v5186_v50, 0.0  ;;  %v2254_v1 = vmax.f32 %v5190_v51, 0.0  ;;  %v5791_v44 = vld [vmem:[#allocation10 + $0x2e0] ss:$16 sps:$4 sm:$0xff]  }
 0x39b   :  { %v5189_v62 = vadd.f32 %v2163_v60, %v1427_v46  ;;  %v5193_v63 = vadd.f32 %v2249_v61, %v1435_v47  ;;  %v2253_v4 = vmax.f32 %v5187_v53, 0.0  ;;  %v2255_v5 = vmax.f32 %v5191_v54, 0.0  ;;  %v5794_v45 = vld [vmem:[#allocation10 + $0x2e8] ss:$16 sps:$4 sm:$0xff]   ;;  %v5799_v46 = vld [vmem:[#allocation10 + $0x304] ss:$16 sps:$4 sm:$0xff]  }
 0x39c   :  { %v2256_v2 = vmax.f32 %v5188_v57, 0.0  ;;  %v2258_v3 = vmax.f32 %v5192_v58, 0.0  ;;  %v5802_v47 = vld [vmem:[#allocation10 + $0x30c] ss:$16 sps:$4 sm:$0xff]   ;;  %v5805_v50 = vld [vmem:[#allocation10 + $0x324] ss:$16 sps:$4 sm:$0xff]  }
 0x39d   :  { %v2257_v6 = vmax.f32 %v5189_v62, 0.0  ;;  %v2259_v59 = vmax.f32 %v5193_v63, 0.0  ;;  %v5808_v51 = vld [vmem:[#allocation10 + $0x32c] ss:$16 sps:$4 sm:$0xff]   ;;  %v5811_v53 = vld [vmem:[#allocation10 + $0x344] ss:$16 sps:$4 sm:$0xff]  }
 0x39e   :  { %v2260_v7 = vpack.c.bf16 %v2256_v2, %v2252_v0  ;;  %v6488_v8 = vpack.c.bf16 %v2258_v3, %v2254_v1  ;;  %v5814_v54 = vld [vmem:[#allocation10 + $0x34c] ss:$16 sps:$4 sm:$0xff]   ;;  %v5809_v55 = vld [vmem:[#allocation10 + $0x340] ss:$16 sps:$4 sm:$0xff]   ;;  %v5812_v56 = vld [vmem:[#allocation10 + $0x348] ss:$16 sps:$4 sm:$0xff]  }
 0x39f   :  { %v2261_v9 = vpack.c.bf16 %v2257_v6, %v2253_v4  ;;  %v2263_v10 = vpack.c.bf16 %v2259_v59, %v2255_v5  ;;  %v5817_v57 = vld [vmem:[#allocation10 + $0x364] ss:$16 sps:$4 sm:$0xff]   ;;  %v5820_v58 = vld [vmem:[#allocation10 + $0x36c] ss:$16 sps:$4 sm:$0xff]   ;;  %v5815_v60 = vld [vmem:[#allocation10 + $0x360] ss:$16 sps:$4 sm:$0xff]  }
 0x3a0   :  { %v5818_v61 = vld [vmem:[#allocation10 + $0x368] ss:$16 sps:$4 sm:$0xff]   ;;  %v5823_v62 = vld [vmem:[#allocation10 + $0x384] ss:$16 sps:$4 sm:$0xff]   ;;  %v5826_v63 = vld [vmem:[#allocation10 + $0x38c] ss:$16 sps:$4 sm:$0xff]  }
 0x3a1   :  { %3086 = vmatprep.mubr.bf16.mxu0 %v2261_v9  ;;  %3172 = vmatprep.mubr.bf16.mxu1 %v2261_v9  ;;  %v5821_v0 = vld [vmem:[#allocation10 + $0x380] ss:$16 sps:$4 sm:$0xff]   ;;  %v5824_v1 = vld [vmem:[#allocation10 + $0x388] ss:$16 sps:$4 sm:$0xff]   ;;  %v5829_v2 = vld [vmem:[#allocation10 + $0x3a4] ss:$16 sps:$4 sm:$0xff]  }
 0x3a2   :  { %3087 = vmatmul.mubr.bf16.vlgmr.msra.gmra.mrb[12].mxu0 %v2260_v7  ;;  %3173 = vmatmul.mubr.bf16.vlgmr.msra.gmra.mrb[12].mxu1 %v2260_v7  ;;  %v5832_v3 = vld [vmem:[#allocation10 + $0x3ac] ss:$16 sps:$4 sm:$0xff]   ;;  %v5827_v4 = vld [vmem:[#allocation10 + $0x3a0] ss:$16 sps:$4 sm:$0xff]   ;;  %v5830_v5 = vld [vmem:[#allocation10 + $0x3a8] ss:$16 sps:$4 sm:$0xff]  }
 0x3a3   :  { %3098 = vmatpush1.bf16.msra.mxu0 %v5749_v11  ;;  %3184 = vmatpush1.bf16.msra.mxu1 %v5752_v12  ;;  %v5835_v6 = vld [vmem:[#allocation10 + $0x3c4] ss:$16 sps:$4 sm:$0xff]   ;;  %v5838_v59 = vld [vmem:[#allocation10 + $0x3cc] ss:$16 sps:$4 sm:$0xff]   ;;  %v5833_v7 = vld [vmem:[#allocation10 + $0x3c0] ss:$16 sps:$4 sm:$0xff]  }
 0x3a4   :  { %3129 = vmatprep.mubr.bf16.mxu0 %v2263_v10  ;;  %3215 = vmatprep.mubr.bf16.mxu1 %v2263_v10  ;;  %v5836_v9 = vld [vmem:[#allocation10 + $0x3c8] ss:$16 sps:$4 sm:$0xff]   ;;  %v5841_v10 = vld [vmem:[#allocation10 + $0x3e4] ss:$16 sps:$4 sm:$0xff]   ;;  %v5844_v11 = vld [vmem:[#allocation10 + $0x3ec] ss:$16 sps:$4 sm:$0xff]  }
 0x3a5   :  { %3099 = vmatprep.subr.bf16.mxu0 %v5757_v13  ;;  %3185 = vmatprep.subr.bf16.mxu1 %v5760_v14  ;;  %v5839_v12 = vld [vmem:[#allocation10 + $0x3e0] ss:$16 sps:$4 sm:$0xff]   ;;  %v5842_v13 = vld [vmem:[#allocation10 + $0x3e8] ss:$16 sps:$4 sm:$0xff]   ;;  %v5847_v14 = vld [vmem:[#allocation11 + $0x4] ss:$16 sps:$4 sm:$0xff]  }
 0x3a7   :  { %3100 = vmatpush1.bf16.msra.mxu0 %v5755_v15  ;;  %3186 = vmatpush1.bf16.msra.mxu1 %v5758_v16  ;;  %v5850_v15 = vld [vmem:[#allocation11 + $0xc] ss:$16 sps:$4 sm:$0xff]   ;;  %v5845_v16 = vld [vmem:[#allocation11] ss:$16 sps:$4 sm:$0xff]  }
 0x3a8   :  { %3101 = vmatprep.subr.bf16.mxu0 %v5763_v19  ;;  %3187 = vmatprep.subr.bf16.mxu1 %v5766_v21  ;;  %v5848_v19 = vld [vmem:[#allocation11 + $0x8] ss:$16 sps:$4 sm:$0xff]   ;;  %v5853_v21 = vld [vmem:[#allocation11 + $0x24] ss:$16 sps:$4 sm:$0xff]  }
 0x3ab   :  { %3102 = vmatpush1.bf16.msra.mxu0 %v5761_v23  ;;  %3188 = vmatpush1.bf16.msra.mxu1 %v5764_v24  ;;  %v5856_v23 = vld [vmem:[#allocation11 + $0x2c] ss:$16 sps:$4 sm:$0xff]   ;;  %v5851_v24 = vld [vmem:[#allocation11 + $0x20] ss:$16 sps:$4 sm:$0xff]  }
 0x3ac   :  { %3103 = vmatprep.subr.bf16.mxu0 %v5769_v25  ;;  %3189 = vmatprep.subr.bf16.mxu1 %v5772_v26  ;;  %v5854_v25 = vld [vmem:[#allocation11 + $0x28] ss:$16 sps:$4 sm:$0xff]   ;;  %v5859_v26 = vld [vmem:[#allocation11 + $0x44] ss:$16 sps:$4 sm:$0xff]  }
 0x3af   :  { %3104 = vmatpush1.bf16.msra.mxu0 %v5767_v27  ;;  %3190 = vmatpush1.bf16.msra.mxu1 %v5770_v28  ;;  %v5862_v27 = vld [vmem:[#allocation11 + $0x4c] ss:$16 sps:$4 sm:$0xff]   ;;  %v5857_v28 = vld [vmem:[#allocation11 + $0x40] ss:$16 sps:$4 sm:$0xff]  }
 0x3b0   :  { %3105 = vmatprep.subr.bf16.mxu0 %v5775_v29  ;;  %3191 = vmatprep.subr.bf16.mxu1 %v5778_v30  ;;  %v5860_v29 = vld [vmem:[#allocation11 + $0x48] ss:$16 sps:$4 sm:$0xff]   ;;  %v5865_v30 = vld [vmem:[#allocation11 + $0x64] ss:$16 sps:$4 sm:$0xff]  }
 0x3b3   :  { %3106 = vmatpush1.bf16.msra.mxu0 %v5773_v32  ;;  %3192 = vmatpush1.bf16.msra.mxu1 %v5776_v33  ;;  %v5868_v32 = vld [vmem:[#allocation11 + $0x6c] ss:$16 sps:$4 sm:$0xff]   ;;  %v5863_v33 = vld [vmem:[#allocation11 + $0x60] ss:$16 sps:$4 sm:$0xff]  }
 0x3b4   :  { %3107 = vmatprep.subr.bf16.mxu0 %v5781_v34  ;;  %3193 = vmatprep.subr.bf16.mxu1 %v5784_v35  ;;  %v5871_v34 = vld [vmem:[#allocation11 + $0x84] ss:$16 sps:$4 sm:$0xff]   ;;  %v5874_v35 = vld [vmem:[#allocation11 + $0x8c] ss:$16 sps:$4 sm:$0xff]  }
 0x3b7   :  { %3108 = vmatpush1.bf16.msra.mxu0 %v5779_v36  ;;  %3194 = vmatpush1.bf16.msra.mxu1 %v5782_v37  ;;  %v5869_v36 = vld [vmem:[#allocation11 + $0x80] ss:$16 sps:$4 sm:$0xff]   ;;  %v5872_v37 = vld [vmem:[#allocation11 + $0x88] ss:$16 sps:$4 sm:$0xff]  }
 0x3b8   :  { %3109 = vmatprep.subr.bf16.mxu0 %v5787_v38  ;;  %3195 = vmatprep.subr.bf16.mxu1 %v5790_v39  ;;  %v5877_v38 = vld [vmem:[#allocation11 + $0xa4] ss:$16 sps:$4 sm:$0xff]   ;;  %v5880_v39 = vld [vmem:[#allocation11 + $0xac] ss:$16 sps:$4 sm:$0xff]  }
 0x3bb   :  { %3110 = vmatpush1.bf16.msra.mxu0 %v5785_v40  ;;  %3196 = vmatpush1.bf16.msra.mxu1 %v5788_v41  ;;  %v5875_v40 = vld [vmem:[#allocation11 + $0xa0] ss:$16 sps:$4 sm:$0xff]   ;;  %v5878_v41 = vld [vmem:[#allocation11 + $0xa8] ss:$16 sps:$4 sm:$0xff]  }
 0x3bc   :  { %3111 = vmatprep.subr.bf16.mxu0 %v5793_v42  ;;  %3197 = vmatprep.subr.bf16.mxu1 %v5796_v43  ;;  %v5883_v42 = vld [vmem:[#allocation11 + $0xc4] ss:$16 sps:$4 sm:$0xff]   ;;  %v5886_v43 = vld [vmem:[#allocation11 + $0xcc] ss:$16 sps:$4 sm:$0xff]  }
 0x3bf   :  { %3112 = vmatpush1.bf16.msra.mxu0 %v5791_v44  ;;  %3198 = vmatpush1.bf16.msra.mxu1 %v5794_v45  ;;  %v5881_v44 = vld [vmem:[#allocation11 + $0xc0] ss:$16 sps:$4 sm:$0xff]   ;;  %v5884_v45 = vld [vmem:[#allocation11 + $0xc8] ss:$16 sps:$4 sm:$0xff]  }
 0x3c0   :  { %3113 = vmatprep.subr.bf16.mxu0 %v5799_v46  ;;  %3199 = vmatprep.subr.bf16.mxu1 %v5802_v47  ;;  %v5889_v46 = vld [vmem:[#allocation11 + $0xe4] ss:$16 sps:$4 sm:$0xff]   ;;  %v5892_v47 = vld [vmem:[#allocation11 + $0xec] ss:$16 sps:$4 sm:$0xff]  }
 0x3c3   :  { %3114 = vmatpush1.bf16.msra.mxu0 %v5797_v48  ;;  %3200 = vmatpush1.bf16.msra.mxu1 %v5800_v49  ;;  %v5887_v48 = vld [vmem:[#allocation11 + $0xe0] ss:$16 sps:$4 sm:$0xff]   ;;  %v5890_v49 = vld [vmem:[#allocation11 + $0xe8] ss:$16 sps:$4 sm:$0xff]  }
 0x3c4   :  { %3115 = vmatprep.subr.bf16.mxu0 %v5805_v50  ;;  %3201 = vmatprep.subr.bf16.mxu1 %v5808_v51  ;;  %v5895_v50 = vld [vmem:[#allocation11 + $0x104] ss:$16 sps:$4 sm:$0xff]   ;;  %v5898_v51 = vld [vmem:[#allocation11 + $0x10c] ss:$16 sps:$4 sm:$0xff]  }
 0x3c7   :  { %3116 = vmatpush1.bf16.msra.mxu0 %v5803_v31  ;;  %3202 = vmatpush1.bf16.msra.mxu1 %v5806_v52  ;;  %v5893_v31 = vld [vmem:[#allocation11 + $0x100] ss:$16 sps:$4 sm:$0xff]   ;;  %v5896_v52 = vld [vmem:[#allocation11 + $0x108] ss:$16 sps:$4 sm:$0xff]  }
 0x3c8   :  { %3117 = vmatprep.subr.bf16.mxu0 %v5811_v53  ;;  %3203 = vmatprep.subr.bf16.mxu1 %v5814_v54  ;;  %v5901_v53 = vld [vmem:[#allocation11 + $0x124] ss:$16 sps:$4 sm:$0xff]   ;;  %v5904_v54 = vld [vmem:[#allocation11 + $0x12c] ss:$16 sps:$4 sm:$0xff]  }
 0x3cb   :  { %3118 = vmatpush1.bf16.msra.mxu0 %v5809_v55  ;;  %3204 = vmatpush1.bf16.msra.mxu1 %v5812_v56  ;;  %v5899_v55 = vld [vmem:[#allocation11 + $0x120] ss:$16 sps:$4 sm:$0xff]   ;;  %v5902_v56 = vld [vmem:[#allocation11 + $0x128] ss:$16 sps:$4 sm:$0xff]  }
 0x3cc   :  { %3119 = vmatprep.subr.bf16.mxu0 %v5817_v57  ;;  %3205 = vmatprep.subr.bf16.mxu1 %v5820_v58  ;;  %v5907_v57 = vld [vmem:[#allocation11 + $0x144] ss:$16 sps:$4 sm:$0xff]   ;;  %v5910_v58 = vld [vmem:[#allocation11 + $0x14c] ss:$16 sps:$4 sm:$0xff]  }
 0x3cf   :  { %3120 = vmatpush1.bf16.msra.mxu0 %v5815_v60  ;;  %3206 = vmatpush1.bf16.msra.mxu1 %v5818_v61  ;;  %v5905_v60 = vld [vmem:[#allocation11 + $0x140] ss:$16 sps:$4 sm:$0xff]   ;;  %v5908_v61 = vld [vmem:[#allocation11 + $0x148] ss:$16 sps:$4 sm:$0xff]  }
 0x3d0   :  { %3121 = vmatprep.subr.bf16.mxu0 %v5823_v62  ;;  %3207 = vmatprep.subr.bf16.mxu1 %v5826_v63  ;;  %v5913_v62 = vld [vmem:[#allocation11 + $0x164] ss:$16 sps:$4 sm:$0xff]   ;;  %v5916_v63 = vld [vmem:[#allocation11 + $0x16c] ss:$16 sps:$4 sm:$0xff]  }
 0x3d3   :  { %3122 = vmatpush1.bf16.msra.mxu0 %v5821_v0  ;;  %3208 = vmatpush1.bf16.msra.mxu1 %v5824_v1  ;;  %v5911_v0 = vld [vmem:[#allocation11 + $0x160] ss:$16 sps:$4 sm:$0xff]   ;;  %v5914_v1 = vld [vmem:[#allocation11 + $0x168] ss:$16 sps:$4 sm:$0xff]  }
 0x3d4   :  { %3123 = vmatprep.subr.bf16.mxu0 %v5829_v2  ;;  %3209 = vmatprep.subr.bf16.mxu1 %v5832_v3  ;;  %v5919_v2 = vld [vmem:[#allocation11 + $0x184] ss:$16 sps:$4 sm:$0xff]   ;;  %v5922_v3 = vld [vmem:[#allocation11 + $0x18c] ss:$16 sps:$4 sm:$0xff]  }
 0x3d7   :  { %3124 = vmatpush1.bf16.msra.mxu0 %v5827_v4  ;;  %3210 = vmatpush1.bf16.msra.mxu1 %v5830_v5  ;;  %v5917_v4 = vld [vmem:[#allocation11 + $0x180] ss:$16 sps:$4 sm:$0xff]   ;;  %v5920_v5 = vld [vmem:[#allocation11 + $0x188] ss:$16 sps:$4 sm:$0xff]  }
 0x3d8   :  { %3125 = vmatprep.subr.bf16.mxu0 %v5835_v6  ;;  %3211 = vmatprep.subr.bf16.mxu1 %v5838_v59  ;;  %v5925_v6 = vld [vmem:[#allocation11 + $0x1a4] ss:$16 sps:$4 sm:$0xff]   ;;  %v5928_v59 = vld [vmem:[#allocation11 + $0x1ac] ss:$16 sps:$4 sm:$0xff]  }
 0x3db   :  { %3126 = vmatpush1.bf16.msra.mxu0 %v5833_v7  ;;  %3212 = vmatpush1.bf16.msra.mxu1 %v5836_v9  ;;  %v5923_v7 = vld [vmem:[#allocation11 + $0x1a0] ss:$16 sps:$4 sm:$0xff]   ;;  %v5926_v9 = vld [vmem:[#allocation11 + $0x1a8] ss:$16 sps:$4 sm:$0xff]  }
 0x3dc   :  { %3127 = vmatprep.subr.bf16.mxu0 %v5841_v10  ;;  %3213 = vmatprep.subr.bf16.mxu1 %v5844_v11  ;;  %v5931_v10 = vld [vmem:[#allocation11 + $0x1c4] ss:$16 sps:$4 sm:$0xff]   ;;  %v5934_v11 = vld [vmem:[#allocation11 + $0x1cc] ss:$16 sps:$4 sm:$0xff]  }
 0x3df   :  { %3128 = vmatpush1.bf16.msra.mxu0 %v5839_v12  ;;  %3214 = vmatpush1.bf16.msra.mxu1 %v5842_v13  ;;  %v5929_v12 = vld [vmem:[#allocation11 + $0x1c0] ss:$16 sps:$4 sm:$0xff]   ;;  %v5932_v13 = vld [vmem:[#allocation11 + $0x1c8] ss:$16 sps:$4 sm:$0xff]  }
 0x3e0   :  { %4028 = vmatprep.subr.bf16.mxu0 %v5847_v14  ;;  %4114 = vmatprep.subr.bf16.mxu1 %v5850_v15  ;;  %v5937_v14 = vld [vmem:[#allocation11 + $0x1e4] ss:$16 sps:$4 sm:$0xff]   ;;  %v5940_v15 = vld [vmem:[#allocation11 + $0x1ec] ss:$16 sps:$4 sm:$0xff]  }
 0x3e2   :  { %3130 = vmatmul.mubr.bf16.vlgmr.msra.gmra.mrb[12].mxu0 %v6488_v8  ;;  %3216 = vmatmul.mubr.bf16.vlgmr.msra.gmra.mrb[12].mxu1 %v6488_v8  ;;  %v5866_v8 = vld [vmem:[#allocation11 + $0x68] ss:$16 sps:$4 sm:$0xff]  }
 0x3e3   :  { %4029 = vmatpush1.bf16.msra.mxu0 %v5845_v16  ;;  %4115 = vmatpush1.bf16.msra.mxu1 %v5848_v19  ;;  %v5935_v16 = vld [vmem:[#allocation11 + $0x1e0] ss:$16 sps:$4 sm:$0xff]   ;;  %v5938_v19 = vld [vmem:[#allocation11 + $0x1e8] ss:$16 sps:$4 sm:$0xff]  }
 0x3e4   :  { %4030 = vmatprep.subr.bf16.mxu0 %v5853_v21  ;;  %4116 = vmatprep.subr.bf16.mxu1 %v5856_v23  ;;  %v5943_v21 = vld [vmem:[#allocation11 + $0x204] ss:$16 sps:$4 sm:$0xff]   ;;  %v5946_v23 = vld [vmem:[#allocation11 + $0x20c] ss:$16 sps:$4 sm:$0xff]  }
 0x3e7   :  { %4031 = vmatpush1.bf16.msra.mxu0 %v5851_v24  ;;  %4117 = vmatpush1.bf16.msra.mxu1 %v5854_v25  ;;  %v2392_v24 = vld [vmem:[%s6536_s8] sm:$0xf] }
 0x3e8   :  { %4032 = vmatprep.subr.bf16.mxu0 %v5859_v26  ;;  %4118 = vmatprep.subr.bf16.mxu1 %v5862_v27  ;;  %v2397_v25 = vrot.slane %v2392_v24, %v6454_v17  ;;  %v2405_v26 = vrot.slane %v2392_v24, %v6459_v20  ;;  %v2401_v27 = vrot.slane %v2392_v24, %v6456_v18 }
 0x3eb   :  { %4033 = vmatpush1.bf16.msra.mxu0 %v5857_v28  ;;  %4119 = vmatpush1.bf16.msra.mxu1 %v5860_v29  ;;  %v2409_v28 = vrot.slane %v2392_v24, %v6462_v22  ;;  %v5988_v24 = vld [vmem:[#allocation11 + $0x2ec] ss:$16 sps:$4 sm:$0xff]  }
 0x3ec   :  { %4034 = vmatprep.subr.bf16.mxu0 %v5865_v30  ;;  %4120 = vmatprep.subr.bf16.mxu1 %v5868_v32 }
 0x3ef   :  { %4035 = vmatpush1.bf16.msra.mxu0 %v5863_v33  ;;  %4121 = vmatpush1.bf16.msra.mxu1 %v5866_v8 }
 0x3f0   :  { %4036 = vmatprep.subr.bf16.mxu0 %v5871_v34  ;;  %4122 = vmatprep.subr.bf16.mxu1 %v5874_v35 }
 0x3f3   :  { %4037 = vmatpush1.bf16.msra.mxu0 %v5869_v36  ;;  %4123 = vmatpush1.bf16.msra.mxu1 %v5872_v37 }
 0x3f4   :  { %4038 = vmatprep.subr.bf16.mxu0 %v5877_v38  ;;  %4124 = vmatprep.subr.bf16.mxu1 %v5880_v39 }
 0x3f7   :  { %4039 = vmatpush1.bf16.msra.mxu0 %v5875_v40  ;;  %4125 = vmatpush1.bf16.msra.mxu1 %v5878_v41 }
 0x3f8   :  { %4040 = vmatprep.subr.bf16.mxu0 %v5883_v42  ;;  %4126 = vmatprep.subr.bf16.mxu1 %v5886_v43 }
 0x3fb   :  { %4041 = vmatpush1.bf16.msra.mxu0 %v5881_v44  ;;  %4127 = vmatpush1.bf16.msra.mxu1 %v5884_v45 }
 0x3fc   :  { %4042 = vmatprep.subr.bf16.mxu0 %v5889_v46  ;;  %4128 = vmatprep.subr.bf16.mxu1 %v5892_v47 }
 0x3ff   :  { %4043 = vmatpush1.bf16.msra.mxu0 %v5887_v48  ;;  %4129 = vmatpush1.bf16.msra.mxu1 %v5890_v49 }
 0x400   :  { %4044 = vmatprep.subr.bf16.mxu0 %v5895_v50  ;;  %4130 = vmatprep.subr.bf16.mxu1 %v5898_v51 }
 0x403   :  { %4045 = vmatpush1.bf16.msra.mxu0 %v5893_v31  ;;  %4131 = vmatpush1.bf16.msra.mxu1 %v5896_v52 }
 0x404   :  { %4046 = vmatprep.subr.bf16.mxu0 %v5901_v53  ;;  %4132 = vmatprep.subr.bf16.mxu1 %v5904_v54 }
 0x407   :  { %4047 = vmatpush1.bf16.msra.mxu0 %v5899_v55  ;;  %4133 = vmatpush1.bf16.msra.mxu1 %v5902_v56  ;;  %v5941_v56 = vld [vmem:[#allocation11 + $0x200] ss:$16 sps:$4 sm:$0xff]  }
 0x408   :  { %4048 = vmatprep.subr.bf16.mxu0 %v5907_v57  ;;  %4134 = vmatprep.subr.bf16.mxu1 %v5910_v58  ;;  %v5944_v57 = vld [vmem:[#allocation11 + $0x208] ss:$16 sps:$4 sm:$0xff]   ;;  %v5949_v58 = vld [vmem:[#allocation11 + $0x224] ss:$16 sps:$4 sm:$0xff]  }
 0x40b   :  { %4049 = vmatpush1.bf16.msra.mxu0 %v5905_v60  ;;  %4135 = vmatpush1.bf16.msra.mxu1 %v5908_v61  ;;  %v5952_v60 = vld [vmem:[#allocation11 + $0x22c] ss:$16 sps:$4 sm:$0xff]   ;;  %v5947_v61 = vld [vmem:[#allocation11 + $0x220] ss:$16 sps:$4 sm:$0xff]  }
 0x40c   :  { %4050 = vmatprep.subr.bf16.mxu0 %v5913_v62  ;;  %4136 = vmatprep.subr.bf16.mxu1 %v5916_v63  ;;  %v5950_v62 = vld [vmem:[#allocation11 + $0x228] ss:$16 sps:$4 sm:$0xff]   ;;  %v5955_v63 = vld [vmem:[#allocation11 + $0x244] ss:$16 sps:$4 sm:$0xff]  }
 0x40f   :  { %4051 = vmatpush1.bf16.msra.mxu0 %v5911_v0  ;;  %4137 = vmatpush1.bf16.msra.mxu1 %v5914_v1  ;;  %v5958_v0 = vld [vmem:[#allocation11 + $0x24c] ss:$16 sps:$4 sm:$0xff]   ;;  %v5953_v1 = vld [vmem:[#allocation11 + $0x240] ss:$16 sps:$4 sm:$0xff]  }
 0x410   :  { %4052 = vmatprep.subr.bf16.mxu0 %v5919_v2  ;;  %4138 = vmatprep.subr.bf16.mxu1 %v5922_v3  ;;  %v5956_v2 = vld [vmem:[#allocation11 + $0x248] ss:$16 sps:$4 sm:$0xff]   ;;  %v5961_v3 = vld [vmem:[#allocation11 + $0x264] ss:$16 sps:$4 sm:$0xff]  }
 0x413   :  { %4053 = vmatpush1.bf16.msra.mxu0 %v5917_v4  ;;  %4139 = vmatpush1.bf16.msra.mxu1 %v5920_v5  ;;  %v5964_v4 = vld [vmem:[#allocation11 + $0x26c] ss:$16 sps:$4 sm:$0xff]   ;;  %v5959_v5 = vld [vmem:[#allocation11 + $0x260] ss:$16 sps:$4 sm:$0xff]  }
 0x414   :  { %4054 = vmatprep.subr.bf16.mxu0 %v5925_v6  ;;  %4140 = vmatprep.subr.bf16.mxu1 %v5928_v59  ;;  %v5962_v6 = vld [vmem:[#allocation11 + $0x268] ss:$16 sps:$4 sm:$0xff]   ;;  %v5967_v59 = vld [vmem:[#allocation11 + $0x284] ss:$16 sps:$4 sm:$0xff]  }
 0x417   :  { %4055 = vmatpush1.bf16.msra.mxu0 %v5923_v7  ;;  %4141 = vmatpush1.bf16.msra.mxu1 %v5926_v9  ;;  %v5970_v7 = vld [vmem:[#allocation11 + $0x28c] ss:$16 sps:$4 sm:$0xff]   ;;  %v5965_v9 = vld [vmem:[#allocation11 + $0x280] ss:$16 sps:$4 sm:$0xff]  }
 0x418   :  { %4056 = vmatprep.subr.bf16.mxu0 %v5931_v10  ;;  %4142 = vmatprep.subr.bf16.mxu1 %v5934_v11  ;;  %v5968_v10 = vld [vmem:[#allocation11 + $0x288] ss:$16 sps:$4 sm:$0xff]   ;;  %v5973_v11 = vld [vmem:[#allocation11 + $0x2a4] ss:$16 sps:$4 sm:$0xff]  }
 0x41b   :  { %4057 = vmatpush1.bf16.msra.mxu0 %v5929_v12  ;;  %4143 = vmatpush1.bf16.msra.mxu1 %v5932_v13  ;;  %v5976_v12 = vld [vmem:[#allocation11 + $0x2ac] ss:$16 sps:$4 sm:$0xff]   ;;  %v5971_v13 = vld [vmem:[#allocation11 + $0x2a0] ss:$16 sps:$4 sm:$0xff]  }
 0x41c   :  { %4058 = vmatprep.subr.bf16.mxu0 %v5937_v14  ;;  %4144 = vmatprep.subr.bf16.mxu1 %v5940_v15  ;;  %v5974_v14 = vld [vmem:[#allocation11 + $0x2a8] ss:$16 sps:$4 sm:$0xff]   ;;  %v5979_v15 = vld [vmem:[#allocation11 + $0x2c4] ss:$16 sps:$4 sm:$0xff]  }
 0x41f   :  { %4059 = vmatpush1.bf16.msra.mxu0 %v5935_v16  ;;  %4145 = vmatpush1.bf16.msra.mxu1 %v5938_v19  ;;  %v5982_v16 = vld [vmem:[#allocation11 + $0x2cc] ss:$16 sps:$4 sm:$0xff]   ;;  %v5977_v19 = vld [vmem:[#allocation11 + $0x2c0] ss:$16 sps:$4 sm:$0xff]  }
 0x420   :  { %4071 = vmatprep.subr.bf16.mxu0 %v5943_v21  ;;  %4157 = vmatprep.subr.bf16.mxu1 %v5946_v23  ;;  %v5980_v21 = vld [vmem:[#allocation11 + $0x2c8] ss:$16 sps:$4 sm:$0xff]   ;;  %v5985_v23 = vld [vmem:[#allocation11 + $0x2e4] ss:$16 sps:$4 sm:$0xff]  }
 0x4b5   :  { %v3131_v29 = vpop.f32.mrb[12].mxu0  ;;  %v3217_v30 = vpop.f32.mrb[12].mxu1 }
 0x4b6   :  { %v5194_v32 = vadd.f32 %v3131_v29, %v2397_v25  ;;  %v5198_v33 = vadd.f32 %v3217_v30, %v2405_v26  ;;  %v3133_v8 = vpop.f32.mrb[13].mxu0  ;;  %v3219_v34 = vpop.f32.mrb[13].mxu1  ;;  %v5989_v29 = vld [vmem:[#allocation11 + $0x300] ss:$16 sps:$4 sm:$0xff]   ;;  %v5992_v30 = vld [vmem:[#allocation11 + $0x308] ss:$16 sps:$4 sm:$0xff]  }
 0x4b7   :  { %v5195_v35 = vadd.f32 %v3133_v8, %v2401_v27  ;;  %v5199_v36 = vadd.f32 %v3219_v34, %v2409_v28  ;;  %v3135_v37 = vpop.f32.mrb[14].mxu0  ;;  %v3221_v38 = vpop.f32.mrb[14].mxu1  ;;  %v5995_v8 = vld [vmem:[#allocation11 + $0x320] ss:$16 sps:$4 sm:$0xff]   ;;  %v5998_v34 = vld [vmem:[#allocation11 + $0x328] ss:$16 sps:$4 sm:$0xff]  }
 0x4b8   :  { %v5196_v39 = vadd.f32 %v3135_v37, %v2397_v25  ;;  %v5200_v40 = vadd.f32 %v3221_v38, %v2405_v26  ;;  %v3137_v41 = vpop.f32.mrb[15].mxu0  ;;  %v3223_v42 = vpop.f32.mrb[15].mxu1  ;;  %v3226_v45 = vmax.f32 %v5194_v32, 0.0  ;;  %v3228_v46 = vmax.f32 %v5198_v33, 0.0  ;;  %v5983_v25 = vld [vmem:[#allocation11 + $0x2e0] ss:$16 sps:$4 sm:$0xff]  }
 0x4b9   :  { %v5197_v43 = vadd.f32 %v3137_v41, %v2401_v27  ;;  %v5201_v44 = vadd.f32 %v3223_v42, %v2409_v28  ;;  %v3227_v49 = vmax.f32 %v5195_v35, 0.0  ;;  %v3229_v50 = vmax.f32 %v5199_v36, 0.0  ;;  %v5986_v26 = vld [vmem:[#allocation11 + $0x2e8] ss:$16 sps:$4 sm:$0xff]   ;;  %v5991_v27 = vld [vmem:[#allocation11 + $0x304] ss:$16 sps:$4 sm:$0xff]  }
 0x4ba   :  { %v3230_v47 = vmax.f32 %v5196_v39, 0.0  ;;  %v3232_v48 = vmax.f32 %v5200_v40, 0.0  ;;  %v5994_v28 = vld [vmem:[#allocation11 + $0x30c] ss:$16 sps:$4 sm:$0xff]   ;;  %v5997_v32 = vld [vmem:[#allocation11 + $0x324] ss:$16 sps:$4 sm:$0xff]  }
 0x4bb   :  { %v3231_v51 = vmax.f32 %v5197_v43, 0.0  ;;  %v3233_v31 = vmax.f32 %v5201_v44, 0.0  ;;  %v6000_v33 = vld [vmem:[#allocation11 + $0x32c] ss:$16 sps:$4 sm:$0xff]   ;;  %v6003_v35 = vld [vmem:[#allocation11 + $0x344] ss:$16 sps:$4 sm:$0xff]  }
 0x4bc   :  { %v3234_v52 = vpack.c.bf16 %v3230_v47, %v3226_v45  ;;  %v6499_v53 = vpack.c.bf16 %v3232_v48, %v3228_v46  ;;  %v6006_v36 = vld [vmem:[#allocation11 + $0x34c] ss:$16 sps:$4 sm:$0xff]   ;;  %v6001_v37 = vld [vmem:[#allocation11 + $0x340] ss:$16 sps:$4 sm:$0xff]   ;;  %v6004_v38 = vld [vmem:[#allocation11 + $0x348] ss:$16 sps:$4 sm:$0xff]  }
 0x4bd   :  { %v3235_v54 = vpack.c.bf16 %v3231_v51, %v3227_v49  ;;  %v3237_v55 = vpack.c.bf16 %v3233_v31, %v3229_v50  ;;  %v6009_v39 = vld [vmem:[#allocation11 + $0x364] ss:$16 sps:$4 sm:$0xff]   ;;  %v6012_v40 = vld [vmem:[#allocation11 + $0x36c] ss:$16 sps:$4 sm:$0xff]   ;;  %v6007_v41 = vld [vmem:[#allocation11 + $0x360] ss:$16 sps:$4 sm:$0xff]  }
 0x4be   :  { %v6010_v42 = vld [vmem:[#allocation11 + $0x368] ss:$16 sps:$4 sm:$0xff]   ;;  %v6015_v43 = vld [vmem:[#allocation11 + $0x384] ss:$16 sps:$4 sm:$0xff]   ;;  %v6018_v44 = vld [vmem:[#allocation11 + $0x38c] ss:$16 sps:$4 sm:$0xff]  }
 0x4bf   :  { %4060 = vmatprep.mubr.bf16.mxu0 %v3235_v54  ;;  %4146 = vmatprep.mubr.bf16.mxu1 %v3235_v54  ;;  %v6013_v45 = vld [vmem:[#allocation11 + $0x380] ss:$16 sps:$4 sm:$0xff]   ;;  %v6016_v46 = vld [vmem:[#allocation11 + $0x388] ss:$16 sps:$4 sm:$0xff]   ;;  %v6021_v47 = vld [vmem:[#allocation11 + $0x3a4] ss:$16 sps:$4 sm:$0xff]  }
 0x4c0   :  { %4061 = vmatmul.mubr.bf16.vlgmr.msra.gmra.mrb[16].mxu0 %v3234_v52  ;;  %4147 = vmatmul.mubr.bf16.vlgmr.msra.gmra.mrb[16].mxu1 %v3234_v52  ;;  %v6024_v48 = vld [vmem:[#allocation11 + $0x3ac] ss:$16 sps:$4 sm:$0xff]   ;;  %v6019_v49 = vld [vmem:[#allocation11 + $0x3a0] ss:$16 sps:$4 sm:$0xff]   ;;  %v6022_v50 = vld [vmem:[#allocation11 + $0x3a8] ss:$16 sps:$4 sm:$0xff]  }
 0x4c1   :  { %4072 = vmatpush1.bf16.msra.mxu0 %v5941_v56  ;;  %4158 = vmatpush1.bf16.msra.mxu1 %v5944_v57  ;;  %v6027_v51 = vld [vmem:[#allocation11 + $0x3c4] ss:$16 sps:$4 sm:$0xff]   ;;  %v6030_v31 = vld [vmem:[#allocation11 + $0x3cc] ss:$16 sps:$4 sm:$0xff]   ;;  %v6025_v52 = vld [vmem:[#allocation11 + $0x3c0] ss:$16 sps:$4 sm:$0xff]  }
 0x4c2   :  { %4103 = vmatprep.mubr.bf16.mxu0 %v3237_v55  ;;  %4189 = vmatprep.mubr.bf16.mxu1 %v3237_v55  ;;  %v6028_v54 = vld [vmem:[#allocation11 + $0x3c8] ss:$16 sps:$4 sm:$0xff]   ;;  %v6033_v55 = vld [vmem:[#allocation11 + $0x3e4] ss:$16 sps:$4 sm:$0xff]   ;;  %v6036_v56 = vld [vmem:[#allocation11 + $0x3ec] ss:$16 sps:$4 sm:$0xff]  }
 0x4c3   :  { %4073 = vmatprep.subr.bf16.mxu0 %v5949_v58  ;;  %4159 = vmatprep.subr.bf16.mxu1 %v5952_v60  ;;  %v6031_v57 = vld [vmem:[#allocation11 + $0x3e0] ss:$16 sps:$4 sm:$0xff]   ;;  %v6034_v58 = vld [vmem:[#allocation11 + $0x3e8] ss:$16 sps:$4 sm:$0xff]  }
 0x4c4   :  { %v6037_v60 = vld [vmem:[#allocation13 + $0x40] sm:$0xff]  }
 0x4c5   :  { %4074 = vmatpush1.bf16.msra.mxu0 %v5947_v61  ;;  %4160 = vmatpush1.bf16.msra.mxu1 %v5950_v62  ;;  %v6038_v61 = vld [vmem:[#allocation13 + $0xc0] sm:$0xff]  }
 0x4c6   :  { %4075 = vmatprep.subr.bf16.mxu0 %v5955_v63  ;;  %4161 = vmatprep.subr.bf16.mxu1 %v5958_v0  ;;  %v6039_v62 = vld [vmem:[#allocation13] sm:$0xff]   ;;  %v6041_v0 = vld [vmem:[#allocation13 + $0x48] sm:$0xff]  }
 0x4c7   :  { %v6040_v63 = vld [vmem:[#allocation13 + $0x80] sm:$0xff]  }
 0x4c9   :  { %4076 = vmatpush1.bf16.msra.mxu0 %v5953_v1  ;;  %4162 = vmatpush1.bf16.msra.mxu1 %v5956_v2  ;;  %v6042_v1 = vld [vmem:[#allocation13 + $0xc8] sm:$0xff]  }
 0x4ca   :  { %4077 = vmatprep.subr.bf16.mxu0 %v5961_v3  ;;  %4163 = vmatprep.subr.bf16.mxu1 %v5964_v4  ;;  %v6043_v2 = vld [vmem:[#allocation13 + $0x8] sm:$0xff]   ;;  %v6045_v4 = vld [vmem:[#allocation13 + $0x50] sm:$0xff]  }
 0x4cb   :  { %v6044_v3 = vld [vmem:[#allocation13 + $0x88] sm:$0xff]  }
 0x4cd   :  { %4078 = vmatpush1.bf16.msra.mxu0 %v5959_v5  ;;  %4164 = vmatpush1.bf16.msra.mxu1 %v5962_v6  ;;  %v6046_v5 = vld [vmem:[#allocation13 + $0xd0] sm:$0xff]  }
 0x4ce   :  { %4079 = vmatprep.subr.bf16.mxu0 %v5967_v59  ;;  %4165 = vmatprep.subr.bf16.mxu1 %v5970_v7  ;;  %v6047_v6 = vld [vmem:[#allocation13 + $0x10] sm:$0xff]   ;;  %v6049_v7 = vld [vmem:[#allocation13 + $0x58] sm:$0xff]  }
 0x4cf   :  { %v6048_v59 = vld [vmem:[#allocation13 + $0x90] sm:$0xff]  }
 0x4d1   :  { %4080 = vmatpush1.bf16.msra.mxu0 %v5965_v9  ;;  %4166 = vmatpush1.bf16.msra.mxu1 %v5968_v10  ;;  %v6050_v9 = vld [vmem:[#allocation13 + $0xd8] sm:$0xff]  }
 0x4d2   :  { %4081 = vmatprep.subr.bf16.mxu0 %v5973_v11  ;;  %4167 = vmatprep.subr.bf16.mxu1 %v5976_v12  ;;  %v6051_v10 = vld [vmem:[#allocation13 + $0x18] sm:$0xff]   ;;  %v6053_v11 = vld [vmem:[#allocation13 + $0x60] sm:$0xff]  }
 0x4d3   :  { %v6054_v12 = vld [vmem:[#allocation13 + $0xe0] sm:$0xff]  }
 0x4d5   :  { %4082 = vmatpush1.bf16.msra.mxu0 %v5971_v13  ;;  %4168 = vmatpush1.bf16.msra.mxu1 %v5974_v14  ;;  %v6055_v13 = vld [vmem:[#allocation13 + $0x20] sm:$0xff]  }
 0x4d6   :  { %4083 = vmatprep.subr.bf16.mxu0 %v5979_v15  ;;  %4169 = vmatprep.subr.bf16.mxu1 %v5982_v16  ;;  %v6056_v14 = vld [vmem:[#allocation13 + $0xa0] sm:$0xff]   ;;  %v6057_v15 = vld [vmem:[#allocation13 + $0x68] sm:$0xff]  }
 0x4d7   :  { %v6058_v16 = vld [vmem:[#allocation13 + $0xe8] sm:$0xff]  }
 0x4d9   :  { %4084 = vmatpush1.bf16.msra.mxu0 %v5977_v19  ;;  %4170 = vmatpush1.bf16.msra.mxu1 %v5980_v21  ;;  %v6059_v19 = vld [vmem:[#allocation13 + $0x28] sm:$0xff]  }
 0x4da   :  { %4085 = vmatprep.subr.bf16.mxu0 %v5985_v23  ;;  %4171 = vmatprep.subr.bf16.mxu1 %v5988_v24  ;;  %v6060_v21 = vld [vmem:[#allocation13 + $0xa8] sm:$0xff]   ;;  %v6061_v23 = vld [vmem:[#allocation13 + $0x70] sm:$0xff]  }
 0x4db   :  { %v6062_v24 = vld [vmem:[#allocation13 + $0xf0] sm:$0xff]  }
 0x4dd   :  { %4086 = vmatpush1.bf16.msra.mxu0 %v5983_v25  ;;  %4172 = vmatpush1.bf16.msra.mxu1 %v5986_v26  ;;  %v6063_v25 = vld [vmem:[#allocation13 + $0x30] sm:$0xff]  }
 0x4de   :  { %4087 = vmatprep.subr.bf16.mxu0 %v5991_v27  ;;  %4173 = vmatprep.subr.bf16.mxu1 %v5994_v28  ;;  %v6064_v26 = vld [vmem:[#allocation13 + $0xb0] sm:$0xff]   ;;  %v6065_v27 = vld [vmem:[#allocation13 + $0x78] sm:$0xff]  }
 0x4df   :  { %v6066_v28 = vld [vmem:[#allocation13 + $0xf8] sm:$0xff]  }
 0x4e1   :  { %4088 = vmatpush1.bf16.msra.mxu0 %v5989_v29  ;;  %4174 = vmatpush1.bf16.msra.mxu1 %v5992_v30  ;;  %v6067_v29 = vld [vmem:[#allocation13 + $0x38] sm:$0xff]  }
 0x4e2   :  { %4089 = vmatprep.subr.bf16.mxu0 %v5997_v32  ;;  %4175 = vmatprep.subr.bf16.mxu1 %v6000_v33  ;;  %v6068_v30 = vld [vmem:[#allocation13 + $0xb8] sm:$0xff]   ;;  %v3366_v32 = vld [vmem:[%s6538_s10] sm:$0xf] }
 0x4e3   :  { %v3371_v33 = vrot.slane %v3366_v32, %v6454_v17 }
 0x4e5   :  { %4090 = vmatpush1.bf16.msra.mxu0 %v5995_v8  ;;  %4176 = vmatpush1.bf16.msra.mxu1 %v5998_v34  ;;  %v3379_v8 = vrot.slane %v3366_v32, %v6459_v20  ;;  %v3375_v34 = vrot.slane %v3366_v32, %v6456_v18 }
 0x4e6   :  { %4091 = vmatprep.subr.bf16.mxu0 %v6003_v35  ;;  %4177 = vmatprep.subr.bf16.mxu1 %v6006_v36  ;;  %v3383_v35 = vrot.slane %v3366_v32, %v6462_v22 }
 0x4e9   :  { %4092 = vmatpush1.bf16.msra.mxu0 %v6001_v37  ;;  %4178 = vmatpush1.bf16.msra.mxu1 %v6004_v38 }
 0x4ea   :  { %4093 = vmatprep.subr.bf16.mxu0 %v6009_v39  ;;  %4179 = vmatprep.subr.bf16.mxu1 %v6012_v40 }
 0x4ed   :  { %4094 = vmatpush1.bf16.msra.mxu0 %v6007_v41  ;;  %4180 = vmatpush1.bf16.msra.mxu1 %v6010_v42 }
 0x4ee   :  { %4095 = vmatprep.subr.bf16.mxu0 %v6015_v43  ;;  %4181 = vmatprep.subr.bf16.mxu1 %v6018_v44 }
 0x4f1   :  { %4096 = vmatpush1.bf16.msra.mxu0 %v6013_v45  ;;  %4182 = vmatpush1.bf16.msra.mxu1 %v6016_v46 }
 0x4f2   :  { %4097 = vmatprep.subr.bf16.mxu0 %v6021_v47  ;;  %4183 = vmatprep.subr.bf16.mxu1 %v6024_v48 }
 0x4f5   :  { %4098 = vmatpush1.bf16.msra.mxu0 %v6019_v49  ;;  %4184 = vmatpush1.bf16.msra.mxu1 %v6022_v50 }
 0x4f6   :  { %4099 = vmatprep.subr.bf16.mxu0 %v6027_v51  ;;  %4185 = vmatprep.subr.bf16.mxu1 %v6030_v31 }
 0x4f9   :  { %4100 = vmatpush1.bf16.msra.mxu0 %v6025_v52  ;;  %4186 = vmatpush1.bf16.msra.mxu1 %v6028_v54 }
 0x4fa   :  { %4101 = vmatprep.subr.bf16.mxu0 %v6033_v55  ;;  %4187 = vmatprep.subr.bf16.mxu1 %v6036_v56 }
 0x4fd   :  { %4102 = vmatpush1.bf16.msra.mxu0 %v6031_v57  ;;  %4188 = vmatpush1.bf16.msra.mxu1 %v6034_v58 }
 0x4fe   :  { %5134 = vmatprep.subr.bf16.mxu0 %v6037_v60  ;;  %5156 = vmatprep.subr.bf16.mxu1 %v6038_v61 }
 0x500   :  { %4104 = vmatmul.mubr.bf16.vlgmr.msra.gmra.mrb[16].mxu0 %v6499_v53  ;;  %4190 = vmatmul.mubr.bf16.vlgmr.msra.gmra.mrb[16].mxu1 %v6499_v53  ;;  %v6052_v53 = vld [vmem:[#allocation13 + $0x98] sm:$0xff]  }
 0x501   :  { %5135 = vmatpush3.bf16.msra.mxu0 %v6039_v62  ;;  %5157 = vmatpush3.bf16.msra.mxu1 %v6040_v63  ;;  %v5101_v63 = vld [vmem:[%s6540_s12] ss:$0 sm:$0xff]  ;;  %s6223_s12 = scalar_lea.vmem %s4565_s26, 256 }
 0x502   :  { %5136 = vmatprep.subr.bf16.mxu0 %v6041_v0  ;;  %5158 = vmatprep.subr.bf16.mxu1 %v6042_v1  ;;  %p6224_p0 = scmp.ne.s32.totalorder %s4565_s26, %s6223_s12  ;;  %p6229_p2 = scmp.lt.s32.totalorder %s6223_s12, %s6223_s12 }
 0x504   :  { %p6230_p3 = por %p6229_p2, %p6228_p1 }
 0x505   :  { %5137 = vmatpush3.bf16.msra.mxu0 %v6043_v2  ;;  %5159 = vmatpush3.bf16.msra.mxu1 %v6044_v3 }
 0x506   :  { %5138 = vmatprep.subr.bf16.mxu0 %v6045_v4  ;;  %5160 = vmatprep.subr.bf16.mxu1 %v6046_v5  ;;  %p6231_p4 = pnand %p6230_p3, %p6224_p0 }
 0x509   :  { %5139 = vmatpush3.bf16.msra.mxu0 %v6047_v6  ;;  %5161 = vmatpush3.bf16.msra.mxu1 %v6048_v59 }
 0x50a   :  { %5140 = vmatprep.subr.bf16.mxu0 %v6049_v7  ;;  %5162 = vmatprep.subr.bf16.mxu1 %v6050_v9 }
 0x50d   :  { %5141 = vmatpush3.bf16.msra.mxu0 %v6051_v10  ;;  %5163 = vmatpush3.bf16.msra.mxu1 %v6052_v53 }
 0x50e   :  { %5142 = vmatprep.subr.bf16.mxu0 %v6053_v11  ;;  %5164 = vmatprep.subr.bf16.mxu1 %v6054_v12 }
 0x511   :  { %5143 = vmatpush3.bf16.msra.mxu0 %v6055_v13  ;;  %5165 = vmatpush3.bf16.msra.mxu1 %v6056_v14 }
 0x512   :  { %5144 = vmatprep.subr.bf16.mxu0 %v6057_v15  ;;  %5166 = vmatprep.subr.bf16.mxu1 %v6058_v16 }
 0x515   :  { %5145 = vmatpush3.bf16.msra.mxu0 %v6059_v19  ;;  %5167 = vmatpush3.bf16.msra.mxu1 %v6060_v21 }
 0x516   :  { %5146 = vmatprep.subr.bf16.mxu0 %v6061_v23  ;;  %5168 = vmatprep.subr.bf16.mxu1 %v6062_v24 }
 0x519   :  { %5147 = vmatpush3.bf16.msra.mxu0 %v6063_v25  ;;  %5169 = vmatpush3.bf16.msra.mxu1 %v6064_v26 }
 0x51a   :  { %5148 = vmatprep.subr.bf16.mxu0 %v6065_v27  ;;  %5170 = vmatprep.subr.bf16.mxu1 %v6066_v28 }
 0x51d   :  { %5149 = vmatpush3.bf16.msra.mxu0 %v6067_v29  ;;  %5171 = vmatpush3.bf16.msra.mxu1 %v6068_v30 }
 0x5d3   :  { %v4105_v36 = vpop.f32.mrb[16].mxu0  ;;  %v4191_v37 = vpop.f32.mrb[16].mxu1 }
 0x5d4   :  { %v5202_v38 = vadd.f32 %v4105_v36, %v3371_v33  ;;  %v5206_v39 = vadd.f32 %v4191_v37, %v3379_v8  ;;  %v4107_v40 = vpop.f32.mrb[17].mxu0  ;;  %v4193_v41 = vpop.f32.mrb[17].mxu1 }
 0x5d5   :  { %v5203_v42 = vadd.f32 %v4107_v40, %v3375_v34  ;;  %v5207_v43 = vadd.f32 %v4193_v41, %v3383_v35  ;;  %v4109_v44 = vpop.f32.mrb[18].mxu0  ;;  %v4195_v45 = vpop.f32.mrb[18].mxu1 }
 0x5d6   :  { %v5204_v46 = vadd.f32 %v4109_v44, %v3371_v33  ;;  %v5208_v47 = vadd.f32 %v4195_v45, %v3379_v8  ;;  %v4111_v48 = vpop.f32.mrb[19].mxu0  ;;  %v4197_v17 = vpop.f32.mrb[19].mxu1  ;;  %v4200_v50 = vmax.f32 %v5202_v38, 0.0  ;;  %v4202_v18 = vmax.f32 %v5206_v39, 0.0 }
 0x5d7   :  { %v5205_v49 = vadd.f32 %v4111_v48, %v3375_v34  ;;  %v5209_v20 = vadd.f32 %v4197_v17, %v3383_v35  ;;  %v4201_v31 = vmax.f32 %v5203_v42, 0.0  ;;  %v4203_v52 = vmax.f32 %v5207_v43, 0.0 }
 0x5d8   :  { %v4204_v51 = vmax.f32 %v5204_v46, 0.0  ;;  %v4206_v22 = vmax.f32 %v5208_v47, 0.0 }
 0x5d9   :  { %v4205_v54 = vmax.f32 %v5205_v49, 0.0  ;;  %v4207_v55 = vmax.f32 %v5209_v20, 0.0 }
 0x5da   :  { %v4208_v56 = vpack.c.bf16 %v4204_v51, %v4200_v50  ;;  %v4210_v57 = vpack.c.bf16 %v4206_v22, %v4202_v18 }
 0x5db   :  { %v4209_v58 = vpack.c.bf16 %v4205_v54, %v4201_v31  ;;  %v4211_v60 = vpack.c.bf16 %v4207_v55, %v4203_v52 }
 0x5dd   :  { %4507 = vmatprep.mubr.bf16.mxu0 %v4209_v58  ;;  %4548 = vmatprep.mubr.bf16.mxu1 %v4211_v60 }
 0x5de   :  { %4508 = vmatmul.mubr.bf16.vlgmr.msra.gmra.mrb[20].mxu0 %v4208_v56  ;;  %4549 = vmatmul.mubr.bf16.vlgmr.msra.gmra.mrb[20].mxu1 %v4210_v57 }
 0x6b1   :  { %v5150_v61 = vpop.f32.mrb[20].mxu0  ;;  %v5172_v62 = vpop.f32.mrb[20].mxu1 }
 0x6b2   :  { %v5151_v0 = vpop.f32.mrb[21].mxu0  ;;  %v5173_v1 = vpop.f32.mrb[21].mxu1 }
 0x6b3   :  { %v5152_v2 = vadd.f32 %v5151_v0, %v5150_v61  ;;  %v5174_v3 = vadd.f32 %v5173_v1, %v5172_v62  ;;  %v5153_v4 = vpop.f32.mrb[22].mxu0  ;;  %v5175_v5 = vpop.f32.mrb[22].mxu1 }
 0x6b4   :  { %v5154_v6 = vpop.f32.mrb[23].mxu0  ;;  %v5176_v59 = vpop.f32.mrb[23].mxu1 }
 0x6b5   :  { %v4510_v7 = vadd.f32 %v5152_v2, %v5101_v63  ;;  %v5155_v9 = vadd.f32 %v5154_v6, %v5153_v4  ;;  %v5177_v10 = vadd.f32 %v5176_v59, %v5175_v5 }
 0x6b7   :  { %v4551_v53 = vadd.f32 %v5174_v3, %v4510_v7  ;;  %v4513_v11 = vadd.f32 %v5155_v9, %v5101_v63 }
 0x6b9   :  { %4557 = vst [vmem:[#allocation14] sm:$0xff] %v4551_v53  ;;  %v4554_v12 = vadd.f32 %v5177_v10, %v4513_v11 }
 0x6bb   :  { %4558 = vst [vmem:[#allocation14 + $0x8] sm:$0xff] %v4554_v12 }
 0x6bc   :  { %6234 = shalt.err (!%p6231_p4)
}
 0x6bd   :  { %s6235_s21 = scalar_lea.hbm %s6541_s13, 256 }
 0x6be   :  { %p6236_p5 = scmp.ne.s32.totalorder %s6541_s13, %s6235_s21  ;;  %p6239_p6 = scmp.lt.u32.totalorder %s6235_s21, %s6541_s13 }
 0x6c0   :  { %p6241_p7 = pnand %p6239_p6, %p6236_p5 }
 0x6c2   :  { %6244 = shalt.err (!%p6241_p7)
}
 0x6c3   :  { %4570 = dma.vmem_to_hbm [thread:$0]  %s4565_s26, 256, %s6541_s13, [#allocation4], %s6261_s9, %s6261_s9, %s6262_s25  }
 0x6c4   :  { %6253 = dma.done.wait [#allocation4], 256  }
 0x6c5   :  { %6254 = vsyncadd [#allocation4], 4294967040 }
 0x6c6   :  { %4574 = vsyncpa [#allocation3], 1 }
 0x6c7   :  { %4575 = vsyncpa [#allocation6], 1 }
 0x6c8   :  { %4576 = vsyncpa [#allocation9], 1 }
 0x6c9   :  { %4577 = vsyncpa [#allocation12], 1 }
 0x6ca   :  { %4578 = vsyncpa [#allocation4], 1 }

</bundles_post_ra>
